<compile_context>
chip_gen: v7x
topology: tpu7x:2x2x1
jax: 0.10.0
libtpu: 0.0.40
codegen_flags: <defaults>
</compile_context>

<pallas_src>
import math
import numpy as np
import jax
import jax.numpy as jnp
from jax.experimental import pallas as pl
from jax.experimental.pallas import tpu as pltpu

# ---------------- config (stand-in for `tconfig`) ----------------
D_MODEL = 32          # tconfig.layer_dimension
N_HEADS = 4           # tconfig.num_attention_heads
D_HEAD = D_MODEL // N_HEADS
D_FF = 64             # tconfig.inner_layer_dimension
N_LAYERS = 2          # tconfig.num_layers
VOCAB = 50
V_PAD = 128           # vocab padded to a full 128-lane vreg (lane-dense output)
EMB_RANK = 16         # embedding_rank (factorized embedding / generator rank)
EPS = 1e-6
NEG_INF = -1e9


# ---------------- in-kernel helpers ----------------
def _layernorm(v, a, b):
    mean = jnp.mean(v, axis=-1, keepdims=True)
    var = jnp.mean(jnp.square(v - mean), axis=-1, keepdims=True)
    return a * (v - mean) * jax.lax.rsqrt(var + EPS) + b


def _attn(q, k, v, mask_add):
    """Multi-head attention core.

    q:(Nq, H*Dh) k/v:(Nk, H*Dh) f32 (already projected, fused/lane-dense),
    mask_add:(Nq, Nk) additive (0 / -1e9).  Returns (Nq, H*Dh) f32 — the heads are
    merged back lane-wise so the output projection is a single full-width matmul.
    """
    def split(x):  # lane-split into heads; no reshape of the lane dim needed
        return jnp.stack(
            [x[:, h * D_HEAD:(h + 1) * D_HEAD] for h in range(N_HEADS)],
            axis=0).astype(jnp.bfloat16)                       # (H, N, Dh) bf16

    qh, kh, vh = split(q), split(k), split(v)
    s = jnp.einsum('hqf,hkf->hqk', qh, kh, preferred_element_type=jnp.float32)
    s = s * (1.0 / math.sqrt(D_HEAD)) + mask_add[None]
    s = s - jnp.max(s, axis=-1, keepdims=True)
    p = jnp.exp(s)
    p = p * pl.reciprocal(jnp.sum(p, axis=-1, keepdims=True), approx=True)
    ctx = jnp.einsum('hqk,hkf->hqf', p.astype(jnp.bfloat16), vh,
                     preferred_element_type=jnp.float32)       # (H, Nq, Dh) f32
    return jnp.concatenate([ctx[h] for h in range(N_HEADS)], axis=1)   # (Nq, H*Dh)


# ---------------- fused Pallas kernel ----------------
def fused_decoder_kernel(emb_ref, pe_ref, mem_ref, trow_ref, tcol_ref, scol_ref,
                         wep_ref,
                         wsqkv_ref, bsqkv_ref, wcq_ref, bcq_ref, wckv_ref, bckv_ref,
                         wos_ref, bos_ref, woc_ref, boc_ref,
                         wff1_ref, bff1_ref, wff2_ref, bff2_ref,
                         lna_ref, lnb_ref, lng_ref,
                         wg1_ref, bg1_ref, wg2_ref, bg2_ref,
                         labels_ref,
                         lp_ref, loss_ref):
    # tgt_embed: factorized embedding (rank -> d_model) * sqrt(D) + positional enc.
    x = jnp.dot(emb_ref[...], wep_ref[...], preferred_element_type=jnp.float32)
    x = x * math.sqrt(D_MODEL) + pe_ref[...]                    # (BT, D) f32

    mem = mem_ref[...]                                          # (BS, D) bf16

    # Regenerate additive attention masks on the VPU from O(BT + BS) metadata
    # (no dense O(N^2) masks in HBM / DMA).
    trow, tcol, scol = trow_ref[...], tcol_ref[...], scol_ref[...]
    bid_q, pos_q, lvalid = trow[:, 0:1], trow[:, 1:2], trow[:, 2:3]
    allow_t = ((bid_q == tcol[0:1, :]) & (pos_q >= tcol[1:2, :])
               & (tcol[2:3, :] > 0.5))
    tmask = jnp.where(allow_t, 0.0, NEG_INF)                    # (BT, BT)
    allow_s = (bid_q == scol[0:1, :]) & (scol[1:2, :] > 0.5)
    smask = jnp.where(allow_s, 0.0, NEG_INF)                    # (BT, BS)

    for l in range(N_LAYERS):                                   # static unroll
        lna, lnb = lna_ref[l], lnb_ref[l]                       # (3, D) each

        # sublayer 0: masked self-attention — fused (D, 3D) QKV projection
        x2 = _layernorm(x, lna[0], lnb[0]).astype(jnp.bfloat16)
        qkv = jnp.dot(x2, wsqkv_ref[l],
                      preferred_element_type=jnp.float32) + bsqkv_ref[l]   # (BT, 3D)
        att = _attn(qkv[:, 0:D_MODEL], qkv[:, D_MODEL:2 * D_MODEL],
                    qkv[:, 2 * D_MODEL:3 * D_MODEL], tmask)
        x = x + jnp.dot(att.astype(jnp.bfloat16), wos_ref[l],
                        preferred_element_type=jnp.float32) + bos_ref[l]

        # sublayer 1: cross-attention over encoder memory — fused (D, 2D) KV proj
        x2 = _layernorm(x, lna[1], lnb[1]).astype(jnp.bfloat16)
        q = jnp.dot(x2, wcq_ref[l],
                    preferred_element_type=jnp.float32) + bcq_ref[l]       # (BT, D)
        kv = jnp.dot(mem, wckv_ref[l],
                     preferred_element_type=jnp.float32) + bckv_ref[l]     # (BS, 2D)
        att = _attn(q, kv[:, 0:D_MODEL], kv[:, D_MODEL:2 * D_MODEL], smask)
        x = x + jnp.dot(att.astype(jnp.bfloat16), woc_ref[l],
                        preferred_element_type=jnp.float32) + boc_ref[l]

        # sublayer 2: position-wise feed-forward
        x2 = _layernorm(x, lna[2], lnb[2]).astype(jnp.bfloat16)
        h = jnp.maximum(
            jnp.dot(x2, wff1_ref[l], preferred_element_type=jnp.float32) + bff1_ref[l],
            0.0)
        x = x + jnp.dot(h.astype(jnp.bfloat16), wff2_ref[l],
                        preferred_element_type=jnp.float32) + bff2_ref[l]

    # final LayerNorm + factorized Generator (D -> rank -> vocab_padded) + log_softmax
    lng = lng_ref[...]
    xg = _layernorm(x, lng[0], lng[1])
    hg = jnp.dot(xg.astype(jnp.bfloat16), wg1_ref[...],
                 preferred_element_type=jnp.float32) + bg1_ref[...]
    logits = jnp.dot(hg.astype(jnp.bfloat16), wg2_ref[...],
                     preferred_element_type=jnp.float32) + bg2_ref[...]
    m = jnp.max(logits, axis=-1, keepdims=True)
    lse = jnp.log(jnp.sum(jnp.exp(logits - m), axis=-1, keepdims=True)) + m
    logprobs = logits - lse
    lp_ref[...] = logprobs                                      # lane-dense (BT, 128)

    # fused eval loss: CrossEntropyLoss(sum) on log-probs == sum(-logp[label])
    lane = jax.lax.broadcasted_iota(jnp.int32, logprobs.shape, 1)
    picked = jnp.sum(jnp.where(lane == labels_ref[...], logprobs, 0.0),
                     axis=-1, keepdims=True)                    # (BT, 1)
    loss_ref[...] = jnp.sum(-picked * lvalid, keepdims=True)    # (1, 1) scalar loss


def _fused_pallas(emb_rows, pe_rows, mem, trow, tcol, scol, labels, packed):
    bt = emb_rows.shape[0]
    inputs = (emb_rows, pe_rows, mem, trow, tcol, scol,
              packed["w_emb_proj"],
              packed["w_self_qkv"], packed["b_self_qkv"],
              packed["w_cross_q"], packed["b_cross_q"],
              packed["w_cross_kv"], packed["b_cross_kv"],
              packed["w_o_self"], packed["b_o_self"],
              packed["w_o_cross"], packed["b_o_cross"],
              packed["w_ff1"], packed["b_ff1"], packed["w_ff2"], packed["b_ff2"],
              packed["ln_a"], packed["ln_b"], packed["ln_g"],
              packed["w_g1"], packed["b_g1"], packed["w_g2"], packed["b_g2"],
              labels)
    vmem = pl.BlockSpec(memory_space=pltpu.MemorySpace.VMEM)
    return pl.pallas_call(
        fused_decoder_kernel,
        out_shape=(jax.ShapeDtypeStruct((bt, V_PAD), jnp.float32),
                   jax.ShapeDtypeStruct((1, 1), jnp.float32)),
        in_specs=[vmem] * len(inputs),
        out_specs=(vmem, vmem),
        compiler_params=pltpu.CompilerParams(vmem_limit_bytes=32 * 1024 * 1024),
    )(*inputs)


@jax.jit
def _device_forward(token_ids, pe_rows, mem, trow, tcol, scol, labels, packed):
    # factorized-embedding row gather stays on device, fused under one jit
    emb_rows = jnp.take(packed["emb_table"], token_ids, axis=0)    # (BT, R) bf16
    return _fused_pallas(emb_rows, pe_rows, mem, trow, tcol, scol, labels, packed)


# ---------------- parameter init (deterministic, synthetic) ----------------
def init_params(key):
    def nrm(k, shape, fan_in):
        return (jax.random.normal(k, shape, jnp.float32) / math.sqrt(fan_in)).astype(jnp.float32)

    keys = jax.random.split(key, 4 * N_LAYERS + 4)
    layers = []
    for l in range(N_LAYERS):
        k0, k1, k2, _ = keys[4 * l:4 * l + 4]
        layers.append(dict(
            w_attn=nrm(k0, (8, D_MODEL, D_MODEL), D_MODEL),   # 0-3 self (Wq,Wk,Wv,Wo), 4-7 cross
            b_attn=jnp.zeros((8, D_MODEL), jnp.float32),
            w_ff1=nrm(k1, (D_MODEL, D_FF), D_MODEL),
            b_ff1=jnp.zeros((D_FF,), jnp.float32),
            w_ff2=nrm(k2, (D_FF, D_MODEL), D_FF),
            b_ff2=jnp.zeros((D_MODEL,), jnp.float32),
            ln_a=jnp.ones((3, D_MODEL), jnp.float32),
            ln_b=jnp.zeros((3, D_MODEL), jnp.float32),
        ))
    ke, kp, kg1, kg2 = keys[4 * N_LAYERS:]
    emb = dict(
        table=nrm(ke, (VOCAB, EMB_RANK), EMB_RANK),       # TrFactorizedEmbeddings table
        proj=nrm(kp, (EMB_RANK, D_MODEL), EMB_RANK),      # rank -> d_model projection
    )
    gen = dict(
        ln_a=jnp.ones((D_MODEL,), jnp.float32),
        ln_b=jnp.zeros((D_MODEL,), jnp.float32),
        w_g1=nrm(kg1, (D_MODEL, EMB_RANK), D_MODEL),
        b_g1=jnp.zeros((1, EMB_RANK), jnp.float32),
        w_g2=nrm(kg2, (EMB_RANK, VOCAB), EMB_RANK),
        b_g2=jnp.zeros((1, VOCAB), jnp.float32),
    )
    return layers, emb, gen


def pack_params(layers, emb, gen):
    """One-time repack into fused, lane-dense, bf16 matmul weights (hoisted from forward)."""
    w_sqkv, b_sqkv, w_cq, b_cq, w_ckv, b_ckv = [], [], [], [], [], []
    w_os, b_os, w_oc, b_oc = [], [], [], []
    for p in layers:
        W = np.asarray(p["w_attn"])
        Bb = np.asarray(p["b_attn"])
        w_sqkv.append(np.concatenate([W[0], W[1], W[2]], axis=1))   # (D, 3D) fused self QKV
        b_sqkv.append(np.concatenate([Bb[0], Bb[1], Bb[2]]))        # (3D,)
        w_os.append(W[3]); b_os.append(Bb[3])                       # self Wo (D, D)
        w_cq.append(W[4]); b_cq.append(Bb[4])                       # cross Wq (D, D)
        w_ckv.append(np.concatenate([W[5], W[6]], axis=1))          # (D, 2D) fused cross KV
        b_ckv.append(np.concatenate([Bb[5], Bb[6]]))
        w_oc.append(W[7]); b_oc.append(Bb[7])                       # cross Wo (D, D)
    w_g2_pad = np.pad(np.asarray(gen["w_g2"]), ((0, 0), (0, V_PAD - VOCAB)))
    b_g2_pad = np.pad(np.asarray(gen["b_g2"]), ((0, 0), (0, V_PAD - VOCAB)),
                      constant_values=NEG_INF)      # padded vocab lanes -> -inf logits
    bf = jnp.bfloat16
    f32 = jnp.float32
    return dict(
        emb_table=jnp.asarray(emb["table"], bf),
        w_emb_proj=jnp.asarray(emb["proj"], bf),
        w_self_qkv=jnp.asarray(np.stack(w_sqkv), bf),     # (L, D, 3D)
        b_self_qkv=jnp.asarray(np.stack(b_sqkv), f32),    # (L, 3D)
        w_cross_q=jnp.asarray(np.stack(w_cq), bf),        # (L, D, D)
        b_cross_q=jnp.asarray(np.stack(b_cq), f32),       # (L, D)
        w_cross_kv=jnp.asarray(np.stack(w_ckv), bf),      # (L, D, 2D)
        b_cross_kv=jnp.asarray(np.stack(b_ckv), f32),     # (L, 2D)
        w_o_self=jnp.asarray(np.stack(w_os), bf),         # (L, D, D)
        b_o_self=jnp.asarray(np.stack(b_os), f32),        # (L, D)
        w_o_cross=jnp.asarray(np.stack(w_oc), bf),        # (L, D, D)
        b_o_cross=jnp.asarray(np.stack(b_oc), f32),       # (L, D)
        w_ff1=jnp.asarray(np.stack([np.asarray(p["w_ff1"]) for p in layers]), bf),
        b_ff1=jnp.stack([p["b_ff1"] for p in layers]),
        w_ff2=jnp.asarray(np.stack([np.asarray(p["w_ff2"]) for p in layers]), bf),
        b_ff2=jnp.stack([p["b_ff2"] for p in layers]),
        ln_a=jnp.stack([p["ln_a"] for p in layers]),      # (L, 3, D) f32
        ln_b=jnp.stack([p["ln_b"] for p in layers]),
        ln_g=jnp.stack([gen["ln_a"], gen["ln_b"]]),       # (2, D) f32
        w_g1=jnp.asarray(gen["w_g1"], bf),                # (D, R)
        b_g1=jnp.asarray(gen["b_g1"], f32),               # (1, R)
        w_g2=jnp.asarray(w_g2_pad, bf),                   # (R, 128)
        b_g2=jnp.asarray(b_g2_pad, f32),                  # (1, 128)
    )


def sinusoidal_pe(max_len, d_model):
    pe = np.zeros((max_len, d_model), np.float32)
    pos = np.arange(max_len)[:, None].astype(np.float32)
    div = np.exp(np.arange(0, d_model, 2).astype(np.float32) * -(math.log(10000.0) / d_model))
    pe[:, 0::2] = np.sin(pos * div)
    pe[:, 1::2] = np.cos(pos * div)
    return pe


# ---------------- forward (eval branch of Decoder.forward) ----------------
def decoder_forward(src_enc, src_mask, tgt_list, packed, pe_np):
    decode_tgt = [np.asarray(np.asarray(t)[:-1], np.int32) for t in tgt_list]
    B = len(tgt_list)
    T = max(len(t) for t in decode_tgt)
    S = src_enc.shape[1]
    BT, BS = B * T, B * S
    BT_pad = ((BT + 7) // 8) * 8          # keep flattened rows sublane-aligned
    BS_pad = ((BS + 7) // 8) * 8

    token_ids = np.zeros((BT_pad,), np.int32)
    bid = np.full((BT_pad,), -1.0, np.float32)
    pos = np.zeros((BT_pad,), np.float32)
    keyok = np.zeros((BT_pad,), np.float32)
    lvalid = np.zeros((BT_pad,), np.float32)
    labels = np.zeros((BT_pad, 1), np.int32)
    pe_rows = np.zeros((BT_pad, D_MODEL), np.float32)
    for b, (t_full, t_dec) in enumerate(zip(tgt_list, decode_tgt)):
        L = len(t_dec)
        r0 = b * T
        token_ids[r0:r0 + L] = t_dec
        bid[r0:r0 + T] = float(b)
        pos[r0:r0 + T] = np.arange(T, dtype=np.float32)
        keyok[r0:r0 + L] = 1.0                                # make_std_mask pad part
        lvalid[r0:r0 + L] = 1.0                               # eval-loss valid positions
        labels[r0:r0 + L, 0] = np.asarray(t_full, np.int32)[1:]
        pe_rows[r0:r0 + T] = pe_np[:T]
    assert labels.min() >= 0 and labels.max() < VOCAB         # NLL pick requires label < VOCAB

    trow = np.stack([bid, pos, lvalid], axis=1).astype(np.float32)      # (BT_pad, 3)
    tcol = np.stack([bid, pos, keyok], axis=0).astype(np.float32)       # (3, BT_pad)

    sbid = np.full((BS_pad,), -1.0, np.float32)
    sok = np.zeros((BS_pad,), np.float32)
    sbid[:BS] = np.repeat(np.arange(B), S).astype(np.float32)
    sok[:BS] = np.asarray(src_mask).reshape(-1).astype(np.float32)
    scol = np.stack([sbid, sok], axis=0).astype(np.float32)             # (2, BS_pad)

    mem = np.zeros((BS_pad, D_MODEL), np.float32)
    mem[:BS] = np.asarray(src_enc, np.float32).reshape(BS, D_MODEL)

    lp, loss = _device_forward(
        jnp.asarray(token_ids), jnp.asarray(pe_rows),
        jnp.asarray(mem, jnp.bfloat16),
        jnp.asarray(trow), jnp.asarray(tcol), jnp.asarray(scol),
        jnp.asarray(labels), packed)

    logprobs = lp[:BT, :VOCAB].reshape(B, T, VOCAB)    # drop vocab / row padding
    return loss[0, 0], 1, logprobs                     # CrossEntropyLoss(reduction='sum')


# ---------------- main ----------------
if __name__ == "__main__":
    key = jax.random.PRNGKey(0)
    k_par, k_src, k_t1, k_t2 = jax.random.split(key, 4)

    layers, emb, gen = init_params(k_par)
    packed = pack_params(layers, emb, gen)             # hoisted: repack / upload once
    pe_np = sinusoidal_pe(64, D_MODEL)

    B, S = 2, 10
    src_enc = jax.random.normal(k_src, (B, S, D_MODEL), jnp.float32)
    # src_mask: (B, 1, S) (seq 0 has 8 valid source positions, seq 1 has 10)
    src_lens = [8, 10]
    src_mask = jnp.asarray(
        np.stack([np.arange(S) < l for l in src_lens])[:, None, :].astype(np.float32))

    # tgt: python list of variable-length token sequences (token 0 = pad)
    t1 = np.asarray(jax.random.randint(k_t1, (7,), 1, VOCAB), np.int32)
    t2 = np.asarray(jax.random.randint(k_t2, (9,), 1, VOCAB), np.int32)
    tgt = [t1, t2]

    loss, norm, logprobs = decoder_forward(src_enc, src_mask, tgt, packed, pe_np)
    logprobs = jax.block_until_ready(logprobs)
    loss = float(jax.block_until_ready(loss))
    assert np.isfinite(loss)
    assert np.all(np.isfinite(np.asarray(logprobs)))
    print("KERNEL_OK")
</pallas_src>

<mosaic_0001>
module attributes {stable_mosaic.version = 11 : i64} {
  func.func @fused_decoder_kernel(%arg0: memref<16x16xbf16, #tpu.memory_space<vmem>>, %arg1: memref<16x32xf32, #tpu.memory_space<vmem>>, %arg2: memref<24x32xbf16, #tpu.memory_space<vmem>>, %arg3: memref<16x3xf32, #tpu.memory_space<vmem>>, %arg4: memref<3x16xf32, #tpu.memory_space<vmem>>, %arg5: memref<2x24xf32, #tpu.memory_space<vmem>>, %arg6: memref<16x32xbf16, #tpu.memory_space<vmem>>, %arg7: memref<2x32x96xbf16, #tpu.memory_space<vmem>>, %arg8: memref<2x96xf32, #tpu.memory_space<vmem>>, %arg9: memref<2x32x32xbf16, #tpu.memory_space<vmem>>, %arg10: memref<2x32xf32, #tpu.memory_space<vmem>>, %arg11: memref<2x32x64xbf16, #tpu.memory_space<vmem>>, %arg12: memref<2x64xf32, #tpu.memory_space<vmem>>, %arg13: memref<2x32x32xbf16, #tpu.memory_space<vmem>>, %arg14: memref<2x32xf32, #tpu.memory_space<vmem>>, %arg15: memref<2x32x32xbf16, #tpu.memory_space<vmem>>, %arg16: memref<2x32xf32, #tpu.memory_space<vmem>>, %arg17: memref<2x32x64xbf16, #tpu.memory_space<vmem>>, %arg18: memref<2x64xf32, #tpu.memory_space<vmem>>, %arg19: memref<2x64x32xbf16, #tpu.memory_space<vmem>>, %arg20: memref<2x32xf32, #tpu.memory_space<vmem>>, %arg21: memref<2x3x32xf32, #tpu.memory_space<vmem>>, %arg22: memref<2x3x32xf32, #tpu.memory_space<vmem>>, %arg23: memref<2x32xf32, #tpu.memory_space<vmem>>, %arg24: memref<32x16xbf16, #tpu.memory_space<vmem>>, %arg25: memref<1x16xf32, #tpu.memory_space<vmem>>, %arg26: memref<16x128xbf16, #tpu.memory_space<vmem>>, %arg27: memref<1x128xf32, #tpu.memory_space<vmem>>, %arg28: memref<16x1xi32, #tpu.memory_space<vmem>>, %arg29: memref<16x128xf32, #tpu.memory_space<vmem>>, %arg30: memref<1x1xf32, #tpu.memory_space<vmem>>) attributes {dimension_semantics = [], scalar_prefetch = 0 : i64, scratch_operands = 0 : i64, tpu.core_type = #tpu.core_type<tc>} {
    %c0 = arith.constant 0 : index
    %c0_0 = arith.constant 0 : index
    %0 = vector.load %arg0[%c0, %c0_0] : memref<16x16xbf16, #tpu.memory_space<vmem>>, vector<16x16xbf16>
    %c0_1 = arith.constant 0 : index
    %c0_2 = arith.constant 0 : index
    %1 = vector.load %arg6[%c0_1, %c0_2] : memref<16x32xbf16, #tpu.memory_space<vmem>>, vector<16x32xbf16>
    %cst = arith.constant dense<0.000000e+00> : vector<16x32xf32>
    %2 = tpu.matmul %0, %1, %cst {dimension_numbers = #tpu.dot_dimension_numbers<[1], [0], [0], [1], [0, 0, 1, 1], [], []>} : vector<16x16xbf16>, vector<16x32xbf16>, vector<16x32xf32> -> vector<16x32xf32>
    %cst_3 = arith.constant 5.65685415 : f32
    %3 = vector.broadcast %cst_3 : f32 to vector<16x32xf32>
    %4 = arith.mulf %2, %3 : vector<16x32xf32>
    %c0_4 = arith.constant 0 : index
    %c0_5 = arith.constant 0 : index
    %5 = vector.load %arg1[%c0_4, %c0_5] : memref<16x32xf32, #tpu.memory_space<vmem>>, vector<16x32xf32>
    %6 = arith.addf %4, %5 : vector<16x32xf32>
    %c0_6 = arith.constant 0 : index
    %c0_7 = arith.constant 0 : index
    %7 = vector.load %arg2[%c0_6, %c0_7] : memref<24x32xbf16, #tpu.memory_space<vmem>>, vector<24x32xbf16>
    %c0_8 = arith.constant 0 : index
    %c0_9 = arith.constant 0 : index
    %8 = vector.load %arg3[%c0_8, %c0_9] : memref<16x3xf32, #tpu.memory_space<vmem>>, vector<16x3xf32>
    %c0_10 = arith.constant 0 : index
    %c0_11 = arith.constant 0 : index
    %9 = vector.load %arg4[%c0_10, %c0_11] : memref<3x16xf32, #tpu.memory_space<vmem>>, vector<3x16xf32>
    %c0_12 = arith.constant 0 : index
    %c0_13 = arith.constant 0 : index
    %10 = vector.load %arg5[%c0_12, %c0_13] : memref<2x24xf32, #tpu.memory_space<vmem>>, vector<2x24xf32>
    %11 = vector.extract_strided_slice %8 {offsets = [0, 0], sizes = [16, 1], strides = [1, 1]} : vector<16x3xf32> to vector<16x1xf32>
    %12 = vector.extract_strided_slice %8 {offsets = [0, 1], sizes = [16, 1], strides = [1, 1]} : vector<16x3xf32> to vector<16x1xf32>
    %13 = vector.extract_strided_slice %8 {offsets = [0, 2], sizes = [16, 1], strides = [1, 1]} : vector<16x3xf32> to vector<16x1xf32>
    %14 = vector.extract_strided_slice %9 {offsets = [0, 0], sizes = [1, 16], strides = [1, 1]} : vector<3x16xf32> to vector<1x16xf32>
    %15 = vector.broadcast %11 : vector<16x1xf32> to vector<16x16xf32>
    %16 = vector.broadcast %14 : vector<1x16xf32> to vector<16x16xf32>
    %17 = arith.cmpf oeq, %15, %16 : vector<16x16xf32>
    %18 = vector.extract_strided_slice %9 {offsets = [1, 0], sizes = [1, 16], strides = [1, 1]} : vector<3x16xf32> to vector<1x16xf32>
    %19 = vector.broadcast %12 : vector<16x1xf32> to vector<16x16xf32>
    %20 = vector.broadcast %18 : vector<1x16xf32> to vector<16x16xf32>
    %21 = arith.cmpf oge, %19, %20 : vector<16x16xf32>
    %22 = arith.andi %17, %21 : vector<16x16xi1>
    %23 = vector.extract_strided_slice %9 {offsets = [2, 0], sizes = [1, 16], strides = [1, 1]} : vector<3x16xf32> to vector<1x16xf32>
    %cst_14 = arith.constant 5.000000e-01 : f32
    %24 = vector.broadcast %cst_14 : f32 to vector<1x16xf32>
    %25 = arith.cmpf ogt, %23, %24 : vector<1x16xf32>
    %26 = vector.broadcast %25 : vector<1x16xi1> to vector<16x16xi1>
    %27 = arith.andi %22, %26 : vector<16x16xi1>
    %cst_15 = arith.constant 0.000000e+00 : f32
    %cst_16 = arith.constant -1.000000e+09 : f32
    %28 = vector.broadcast %cst_15 : f32 to vector<16x16xf32>
    %29 = vector.broadcast %cst_16 : f32 to vector<16x16xf32>
    %30 = arith.select %27, %28, %29 : vector<16x16xi1>, vector<16x16xf32>
    %31 = vector.extract_strided_slice %10 {offsets = [0, 0], sizes = [1, 24], strides = [1, 1]} : vector<2x24xf32> to vector<1x24xf32>
    %32 = vector.broadcast %11 : vector<16x1xf32> to vector<16x24xf32>
    %33 = vector.broadcast %31 : vector<1x24xf32> to vector<16x24xf32>
    %34 = arith.cmpf oeq, %32, %33 : vector<16x24xf32>
    %35 = vector.extract_strided_slice %10 {offsets = [1, 0], sizes = [1, 24], strides = [1, 1]} : vector<2x24xf32> to vector<1x24xf32>
    %cst_17 = arith.constant 5.000000e-01 : f32
    %36 = vector.broadcast %cst_17 : f32 to vector<1x24xf32>
    %37 = arith.cmpf ogt, %35, %36 : vector<1x24xf32>
    %38 = vector.broadcast %37 : vector<1x24xi1> to vector<16x24xi1>
    %39 = arith.andi %34, %38 : vector<16x24xi1>
    %cst_18 = arith.constant 0.000000e+00 : f32
    %cst_19 = arith.constant -1.000000e+09 : f32
    %40 = vector.broadcast %cst_18 : f32 to vector<16x24xf32>
    %41 = vector.broadcast %cst_19 : f32 to vector<16x24xf32>
    %42 = arith.select %39, %40, %41 : vector<16x24xi1>, vector<16x24xf32>
    %c0_20 = arith.constant 0 : index
    %c0_21 = arith.constant 0 : index
    %c0_22 = arith.constant 0 : index
    %43 = vector.load %arg21[%c0_20, %c0_21, %c0_22] : memref<2x3x32xf32, #tpu.memory_space<vmem>>, vector<1x3x32xf32>
    %44 = vector.shape_cast %43 : vector<1x3x32xf32> to vector<3x32xf32>
    %c0_23 = arith.constant 0 : index
    %c0_24 = arith.constant 0 : index
    %c0_25 = arith.constant 0 : index
    %45 = vector.load %arg22[%c0_23, %c0_24, %c0_25] : memref<2x3x32xf32, #tpu.memory_space<vmem>>, vector<1x3x32xf32>
    %46 = vector.shape_cast %45 : vector<1x3x32xf32> to vector<3x32xf32>
    %47 = vector.extract_strided_slice %44 {offsets = [0, 0], sizes = [1, 32], strides = [1, 1]} : vector<3x32xf32> to vector<1x32xf32>
    %48 = vector.shape_cast %47 : vector<1x32xf32> to vector<32xf32>
    %49 = vector.extract_strided_slice %46 {offsets = [0, 0], sizes = [1, 32], strides = [1, 1]} : vector<3x32xf32> to vector<1x32xf32>
    %50 = vector.shape_cast %49 : vector<1x32xf32> to vector<32xf32>
    %cst_26 = arith.constant dense<0.000000e+00> : vector<16xf32>
    %51 = vector.multi_reduction <add>, %6, %cst_26 [1] : vector<16x32xf32> to vector<16xf32>
    %52 = vector.shape_cast %51 : vector<16xf32> to vector<16x1xf32>
    %cst_27 = arith.constant 3.200000e+01 : f32
    %53 = vector.broadcast %cst_27 : f32 to vector<16x1xf32>
    %54 = arith.divf %52, %53 : vector<16x1xf32>
    %55 = vector.broadcast %54 : vector<16x1xf32> to vector<16x32xf32>
    %56 = arith.subf %6, %55 : vector<16x32xf32>
    %57 = arith.mulf %56, %56 : vector<16x32xf32>
    %cst_28 = arith.constant dense<0.000000e+00> : vector<16xf32>
    %58 = vector.multi_reduction <add>, %57, %cst_28 [1] : vector<16x32xf32> to vector<16xf32>
    %59 = vector.shape_cast %58 : vector<16xf32> to vector<16x1xf32>
    %cst_29 = arith.constant 3.200000e+01 : f32
    %60 = vector.broadcast %cst_29 : f32 to vector<16x1xf32>
    %61 = arith.divf %59, %60 : vector<16x1xf32>
    %62 = vector.broadcast %54 : vector<16x1xf32> to vector<16x32xf32>
    %63 = arith.subf %6, %62 : vector<16x32xf32>
    %64 = vector.shape_cast %48 : vector<32xf32> to vector<1x32xf32>
    %65 = vector.broadcast %64 : vector<1x32xf32> to vector<16x32xf32>
    %66 = arith.mulf %65, %63 : vector<16x32xf32>
    %cst_30 = arith.constant 9.99999997E-7 : f32
    %67 = vector.broadcast %cst_30 : f32 to vector<16x1xf32>
    %68 = arith.addf %61, %67 : vector<16x1xf32>
    %69 = math.rsqrt %68 : vector<16x1xf32>
    %70 = vector.broadcast %69 : vector<16x1xf32> to vector<16x32xf32>
    %71 = arith.mulf %66, %70 : vector<16x32xf32>
    %72 = vector.shape_cast %50 : vector<32xf32> to vector<1x32xf32>
    %73 = vector.broadcast %72 : vector<1x32xf32> to vector<16x32xf32>
    %74 = arith.addf %71, %73 : vector<16x32xf32>
    %75 = arith.truncf %74 : vector<16x32xf32> to vector<16x32xbf16>
    %c0_31 = arith.constant 0 : index
    %c0_32 = arith.constant 0 : index
    %c0_33 = arith.constant 0 : index
    %76 = vector.load %arg7[%c0_31, %c0_32, %c0_33] : memref<2x32x96xbf16, #tpu.memory_space<vmem>>, vector<1x32x96xbf16>
    %77 = vector.shape_cast %76 : vector<1x32x96xbf16> to vector<32x96xbf16>
    %cst_34 = arith.constant dense<0.000000e+00> : vector<16x96xf32>
    %78 = tpu.matmul %75, %77, %cst_34 {dimension_numbers = #tpu.dot_dimension_numbers<[1], [0], [0], [1], [0, 0, 1, 1], [], []>} : vector<16x32xbf16>, vector<32x96xbf16>, vector<16x96xf32> -> vector<16x96xf32>
    %c0_35 = arith.constant 0 : index
    %c0_36 = arith.constant 0 : index
    %79 = vector.load %arg8[%c0_35, %c0_36] : memref<2x96xf32, #tpu.memory_space<vmem>>, vector<1x96xf32>
    %80 = vector.shape_cast %79 : vector<1x96xf32> to vector<96xf32>
    %81 = vector.shape_cast %80 : vector<96xf32> to vector<1x96xf32>
    %82 = vector.broadcast %81 : vector<1x96xf32> to vector<16x96xf32>
    %83 = arith.addf %78, %82 : vector<16x96xf32>
    %84 = vector.extract_strided_slice %83 {offsets = [0, 0], sizes = [16, 32], strides = [1, 1]} : vector<16x96xf32> to vector<16x32xf32>
    %85 = vector.extract_strided_slice %83 {offsets = [0, 32], sizes = [16, 32], strides = [1, 1]} : vector<16x96xf32> to vector<16x32xf32>
    %86 = vector.extract_strided_slice %83 {offsets = [0, 64], sizes = [16, 32], strides = [1, 1]} : vector<16x96xf32> to vector<16x32xf32>
    %87 = vector.extract_strided_slice %84 {offsets = [0, 0], sizes = [16, 8], strides = [1, 1]} : vector<16x32xf32> to vector<16x8xf32>
    %88 = vector.extract_strided_slice %84 {offsets = [0, 8], sizes = [16, 8], strides = [1, 1]} : vector<16x32xf32> to vector<16x8xf32>
    %89 = vector.extract_strided_slice %84 {offsets = [0, 16], sizes = [16, 8], strides = [1, 1]} : vector<16x32xf32> to vector<16x8xf32>
    %90 = vector.extract_strided_slice %84 {offsets = [0, 24], sizes = [16, 8], strides = [1, 1]} : vector<16x32xf32> to vector<16x8xf32>
    %91 = vector.shape_cast %87 : vector<16x8xf32> to vector<1x16x8xf32>
    %92 = vector.shape_cast %88 : vector<16x8xf32> to vector<1x16x8xf32>
    %93 = vector.shape_cast %89 : vector<16x8xf32> to vector<1x16x8xf32>
    %94 = vector.shape_cast %90 : vector<16x8xf32> to vector<1x16x8xf32>
    %95 = tpu.concatenate %91, %92, %93, %94 in 0 : vector<1x16x8xf32>, vector<1x16x8xf32>, vector<1x16x8xf32>, vector<1x16x8xf32> -> vector<4x16x8xf32>
    %96 = arith.truncf %95 : vector<4x16x8xf32> to vector<4x16x8xbf16>
    %97 = vector.extract_strided_slice %85 {offsets = [0, 0], sizes = [16, 8], strides = [1, 1]} : vector<16x32xf32> to vector<16x8xf32>
    %98 = vector.extract_strided_slice %85 {offsets = [0, 8], sizes = [16, 8], strides = [1, 1]} : vector<16x32xf32> to vector<16x8xf32>
    %99 = vector.extract_strided_slice %85 {offsets = [0, 16], sizes = [16, 8], strides = [1, 1]} : vector<16x32xf32> to vector<16x8xf32>
    %100 = vector.extract_strided_slice %85 {offsets = [0, 24], sizes = [16, 8], strides = [1, 1]} : vector<16x32xf32> to vector<16x8xf32>
    %101 = vector.shape_cast %97 : vector<16x8xf32> to vector<1x16x8xf32>
    %102 = vector.shape_cast %98 : vector<16x8xf32> to vector<1x16x8xf32>
    %103 = vector.shape_cast %99 : vector<16x8xf32> to vector<1x16x8xf32>
    %104 = vector.shape_cast %100 : vector<16x8xf32> to vector<1x16x8xf32>
    %105 = tpu.concatenate %101, %102, %103, %104 in 0 : vector<1x16x8xf32>, vector<1x16x8xf32>, vector<1x16x8xf32>, vector<1x16x8xf32> -> vector<4x16x8xf32>
    %106 = arith.truncf %105 : vector<4x16x8xf32> to vector<4x16x8xbf16>
    %107 = vector.extract_strided_slice %86 {offsets = [0, 0], sizes = [16, 8], strides = [1, 1]} : vector<16x32xf32> to vector<16x8xf32>
    %108 = vector.extract_strided_slice %86 {offsets = [0, 8], sizes = [16, 8], strides = [1, 1]} : vector<16x32xf32> to vector<16x8xf32>
    %109 = vector.extract_strided_slice %86 {offsets = [0, 16], sizes = [16, 8], strides = [1, 1]} : vector<16x32xf32> to vector<16x8xf32>
    %110 = vector.extract_strided_slice %86 {offsets = [0, 24], sizes = [16, 8], strides = [1, 1]} : vector<16x32xf32> to vector<16x8xf32>
    %111 = vector.shape_cast %107 : vector<16x8xf32> to vector<1x16x8xf32>
    %112 = vector.shape_cast %108 : vector<16x8xf32> to vector<1x16x8xf32>
    %113 = vector.shape_cast %109 : vector<16x8xf32> to vector<1x16x8xf32>
    %114 = vector.shape_cast %110 : vector<16x8xf32> to vector<1x16x8xf32>
    %115 = tpu.concatenate %111, %112, %113, %114 in 0 : vector<1x16x8xf32>, vector<1x16x8xf32>, vector<1x16x8xf32>, vector<1x16x8xf32> -> vector<4x16x8xf32>
    %116 = arith.truncf %115 : vector<4x16x8xf32> to vector<4x16x8xbf16>
    "tpu.trace_start"() <{level = 10 : i32, message = "hqf,hkf->hqk"}> : () -> ()
    %cst_37 = arith.constant dense<0.000000e+00> : vector<4x16x16xf32>
    %117 = tpu.matmul %96, %106, %cst_37 {dimension_numbers = #tpu.dot_dimension_numbers<[2], [2], [1], [1], [0, 0, 0, 1, 1, 1], [0], [0]>} : vector<4x16x8xbf16>, vector<4x16x8xbf16>, vector<4x16x16xf32> -> vector<4x16x16xf32>
    "tpu.trace_stop"() : () -> ()
    %cst_38 = arith.constant 0.353553385 : f32
    %118 = vector.broadcast %cst_38 : f32 to vector<4x16x16xf32>
    %119 = arith.mulf %117, %118 : vector<4x16x16xf32>
    %120 = vector.shape_cast %30 : vector<16x16xf32> to vector<1x16x16xf32>
    %121 = vector.broadcast %120 : vector<1x16x16xf32> to vector<4x16x16xf32>
    %122 = arith.addf %119, %121 : vector<4x16x16xf32>
    %cst_39 = arith.constant dense<0xFF800000> : vector<4x16xf32>
    %123 = vector.multi_reduction <maximumf>, %122, %cst_39 [2] : vector<4x16x16xf32> to vector<4x16xf32>
    %124 = vector.shape_cast %123 : vector<4x16xf32> to vector<4x16x1xf32>
    %125 = vector.broadcast %124 : vector<4x16x1xf32> to vector<4x16x16xf32>
    %126 = arith.subf %122, %125 : vector<4x16x16xf32>
    %127 = math.exp %126 : vector<4x16x16xf32>
    %cst_40 = arith.constant dense<0.000000e+00> : vector<4x16xf32>
    %128 = vector.multi_reduction <add>, %127, %cst_40 [2] : vector<4x16x16xf32> to vector<4x16xf32>
    %129 = vector.shape_cast %128 : vector<4x16xf32> to vector<4x16x1xf32>
    %130 = tpu.reciprocal %129 {approx = true} : vector<4x16x1xf32> -> vector<4x16x1xf32>
    %131 = vector.broadcast %130 : vector<4x16x1xf32> to vector<4x16x16xf32>
    %132 = arith.mulf %127, %131 : vector<4x16x16xf32>
    %133 = arith.truncf %132 : vector<4x16x16xf32> to vector<4x16x16xbf16>
    "tpu.trace_start"() <{level = 10 : i32, message = "hqk,hkf->hqf"}> : () -> ()
    %cst_41 = arith.constant dense<0.000000e+00> : vector<4x16x8xf32>
    %134 = tpu.matmul %133, %116, %cst_41 {dimension_numbers = #tpu.dot_dimension_numbers<[2], [1], [1], [2], [0, 0, 0, 1, 1, 2], [0], [0]>} : vector<4x16x16xbf16>, vector<4x16x8xbf16>, vector<4x16x8xf32> -> vector<4x16x8xf32>
    "tpu.trace_stop"() : () -> ()
    %135 = vector.extract_strided_slice %134 {offsets = [0, 0, 0], sizes = [1, 16, 8], strides = [1, 1, 1]} : vector<4x16x8xf32> to vector<1x16x8xf32>
    %136 = vector.shape_cast %135 : vector<1x16x8xf32> to vector<16x8xf32>
    %137 = vector.extract_strided_slice %134 {offsets = [1, 0, 0], sizes = [1, 16, 8], strides = [1, 1, 1]} : vector<4x16x8xf32> to vector<1x16x8xf32>
    %138 = vector.shape_cast %137 : vector<1x16x8xf32> to vector<16x8xf32>
    %139 = vector.extract_strided_slice %134 {offsets = [2, 0, 0], sizes = [1, 16, 8], strides = [1, 1, 1]} : vector<4x16x8xf32> to vector<1x16x8xf32>
    %140 = vector.shape_cast %139 : vector<1x16x8xf32> to vector<16x8xf32>
    %141 = vector.extract_strided_slice %134 {offsets = [3, 0, 0], sizes = [1, 16, 8], strides = [1, 1, 1]} : vector<4x16x8xf32> to vector<1x16x8xf32>
    %142 = vector.shape_cast %141 : vector<1x16x8xf32> to vector<16x8xf32>
    %143 = tpu.concatenate %136, %138, %140, %142 in 1 : vector<16x8xf32>, vector<16x8xf32>, vector<16x8xf32>, vector<16x8xf32> -> vector<16x32xf32>
    %144 = arith.truncf %143 : vector<16x32xf32> to vector<16x32xbf16>
    %c0_42 = arith.constant 0 : index
    %c0_43 = arith.constant 0 : index
    %c0_44 = arith.constant 0 : index
    %145 = vector.load %arg13[%c0_42, %c0_43, %c0_44] : memref<2x32x32xbf16, #tpu.memory_space<vmem>>, vector<1x32x32xbf16>
    %146 = vector.shape_cast %145 : vector<1x32x32xbf16> to vector<32x32xbf16>
    %cst_45 = arith.constant dense<0.000000e+00> : vector<16x32xf32>
    %147 = tpu.matmul %144, %146, %cst_45 {dimension_numbers = #tpu.dot_dimension_numbers<[1], [0], [0], [1], [0, 0, 1, 1], [], []>} : vector<16x32xbf16>, vector<32x32xbf16>, vector<16x32xf32> -> vector<16x32xf32>
    %148 = arith.addf %6, %147 : vector<16x32xf32>
    %c0_46 = arith.constant 0 : index
    %c0_47 = arith.constant 0 : index
    %149 = vector.load %arg14[%c0_46, %c0_47] : memref<2x32xf32, #tpu.memory_space<vmem>>, vector<1x32xf32>
    %150 = vector.shape_cast %149 : vector<1x32xf32> to vector<32xf32>
    %151 = vector.shape_cast %150 : vector<32xf32> to vector<1x32xf32>
    %152 = vector.broadcast %151 : vector<1x32xf32> to vector<16x32xf32>
    %153 = arith.addf %148, %152 : vector<16x32xf32>
    %154 = vector.extract_strided_slice %44 {offsets = [1, 0], sizes = [1, 32], strides = [1, 1]} : vector<3x32xf32> to vector<1x32xf32>
    %155 = vector.shape_cast %154 : vector<1x32xf32> to vector<32xf32>
    %156 = vector.extract_strided_slice %46 {offsets = [1, 0], sizes = [1, 32], strides = [1, 1]} : vector<3x32xf32> to vector<1x32xf32>
    %157 = vector.shape_cast %156 : vector<1x32xf32> to vector<32xf32>
    %cst_48 = arith.constant dense<0.000000e+00> : vector<16xf32>
    %158 = vector.multi_reduction <add>, %153, %cst_48 [1] : vector<16x32xf32> to vector<16xf32>
    %159 = vector.shape_cast %158 : vector<16xf32> to vector<16x1xf32>
    %cst_49 = arith.constant 3.200000e+01 : f32
    %160 = vector.broadcast %cst_49 : f32 to vector<16x1xf32>
    %161 = arith.divf %159, %160 : vector<16x1xf32>
    %162 = vector.broadcast %161 : vector<16x1xf32> to vector<16x32xf32>
    %163 = arith.subf %153, %162 : vector<16x32xf32>
    %164 = arith.mulf %163, %163 : vector<16x32xf32>
    %cst_50 = arith.constant dense<0.000000e+00> : vector<16xf32>
    %165 = vector.multi_reduction <add>, %164, %cst_50 [1] : vector<16x32xf32> to vector<16xf32>
    %166 = vector.shape_cast %165 : vector<16xf32> to vector<16x1xf32>
    %cst_51 = arith.constant 3.200000e+01 : f32
    %167 = vector.broadcast %cst_51 : f32 to vector<16x1xf32>
    %168 = arith.divf %166, %167 : vector<16x1xf32>
    %169 = vector.broadcast %161 : vector<16x1xf32> to vector<16x32xf32>
    %170 = arith.subf %153, %169 : vector<16x32xf32>
    %171 = vector.shape_cast %155 : vector<32xf32> to vector<1x32xf32>
    %172 = vector.broadcast %171 : vector<1x32xf32> to vector<16x32xf32>
    %173 = arith.mulf %172, %170 : vector<16x32xf32>
    %cst_52 = arith.constant 9.99999997E-7 : f32
    %174 = vector.broadcast %cst_52 : f32 to vector<16x1xf32>
    %175 = arith.addf %168, %174 : vector<16x1xf32>
    %176 = math.rsqrt %175 : vector<16x1xf32>
    %177 = vector.broadcast %176 : vector<16x1xf32> to vector<16x32xf32>
    %178 = arith.mulf %173, %177 : vector<16x32xf32>
    %179 = vector.shape_cast %157 : vector<32xf32> to vector<1x32xf32>
    %180 = vector.broadcast %179 : vector<1x32xf32> to vector<16x32xf32>
    %181 = arith.addf %178, %180 : vector<16x32xf32>
    %182 = arith.truncf %181 : vector<16x32xf32> to vector<16x32xbf16>
    %c0_53 = arith.constant 0 : index
    %c0_54 = arith.constant 0 : index
    %c0_55 = arith.constant 0 : index
    %183 = vector.load %arg9[%c0_53, %c0_54, %c0_55] : memref<2x32x32xbf16, #tpu.memory_space<vmem>>, vector<1x32x32xbf16>
    %184 = vector.shape_cast %183 : vector<1x32x32xbf16> to vector<32x32xbf16>
    %cst_56 = arith.constant dense<0.000000e+00> : vector<16x32xf32>
    %185 = tpu.matmul %182, %184, %cst_56 {dimension_numbers = #tpu.dot_dimension_numbers<[1], [0], [0], [1], [0, 0, 1, 1], [], []>} : vector<16x32xbf16>, vector<32x32xbf16>, vector<16x32xf32> -> vector<16x32xf32>
    %c0_57 = arith.constant 0 : index
    %c0_58 = arith.constant 0 : index
    %186 = vector.load %arg10[%c0_57, %c0_58] : memref<2x32xf32, #tpu.memory_space<vmem>>, vector<1x32xf32>
    %187 = vector.shape_cast %186 : vector<1x32xf32> to vector<32xf32>
    %188 = vector.shape_cast %187 : vector<32xf32> to vector<1x32xf32>
    %189 = vector.broadcast %188 : vector<1x32xf32> to vector<16x32xf32>
    %190 = arith.addf %185, %189 : vector<16x32xf32>
    %c0_59 = arith.constant 0 : index
    %c0_60 = arith.constant 0 : index
    %c0_61 = arith.constant 0 : index
    %191 = vector.load %arg11[%c0_59, %c0_60, %c0_61] : memref<2x32x64xbf16, #tpu.memory_space<vmem>>, vector<1x32x64xbf16>
    %192 = vector.shape_cast %191 : vector<1x32x64xbf16> to vector<32x64xbf16>
    %cst_62 = arith.constant dense<0.000000e+00> : vector<24x64xf32>
    %193 = tpu.matmul %7, %192, %cst_62 {dimension_numbers = #tpu.dot_dimension_numbers<[1], [0], [0], [1], [0, 0, 1, 1], [], []>} : vector<24x32xbf16>, vector<32x64xbf16>, vector<24x64xf32> -> vector<24x64xf32>
    %c0_63 = arith.constant 0 : index
    %c0_64 = arith.constant 0 : index
    %194 = vector.load %arg12[%c0_63, %c0_64] : memref<2x64xf32, #tpu.memory_space<vmem>>, vector<1x64xf32>
    %195 = vector.shape_cast %194 : vector<1x64xf32> to vector<64xf32>
    %196 = vector.shape_cast %195 : vector<64xf32> to vector<1x64xf32>
    %197 = vector.broadcast %196 : vector<1x64xf32> to vector<24x64xf32>
    %198 = arith.addf %193, %197 : vector<24x64xf32>
    %199 = vector.extract_strided_slice %198 {offsets = [0, 0], sizes = [24, 32], strides = [1, 1]} : vector<24x64xf32> to vector<24x32xf32>
    %200 = vector.extract_strided_slice %198 {offsets = [0, 32], sizes = [24, 32], strides = [1, 1]} : vector<24x64xf32> to vector<24x32xf32>
    %201 = vector.extract_strided_slice %190 {offsets = [0, 0], sizes = [16, 8], strides = [1, 1]} : vector<16x32xf32> to vector<16x8xf32>
    %202 = vector.extract_strided_slice %190 {offsets = [0, 8], sizes = [16, 8], strides = [1, 1]} : vector<16x32xf32> to vector<16x8xf32>
    %203 = vector.extract_strided_slice %190 {offsets = [0, 16], sizes = [16, 8], strides = [1, 1]} : vector<16x32xf32> to vector<16x8xf32>
    %204 = vector.extract_strided_slice %190 {offsets = [0, 24], sizes = [16, 8], strides = [1, 1]} : vector<16x32xf32> to vector<16x8xf32>
    %205 = vector.shape_cast %201 : vector<16x8xf32> to vector<1x16x8xf32>
    %206 = vector.shape_cast %202 : vector<16x8xf32> to vector<1x16x8xf32>
    %207 = vector.shape_cast %203 : vector<16x8xf32> to vector<1x16x8xf32>
    %208 = vector.shape_cast %204 : vector<16x8xf32> to vector<1x16x8xf32>
    %209 = tpu.concatenate %205, %206, %207, %208 in 0 : vector<1x16x8xf32>, vector<1x16x8xf32>, vector<1x16x8xf32>, vector<1x16x8xf32> -> vector<4x16x8xf32>
    %210 = arith.truncf %209 : vector<4x16x8xf32> to vector<4x16x8xbf16>
    %211 = vector.extract_strided_slice %199 {offsets = [0, 0], sizes = [24, 8], strides = [1, 1]} : vector<24x32xf32> to vector<24x8xf32>
    %212 = vector.extract_strided_slice %199 {offsets = [0, 8], sizes = [24, 8], strides = [1, 1]} : vector<24x32xf32> to vector<24x8xf32>
    %213 = vector.extract_strided_slice %199 {offsets = [0, 16], sizes = [24, 8], strides = [1, 1]} : vector<24x32xf32> to vector<24x8xf32>
    %214 = vector.extract_strided_slice %199 {offsets = [0, 24], sizes = [24, 8], strides = [1, 1]} : vector<24x32xf32> to vector<24x8xf32>
    %215 = vector.shape_cast %211 : vector<24x8xf32> to vector<1x24x8xf32>
    %216 = vector.shape_cast %212 : vector<24x8xf32> to vector<1x24x8xf32>
    %217 = vector.shape_cast %213 : vector<24x8xf32> to vector<1x24x8xf32>
    %218 = vector.shape_cast %214 : vector<24x8xf32> to vector<1x24x8xf32>
    %219 = tpu.concatenate %215, %216, %217, %218 in 0 : vector<1x24x8xf32>, vector<1x24x8xf32>, vector<1x24x8xf32>, vector<1x24x8xf32> -> vector<4x24x8xf32>
    %220 = arith.truncf %219 : vector<4x24x8xf32> to vector<4x24x8xbf16>
    %221 = vector.extract_strided_slice %200 {offsets = [0, 0], sizes = [24, 8], strides = [1, 1]} : vector<24x32xf32> to vector<24x8xf32>
    %222 = vector.extract_strided_slice %200 {offsets = [0, 8], sizes = [24, 8], strides = [1, 1]} : vector<24x32xf32> to vector<24x8xf32>
    %223 = vector.extract_strided_slice %200 {offsets = [0, 16], sizes = [24, 8], strides = [1, 1]} : vector<24x32xf32> to vector<24x8xf32>
    %224 = vector.extract_strided_slice %200 {offsets = [0, 24], sizes = [24, 8], strides = [1, 1]} : vector<24x32xf32> to vector<24x8xf32>
    %225 = vector.shape_cast %221 : vector<24x8xf32> to vector<1x24x8xf32>
    %226 = vector.shape_cast %222 : vector<24x8xf32> to vector<1x24x8xf32>
    %227 = vector.shape_cast %223 : vector<24x8xf32> to vector<1x24x8xf32>
    %228 = vector.shape_cast %224 : vector<24x8xf32> to vector<1x24x8xf32>
    %229 = tpu.concatenate %225, %226, %227, %228 in 0 : vector<1x24x8xf32>, vector<1x24x8xf32>, vector<1x24x8xf32>, vector<1x24x8xf32> -> vector<4x24x8xf32>
    %230 = arith.truncf %229 : vector<4x24x8xf32> to vector<4x24x8xbf16>
    "tpu.trace_start"() <{level = 10 : i32, message = "hqf,hkf->hqk"}> : () -> ()
    %cst_65 = arith.constant dense<0.000000e+00> : vector<4x16x24xf32>
    %231 = tpu.matmul %210, %220, %cst_65 {dimension_numbers = #tpu.dot_dimension_numbers<[2], [2], [1], [1], [0, 0, 0, 1, 1, 1], [0], [0]>} : vector<4x16x8xbf16>, vector<4x24x8xbf16>, vector<4x16x24xf32> -> vector<4x16x24xf32>
    "tpu.trace_stop"() : () -> ()
    %cst_66 = arith.constant 0.353553385 : f32
    %232 = vector.broadcast %cst_66 : f32 to vector<4x16x24xf32>
    %233 = arith.mulf %231, %232 : vector<4x16x24xf32>
    %234 = vector.shape_cast %42 : vector<16x24xf32> to vector<1x16x24xf32>
    %235 = vector.broadcast %234 : vector<1x16x24xf32> to vector<4x16x24xf32>
    %236 = arith.addf %233, %235 : vector<4x16x24xf32>
    %cst_67 = arith.constant dense<0xFF800000> : vector<4x16xf32>
    %237 = vector.multi_reduction <maximumf>, %236, %cst_67 [2] : vector<4x16x24xf32> to vector<4x16xf32>
    %238 = vector.shape_cast %237 : vector<4x16xf32> to vector<4x16x1xf32>
    %239 = vector.broadcast %238 : vector<4x16x1xf32> to vector<4x16x24xf32>
    %240 = arith.subf %236, %239 : vector<4x16x24xf32>
    %241 = math.exp %240 : vector<4x16x24xf32>
    %cst_68 = arith.constant dense<0.000000e+00> : vector<4x16xf32>
    %242 = vector.multi_reduction <add>, %241, %cst_68 [2] : vector<4x16x24xf32> to vector<4x16xf32>
    %243 = vector.shape_cast %242 : vector<4x16xf32> to vector<4x16x1xf32>
    %244 = tpu.reciprocal %243 {approx = true} : vector<4x16x1xf32> -> vector<4x16x1xf32>
    %245 = vector.broadcast %244 : vector<4x16x1xf32> to vector<4x16x24xf32>
    %246 = arith.mulf %241, %245 : vector<4x16x24xf32>
    %247 = arith.truncf %246 : vector<4x16x24xf32> to vector<4x16x24xbf16>
    "tpu.trace_start"() <{level = 10 : i32, message = "hqk,hkf->hqf"}> : () -> ()
    %cst_69 = arith.constant dense<0.000000e+00> : vector<4x16x8xf32>
    %248 = tpu.matmul %247, %230, %cst_69 {dimension_numbers = #tpu.dot_dimension_numbers<[2], [1], [1], [2], [0, 0, 0, 1, 1, 2], [0], [0]>} : vector<4x16x24xbf16>, vector<4x24x8xbf16>, vector<4x16x8xf32> -> vector<4x16x8xf32>
    "tpu.trace_stop"() : () -> ()
    %249 = vector.extract_strided_slice %248 {offsets = [0, 0, 0], sizes = [1, 16, 8], strides = [1, 1, 1]} : vector<4x16x8xf32> to vector<1x16x8xf32>
    %250 = vector.shape_cast %249 : vector<1x16x8xf32> to vector<16x8xf32>
    %251 = vector.extract_strided_slice %248 {offsets = [1, 0, 0], sizes = [1, 16, 8], strides = [1, 1, 1]} : vector<4x16x8xf32> to vector<1x16x8xf32>
    %252 = vector.shape_cast %251 : vector<1x16x8xf32> to vector<16x8xf32>
    %253 = vector.extract_strided_slice %248 {offsets = [2, 0, 0], sizes = [1, 16, 8], strides = [1, 1, 1]} : vector<4x16x8xf32> to vector<1x16x8xf32>
    %254 = vector.shape_cast %253 : vector<1x16x8xf32> to vector<16x8xf32>
    %255 = vector.extract_strided_slice %248 {offsets = [3, 0, 0], sizes = [1, 16, 8], strides = [1, 1, 1]} : vector<4x16x8xf32> to vector<1x16x8xf32>
    %256 = vector.shape_cast %255 : vector<1x16x8xf32> to vector<16x8xf32>
    %257 = tpu.concatenate %250, %252, %254, %256 in 1 : vector<16x8xf32>, vector<16x8xf32>, vector<16x8xf32>, vector<16x8xf32> -> vector<16x32xf32>
    %258 = arith.truncf %257 : vector<16x32xf32> to vector<16x32xbf16>
    %c0_70 = arith.constant 0 : index
    %c0_71 = arith.constant 0 : index
    %c0_72 = arith.constant 0 : index
    %259 = vector.load %arg15[%c0_70, %c0_71, %c0_72] : memref<2x32x32xbf16, #tpu.memory_space<vmem>>, vector<1x32x32xbf16>
    %260 = vector.shape_cast %259 : vector<1x32x32xbf16> to vector<32x32xbf16>
    %cst_73 = arith.constant dense<0.000000e+00> : vector<16x32xf32>
    %261 = tpu.matmul %258, %260, %cst_73 {dimension_numbers = #tpu.dot_dimension_numbers<[1], [0], [0], [1], [0, 0, 1, 1], [], []>} : vector<16x32xbf16>, vector<32x32xbf16>, vector<16x32xf32> -> vector<16x32xf32>
    %262 = arith.addf %153, %261 : vector<16x32xf32>
    %c0_74 = arith.constant 0 : index
    %c0_75 = arith.constant 0 : index
    %263 = vector.load %arg16[%c0_74, %c0_75] : memref<2x32xf32, #tpu.memory_space<vmem>>, vector<1x32xf32>
    %264 = vector.shape_cast %263 : vector<1x32xf32> to vector<32xf32>
    %265 = vector.shape_cast %264 : vector<32xf32> to vector<1x32xf32>
    %266 = vector.broadcast %265 : vector<1x32xf32> to vector<16x32xf32>
    %267 = arith.addf %262, %266 : vector<16x32xf32>
    %268 = vector.extract_strided_slice %44 {offsets = [2, 0], sizes = [1, 32], strides = [1, 1]} : vector<3x32xf32> to vector<1x32xf32>
    %269 = vector.shape_cast %268 : vector<1x32xf32> to vector<32xf32>
    %270 = vector.extract_strided_slice %46 {offsets = [2, 0], sizes = [1, 32], strides = [1, 1]} : vector<3x32xf32> to vector<1x32xf32>
    %271 = vector.shape_cast %270 : vector<1x32xf32> to vector<32xf32>
    %cst_76 = arith.constant dense<0.000000e+00> : vector<16xf32>
    %272 = vector.multi_reduction <add>, %267, %cst_76 [1] : vector<16x32xf32> to vector<16xf32>
    %273 = vector.shape_cast %272 : vector<16xf32> to vector<16x1xf32>
    %cst_77 = arith.constant 3.200000e+01 : f32
    %274 = vector.broadcast %cst_77 : f32 to vector<16x1xf32>
    %275 = arith.divf %273, %274 : vector<16x1xf32>
    %276 = vector.broadcast %275 : vector<16x1xf32> to vector<16x32xf32>
    %277 = arith.subf %267, %276 : vector<16x32xf32>
    %278 = arith.mulf %277, %277 : vector<16x32xf32>
    %cst_78 = arith.constant dense<0.000000e+00> : vector<16xf32>
    %279 = vector.multi_reduction <add>, %278, %cst_78 [1] : vector<16x32xf32> to vector<16xf32>
    %280 = vector.shape_cast %279 : vector<16xf32> to vector<16x1xf32>
    %cst_79 = arith.constant 3.200000e+01 : f32
    %281 = vector.broadcast %cst_79 : f32 to vector<16x1xf32>
    %282 = arith.divf %280, %281 : vector<16x1xf32>
    %283 = vector.broadcast %275 : vector<16x1xf32> to vector<16x32xf32>
    %284 = arith.subf %267, %283 : vector<16x32xf32>
    %285 = vector.shape_cast %269 : vector<32xf32> to vector<1x32xf32>
    %286 = vector.broadcast %285 : vector<1x32xf32> to vector<16x32xf32>
    %287 = arith.mulf %286, %284 : vector<16x32xf32>
    %cst_80 = arith.constant 9.99999997E-7 : f32
    %288 = vector.broadcast %cst_80 : f32 to vector<16x1xf32>
    %289 = arith.addf %282, %288 : vector<16x1xf32>
    %290 = math.rsqrt %289 : vector<16x1xf32>
    %291 = vector.broadcast %290 : vector<16x1xf32> to vector<16x32xf32>
    %292 = arith.mulf %287, %291 : vector<16x32xf32>
    %293 = vector.shape_cast %271 : vector<32xf32> to vector<1x32xf32>
    %294 = vector.broadcast %293 : vector<1x32xf32> to vector<16x32xf32>
    %295 = arith.addf %292, %294 : vector<16x32xf32>
    %296 = arith.truncf %295 : vector<16x32xf32> to vector<16x32xbf16>
    %c0_81 = arith.constant 0 : index
    %c0_82 = arith.constant 0 : index
    %c0_83 = arith.constant 0 : index
    %297 = vector.load %arg17[%c0_81, %c0_82, %c0_83] : memref<2x32x64xbf16, #tpu.memory_space<vmem>>, vector<1x32x64xbf16>
    %298 = vector.shape_cast %297 : vector<1x32x64xbf16> to vector<32x64xbf16>
    %cst_84 = arith.constant dense<0.000000e+00> : vector<16x64xf32>
    %299 = tpu.matmul %296, %298, %cst_84 {dimension_numbers = #tpu.dot_dimension_numbers<[1], [0], [0], [1], [0, 0, 1, 1], [], []>} : vector<16x32xbf16>, vector<32x64xbf16>, vector<16x64xf32> -> vector<16x64xf32>
    %c0_85 = arith.constant 0 : index
    %c0_86 = arith.constant 0 : index
    %300 = vector.load %arg18[%c0_85, %c0_86] : memref<2x64xf32, #tpu.memory_space<vmem>>, vector<1x64xf32>
    %301 = vector.shape_cast %300 : vector<1x64xf32> to vector<64xf32>
    %302 = vector.shape_cast %301 : vector<64xf32> to vector<1x64xf32>
    %303 = vector.broadcast %302 : vector<1x64xf32> to vector<16x64xf32>
    %304 = arith.addf %299, %303 : vector<16x64xf32>
    %cst_87 = arith.constant 0.000000e+00 : f32
    %305 = vector.broadcast %cst_87 : f32 to vector<16x64xf32>
    %306 = arith.maximumf %304, %305 : vector<16x64xf32>
    %307 = arith.truncf %306 : vector<16x64xf32> to vector<16x64xbf16>
    %c0_88 = arith.constant 0 : index
    %c0_89 = arith.constant 0 : index
    %c0_90 = arith.constant 0 : index
    %308 = vector.load %arg19[%c0_88, %c0_89, %c0_90] : memref<2x64x32xbf16, #tpu.memory_space<vmem>>, vector<1x64x32xbf16>
    %309 = vector.shape_cast %308 : vector<1x64x32xbf16> to vector<64x32xbf16>
    %cst_91 = arith.constant dense<0.000000e+00> : vector<16x32xf32>
    %310 = tpu.matmul %307, %309, %cst_91 {dimension_numbers = #tpu.dot_dimension_numbers<[1], [0], [0], [1], [0, 0, 1, 1], [], []>} : vector<16x64xbf16>, vector<64x32xbf16>, vector<16x32xf32> -> vector<16x32xf32>
    %311 = arith.addf %267, %310 : vector<16x32xf32>
    %c0_92 = arith.constant 0 : index
    %c0_93 = arith.constant 0 : index
    %312 = vector.load %arg20[%c0_92, %c0_93] : memref<2x32xf32, #tpu.memory_space<vmem>>, vector<1x32xf32>
    %313 = vector.shape_cast %312 : vector<1x32xf32> to vector<32xf32>
    %314 = vector.shape_cast %313 : vector<32xf32> to vector<1x32xf32>
    %315 = vector.broadcast %314 : vector<1x32xf32> to vector<16x32xf32>
    %316 = arith.addf %311, %315 : vector<16x32xf32>
    %c1 = arith.constant 1 : index
    %c0_94 = arith.constant 0 : index
    %c0_95 = arith.constant 0 : index
    %317 = vector.load %arg21[%c1, %c0_94, %c0_95] : memref<2x3x32xf32, #tpu.memory_space<vmem>>, vector<1x3x32xf32>
    %318 = vector.shape_cast %317 : vector<1x3x32xf32> to vector<3x32xf32>
    %c1_96 = arith.constant 1 : index
    %c0_97 = arith.constant 0 : index
    %c0_98 = arith.constant 0 : index
    %319 = vector.load %arg22[%c1_96, %c0_97, %c0_98] : memref<2x3x32xf32, #tpu.memory_space<vmem>>, vector<1x3x32xf32>
    %320 = vector.shape_cast %319 : vector<1x3x32xf32> to vector<3x32xf32>
    %321 = vector.extract_strided_slice %318 {offsets = [0, 0], sizes = [1, 32], strides = [1, 1]} : vector<3x32xf32> to vector<1x32xf32>
    %322 = vector.shape_cast %321 : vector<1x32xf32> to vector<32xf32>
    %323 = vector.extract_strided_slice %320 {offsets = [0, 0], sizes = [1, 32], strides = [1, 1]} : vector<3x32xf32> to vector<1x32xf32>
    %324 = vector.shape_cast %323 : vector<1x32xf32> to vector<32xf32>
    %cst_99 = arith.constant dense<0.000000e+00> : vector<16xf32>
    %325 = vector.multi_reduction <add>, %316, %cst_99 [1] : vector<16x32xf32> to vector<16xf32>
    %326 = vector.shape_cast %325 : vector<16xf32> to vector<16x1xf32>
    %cst_100 = arith.constant 3.200000e+01 : f32
    %327 = vector.broadcast %cst_100 : f32 to vector<16x1xf32>
    %328 = arith.divf %326, %327 : vector<16x1xf32>
    %329 = vector.broadcast %328 : vector<16x1xf32> to vector<16x32xf32>
    %330 = arith.subf %316, %329 : vector<16x32xf32>
    %331 = arith.mulf %330, %330 : vector<16x32xf32>
    %cst_101 = arith.constant dense<0.000000e+00> : vector<16xf32>
    %332 = vector.multi_reduction <add>, %331, %cst_101 [1] : vector<16x32xf32> to vector<16xf32>
    %333 = vector.shape_cast %332 : vector<16xf32> to vector<16x1xf32>
    %cst_102 = arith.constant 3.200000e+01 : f32
    %334 = vector.broadcast %cst_102 : f32 to vector<16x1xf32>
    %335 = arith.divf %333, %334 : vector<16x1xf32>
    %336 = vector.broadcast %328 : vector<16x1xf32> to vector<16x32xf32>
    %337 = arith.subf %316, %336 : vector<16x32xf32>
    %338 = vector.shape_cast %322 : vector<32xf32> to vector<1x32xf32>
    %339 = vector.broadcast %338 : vector<1x32xf32> to vector<16x32xf32>
    %340 = arith.mulf %339, %337 : vector<16x32xf32>
    %cst_103 = arith.constant 9.99999997E-7 : f32
    %341 = vector.broadcast %cst_103 : f32 to vector<16x1xf32>
    %342 = arith.addf %335, %341 : vector<16x1xf32>
    %343 = math.rsqrt %342 : vector<16x1xf32>
    %344 = vector.broadcast %343 : vector<16x1xf32> to vector<16x32xf32>
    %345 = arith.mulf %340, %344 : vector<16x32xf32>
    %346 = vector.shape_cast %324 : vector<32xf32> to vector<1x32xf32>
    %347 = vector.broadcast %346 : vector<1x32xf32> to vector<16x32xf32>
    %348 = arith.addf %345, %347 : vector<16x32xf32>
    %349 = arith.truncf %348 : vector<16x32xf32> to vector<16x32xbf16>
    %c1_104 = arith.constant 1 : index
    %c0_105 = arith.constant 0 : index
    %c0_106 = arith.constant 0 : index
    %350 = vector.load %arg7[%c1_104, %c0_105, %c0_106] : memref<2x32x96xbf16, #tpu.memory_space<vmem>>, vector<1x32x96xbf16>
    %351 = vector.shape_cast %350 : vector<1x32x96xbf16> to vector<32x96xbf16>
    %cst_107 = arith.constant dense<0.000000e+00> : vector<16x96xf32>
    %352 = tpu.matmul %349, %351, %cst_107 {dimension_numbers = #tpu.dot_dimension_numbers<[1], [0], [0], [1], [0, 0, 1, 1], [], []>} : vector<16x32xbf16>, vector<32x96xbf16>, vector<16x96xf32> -> vector<16x96xf32>
    %c1_108 = arith.constant 1 : index
    %c0_109 = arith.constant 0 : index
    %353 = vector.load %arg8[%c1_108, %c0_109] : memref<2x96xf32, #tpu.memory_space<vmem>>, vector<1x96xf32>
    %354 = vector.shape_cast %353 : vector<1x96xf32> to vector<96xf32>
    %355 = vector.shape_cast %354 : vector<96xf32> to vector<1x96xf32>
    %356 = vector.broadcast %355 : vector<1x96xf32> to vector<16x96xf32>
    %357 = arith.addf %352, %356 : vector<16x96xf32>
    %358 = vector.extract_strided_slice %357 {offsets = [0, 0], sizes = [16, 32], strides = [1, 1]} : vector<16x96xf32> to vector<16x32xf32>
    %359 = vector.extract_strided_slice %357 {offsets = [0, 32], sizes = [16, 32], strides = [1, 1]} : vector<16x96xf32> to vector<16x32xf32>
    %360 = vector.extract_strided_slice %357 {offsets = [0, 64], sizes = [16, 32], strides = [1, 1]} : vector<16x96xf32> to vector<16x32xf32>
    %361 = vector.extract_strided_slice %358 {offsets = [0, 0], sizes = [16, 8], strides = [1, 1]} : vector<16x32xf32> to vector<16x8xf32>
    %362 = vector.extract_strided_slice %358 {offsets = [0, 8], sizes = [16, 8], strides = [1, 1]} : vector<16x32xf32> to vector<16x8xf32>
    %363 = vector.extract_strided_slice %358 {offsets = [0, 16], sizes = [16, 8], strides = [1, 1]} : vector<16x32xf32> to vector<16x8xf32>
    %364 = vector.extract_strided_slice %358 {offsets = [0, 24], sizes = [16, 8], strides = [1, 1]} : vector<16x32xf32> to vector<16x8xf32>
    %365 = vector.shape_cast %361 : vector<16x8xf32> to vector<1x16x8xf32>
    %366 = vector.shape_cast %362 : vector<16x8xf32> to vector<1x16x8xf32>
    %367 = vector.shape_cast %363 : vector<16x8xf32> to vector<1x16x8xf32>
    %368 = vector.shape_cast %364 : vector<16x8xf32> to vector<1x16x8xf32>
    %369 = tpu.concatenate %365, %366, %367, %368 in 0 : vector<1x16x8xf32>, vector<1x16x8xf32>, vector<1x16x8xf32>, vector<1x16x8xf32> -> vector<4x16x8xf32>
    %370 = arith.truncf %369 : vector<4x16x8xf32> to vector<4x16x8xbf16>
    %371 = vector.extract_strided_slice %359 {offsets = [0, 0], sizes = [16, 8], strides = [1, 1]} : vector<16x32xf32> to vector<16x8xf32>
    %372 = vector.extract_strided_slice %359 {offsets = [0, 8], sizes = [16, 8], strides = [1, 1]} : vector<16x32xf32> to vector<16x8xf32>
    %373 = vector.extract_strided_slice %359 {offsets = [0, 16], sizes = [16, 8], strides = [1, 1]} : vector<16x32xf32> to vector<16x8xf32>
    %374 = vector.extract_strided_slice %359 {offsets = [0, 24], sizes = [16, 8], strides = [1, 1]} : vector<16x32xf32> to vector<16x8xf32>
    %375 = vector.shape_cast %371 : vector<16x8xf32> to vector<1x16x8xf32>
    %376 = vector.shape_cast %372 : vector<16x8xf32> to vector<1x16x8xf32>
    %377 = vector.shape_cast %373 : vector<16x8xf32> to vector<1x16x8xf32>
    %378 = vector.shape_cast %374 : vector<16x8xf32> to vector<1x16x8xf32>
    %379 = tpu.concatenate %375, %376, %377, %378 in 0 : vector<1x16x8xf32>, vector<1x16x8xf32>, vector<1x16x8xf32>, vector<1x16x8xf32> -> vector<4x16x8xf32>
    %380 = arith.truncf %379 : vector<4x16x8xf32> to vector<4x16x8xbf16>
    %381 = vector.extract_strided_slice %360 {offsets = [0, 0], sizes = [16, 8], strides = [1, 1]} : vector<16x32xf32> to vector<16x8xf32>
    %382 = vector.extract_strided_slice %360 {offsets = [0, 8], sizes = [16, 8], strides = [1, 1]} : vector<16x32xf32> to vector<16x8xf32>
    %383 = vector.extract_strided_slice %360 {offsets = [0, 16], sizes = [16, 8], strides = [1, 1]} : vector<16x32xf32> to vector<16x8xf32>
    %384 = vector.extract_strided_slice %360 {offsets = [0, 24], sizes = [16, 8], strides = [1, 1]} : vector<16x32xf32> to vector<16x8xf32>
    %385 = vector.shape_cast %381 : vector<16x8xf32> to vector<1x16x8xf32>
    %386 = vector.shape_cast %382 : vector<16x8xf32> to vector<1x16x8xf32>
    %387 = vector.shape_cast %383 : vector<16x8xf32> to vector<1x16x8xf32>
    %388 = vector.shape_cast %384 : vector<16x8xf32> to vector<1x16x8xf32>
    %389 = tpu.concatenate %385, %386, %387, %388 in 0 : vector<1x16x8xf32>, vector<1x16x8xf32>, vector<1x16x8xf32>, vector<1x16x8xf32> -> vector<4x16x8xf32>
    %390 = arith.truncf %389 : vector<4x16x8xf32> to vector<4x16x8xbf16>
    "tpu.trace_start"() <{level = 10 : i32, message = "hqf,hkf->hqk"}> : () -> ()
    %cst_110 = arith.constant dense<0.000000e+00> : vector<4x16x16xf32>
    %391 = tpu.matmul %370, %380, %cst_110 {dimension_numbers = #tpu.dot_dimension_numbers<[2], [2], [1], [1], [0, 0, 0, 1, 1, 1], [0], [0]>} : vector<4x16x8xbf16>, vector<4x16x8xbf16>, vector<4x16x16xf32> -> vector<4x16x16xf32>
    "tpu.trace_stop"() : () -> ()
    %cst_111 = arith.constant 0.353553385 : f32
    %392 = vector.broadcast %cst_111 : f32 to vector<4x16x16xf32>
    %393 = arith.mulf %391, %392 : vector<4x16x16xf32>
    %394 = vector.shape_cast %30 : vector<16x16xf32> to vector<1x16x16xf32>
    %395 = vector.broadcast %394 : vector<1x16x16xf32> to vector<4x16x16xf32>
    %396 = arith.addf %393, %395 : vector<4x16x16xf32>
    %cst_112 = arith.constant dense<0xFF800000> : vector<4x16xf32>
    %397 = vector.multi_reduction <maximumf>, %396, %cst_112 [2] : vector<4x16x16xf32> to vector<4x16xf32>
    %398 = vector.shape_cast %397 : vector<4x16xf32> to vector<4x16x1xf32>
    %399 = vector.broadcast %398 : vector<4x16x1xf32> to vector<4x16x16xf32>
    %400 = arith.subf %396, %399 : vector<4x16x16xf32>
    %401 = math.exp %400 : vector<4x16x16xf32>
    %cst_113 = arith.constant dense<0.000000e+00> : vector<4x16xf32>
    %402 = vector.multi_reduction <add>, %401, %cst_113 [2] : vector<4x16x16xf32> to vector<4x16xf32>
    %403 = vector.shape_cast %402 : vector<4x16xf32> to vector<4x16x1xf32>
    %404 = tpu.reciprocal %403 {approx = true} : vector<4x16x1xf32> -> vector<4x16x1xf32>
    %405 = vector.broadcast %404 : vector<4x16x1xf32> to vector<4x16x16xf32>
    %406 = arith.mulf %401, %405 : vector<4x16x16xf32>
    %407 = arith.truncf %406 : vector<4x16x16xf32> to vector<4x16x16xbf16>
    "tpu.trace_start"() <{level = 10 : i32, message = "hqk,hkf->hqf"}> : () -> ()
    %cst_114 = arith.constant dense<0.000000e+00> : vector<4x16x8xf32>
    %408 = tpu.matmul %407, %390, %cst_114 {dimension_numbers = #tpu.dot_dimension_numbers<[2], [1], [1], [2], [0, 0, 0, 1, 1, 2], [0], [0]>} : vector<4x16x16xbf16>, vector<4x16x8xbf16>, vector<4x16x8xf32> -> vector<4x16x8xf32>
    "tpu.trace_stop"() : () -> ()
    %409 = vector.extract_strided_slice %408 {offsets = [0, 0, 0], sizes = [1, 16, 8], strides = [1, 1, 1]} : vector<4x16x8xf32> to vector<1x16x8xf32>
    %410 = vector.shape_cast %409 : vector<1x16x8xf32> to vector<16x8xf32>
    %411 = vector.extract_strided_slice %408 {offsets = [1, 0, 0], sizes = [1, 16, 8], strides = [1, 1, 1]} : vector<4x16x8xf32> to vector<1x16x8xf32>
    %412 = vector.shape_cast %411 : vector<1x16x8xf32> to vector<16x8xf32>
    %413 = vector.extract_strided_slice %408 {offsets = [2, 0, 0], sizes = [1, 16, 8], strides = [1, 1, 1]} : vector<4x16x8xf32> to vector<1x16x8xf32>
    %414 = vector.shape_cast %413 : vector<1x16x8xf32> to vector<16x8xf32>
    %415 = vector.extract_strided_slice %408 {offsets = [3, 0, 0], sizes = [1, 16, 8], strides = [1, 1, 1]} : vector<4x16x8xf32> to vector<1x16x8xf32>
    %416 = vector.shape_cast %415 : vector<1x16x8xf32> to vector<16x8xf32>
    %417 = tpu.concatenate %410, %412, %414, %416 in 1 : vector<16x8xf32>, vector<16x8xf32>, vector<16x8xf32>, vector<16x8xf32> -> vector<16x32xf32>
    %418 = arith.truncf %417 : vector<16x32xf32> to vector<16x32xbf16>
    %c1_115 = arith.constant 1 : index
    %c0_116 = arith.constant 0 : index
    %c0_117 = arith.constant 0 : index
    %419 = vector.load %arg13[%c1_115, %c0_116, %c0_117] : memref<2x32x32xbf16, #tpu.memory_space<vmem>>, vector<1x32x32xbf16>
    %420 = vector.shape_cast %419 : vector<1x32x32xbf16> to vector<32x32xbf16>
    %cst_118 = arith.constant dense<0.000000e+00> : vector<16x32xf32>
    %421 = tpu.matmul %418, %420, %cst_118 {dimension_numbers = #tpu.dot_dimension_numbers<[1], [0], [0], [1], [0, 0, 1, 1], [], []>} : vector<16x32xbf16>, vector<32x32xbf16>, vector<16x32xf32> -> vector<16x32xf32>
    %422 = arith.addf %316, %421 : vector<16x32xf32>
    %c1_119 = arith.constant 1 : index
    %c0_120 = arith.constant 0 : index
    %423 = vector.load %arg14[%c1_119, %c0_120] : memref<2x32xf32, #tpu.memory_space<vmem>>, vector<1x32xf32>
    %424 = vector.shape_cast %423 : vector<1x32xf32> to vector<32xf32>
    %425 = vector.shape_cast %424 : vector<32xf32> to vector<1x32xf32>
    %426 = vector.broadcast %425 : vector<1x32xf32> to vector<16x32xf32>
    %427 = arith.addf %422, %426 : vector<16x32xf32>
    %428 = vector.extract_strided_slice %318 {offsets = [1, 0], sizes = [1, 32], strides = [1, 1]} : vector<3x32xf32> to vector<1x32xf32>
    %429 = vector.shape_cast %428 : vector<1x32xf32> to vector<32xf32>
    %430 = vector.extract_strided_slice %320 {offsets = [1, 0], sizes = [1, 32], strides = [1, 1]} : vector<3x32xf32> to vector<1x32xf32>
    %431 = vector.shape_cast %430 : vector<1x32xf32> to vector<32xf32>
    %cst_121 = arith.constant dense<0.000000e+00> : vector<16xf32>
    %432 = vector.multi_reduction <add>, %427, %cst_121 [1] : vector<16x32xf32> to vector<16xf32>
    %433 = vector.shape_cast %432 : vector<16xf32> to vector<16x1xf32>
    %cst_122 = arith.constant 3.200000e+01 : f32
    %434 = vector.broadcast %cst_122 : f32 to vector<16x1xf32>
    %435 = arith.divf %433, %434 : vector<16x1xf32>
    %436 = vector.broadcast %435 : vector<16x1xf32> to vector<16x32xf32>
    %437 = arith.subf %427, %436 : vector<16x32xf32>
    %438 = arith.mulf %437, %437 : vector<16x32xf32>
    %cst_123 = arith.constant dense<0.000000e+00> : vector<16xf32>
    %439 = vector.multi_reduction <add>, %438, %cst_123 [1] : vector<16x32xf32> to vector<16xf32>
    %440 = vector.shape_cast %439 : vector<16xf32> to vector<16x1xf32>
    %cst_124 = arith.constant 3.200000e+01 : f32
    %441 = vector.broadcast %cst_124 : f32 to vector<16x1xf32>
    %442 = arith.divf %440, %441 : vector<16x1xf32>
    %443 = vector.broadcast %435 : vector<16x1xf32> to vector<16x32xf32>
    %444 = arith.subf %427, %443 : vector<16x32xf32>
    %445 = vector.shape_cast %429 : vector<32xf32> to vector<1x32xf32>
    %446 = vector.broadcast %445 : vector<1x32xf32> to vector<16x32xf32>
    %447 = arith.mulf %446, %444 : vector<16x32xf32>
    %cst_125 = arith.constant 9.99999997E-7 : f32
    %448 = vector.broadcast %cst_125 : f32 to vector<16x1xf32>
    %449 = arith.addf %442, %448 : vector<16x1xf32>
    %450 = math.rsqrt %449 : vector<16x1xf32>
    %451 = vector.broadcast %450 : vector<16x1xf32> to vector<16x32xf32>
    %452 = arith.mulf %447, %451 : vector<16x32xf32>
    %453 = vector.shape_cast %431 : vector<32xf32> to vector<1x32xf32>
    %454 = vector.broadcast %453 : vector<1x32xf32> to vector<16x32xf32>
    %455 = arith.addf %452, %454 : vector<16x32xf32>
    %456 = arith.truncf %455 : vector<16x32xf32> to vector<16x32xbf16>
    %c1_126 = arith.constant 1 : index
    %c0_127 = arith.constant 0 : index
    %c0_128 = arith.constant 0 : index
    %457 = vector.load %arg9[%c1_126, %c0_127, %c0_128] : memref<2x32x32xbf16, #tpu.memory_space<vmem>>, vector<1x32x32xbf16>
    %458 = vector.shape_cast %457 : vector<1x32x32xbf16> to vector<32x32xbf16>
    %cst_129 = arith.constant dense<0.000000e+00> : vector<16x32xf32>
    %459 = tpu.matmul %456, %458, %cst_129 {dimension_numbers = #tpu.dot_dimension_numbers<[1], [0], [0], [1], [0, 0, 1, 1], [], []>} : vector<16x32xbf16>, vector<32x32xbf16>, vector<16x32xf32> -> vector<16x32xf32>
    %c1_130 = arith.constant 1 : index
    %c0_131 = arith.constant 0 : index
    %460 = vector.load %arg10[%c1_130, %c0_131] : memref<2x32xf32, #tpu.memory_space<vmem>>, vector<1x32xf32>
    %461 = vector.shape_cast %460 : vector<1x32xf32> to vector<32xf32>
    %462 = vector.shape_cast %461 : vector<32xf32> to vector<1x32xf32>
    %463 = vector.broadcast %462 : vector<1x32xf32> to vector<16x32xf32>
    %464 = arith.addf %459, %463 : vector<16x32xf32>
    %c1_132 = arith.constant 1 : index
    %c0_133 = arith.constant 0 : index
    %c0_134 = arith.constant 0 : index
    %465 = vector.load %arg11[%c1_132, %c0_133, %c0_134] : memref<2x32x64xbf16, #tpu.memory_space<vmem>>, vector<1x32x64xbf16>
    %466 = vector.shape_cast %465 : vector<1x32x64xbf16> to vector<32x64xbf16>
    %cst_135 = arith.constant dense<0.000000e+00> : vector<24x64xf32>
    %467 = tpu.matmul %7, %466, %cst_135 {dimension_numbers = #tpu.dot_dimension_numbers<[1], [0], [0], [1], [0, 0, 1, 1], [], []>} : vector<24x32xbf16>, vector<32x64xbf16>, vector<24x64xf32> -> vector<24x64xf32>
    %c1_136 = arith.constant 1 : index
    %c0_137 = arith.constant 0 : index
    %468 = vector.load %arg12[%c1_136, %c0_137] : memref<2x64xf32, #tpu.memory_space<vmem>>, vector<1x64xf32>
    %469 = vector.shape_cast %468 : vector<1x64xf32> to vector<64xf32>
    %470 = vector.shape_cast %469 : vector<64xf32> to vector<1x64xf32>
    %471 = vector.broadcast %470 : vector<1x64xf32> to vector<24x64xf32>
    %472 = arith.addf %467, %471 : vector<24x64xf32>
    %473 = vector.extract_strided_slice %472 {offsets = [0, 0], sizes = [24, 32], strides = [1, 1]} : vector<24x64xf32> to vector<24x32xf32>
    %474 = vector.extract_strided_slice %472 {offsets = [0, 32], sizes = [24, 32], strides = [1, 1]} : vector<24x64xf32> to vector<24x32xf32>
    %475 = vector.extract_strided_slice %464 {offsets = [0, 0], sizes = [16, 8], strides = [1, 1]} : vector<16x32xf32> to vector<16x8xf32>
    %476 = vector.extract_strided_slice %464 {offsets = [0, 8], sizes = [16, 8], strides = [1, 1]} : vector<16x32xf32> to vector<16x8xf32>
    %477 = vector.extract_strided_slice %464 {offsets = [0, 16], sizes = [16, 8], strides = [1, 1]} : vector<16x32xf32> to vector<16x8xf32>
    %478 = vector.extract_strided_slice %464 {offsets = [0, 24], sizes = [16, 8], strides = [1, 1]} : vector<16x32xf32> to vector<16x8xf32>
    %479 = vector.shape_cast %475 : vector<16x8xf32> to vector<1x16x8xf32>
    %480 = vector.shape_cast %476 : vector<16x8xf32> to vector<1x16x8xf32>
    %481 = vector.shape_cast %477 : vector<16x8xf32> to vector<1x16x8xf32>
    %482 = vector.shape_cast %478 : vector<16x8xf32> to vector<1x16x8xf32>
    %483 = tpu.concatenate %479, %480, %481, %482 in 0 : vector<1x16x8xf32>, vector<1x16x8xf32>, vector<1x16x8xf32>, vector<1x16x8xf32> -> vector<4x16x8xf32>
    %484 = arith.truncf %483 : vector<4x16x8xf32> to vector<4x16x8xbf16>
    %485 = vector.extract_strided_slice %473 {offsets = [0, 0], sizes = [24, 8], strides = [1, 1]} : vector<24x32xf32> to vector<24x8xf32>
    %486 = vector.extract_strided_slice %473 {offsets = [0, 8], sizes = [24, 8], strides = [1, 1]} : vector<24x32xf32> to vector<24x8xf32>
    %487 = vector.extract_strided_slice %473 {offsets = [0, 16], sizes = [24, 8], strides = [1, 1]} : vector<24x32xf32> to vector<24x8xf32>
    %488 = vector.extract_strided_slice %473 {offsets = [0, 24], sizes = [24, 8], strides = [1, 1]} : vector<24x32xf32> to vector<24x8xf32>
    %489 = vector.shape_cast %485 : vector<24x8xf32> to vector<1x24x8xf32>
    %490 = vector.shape_cast %486 : vector<24x8xf32> to vector<1x24x8xf32>
    %491 = vector.shape_cast %487 : vector<24x8xf32> to vector<1x24x8xf32>
    %492 = vector.shape_cast %488 : vector<24x8xf32> to vector<1x24x8xf32>
    %493 = tpu.concatenate %489, %490, %491, %492 in 0 : vector<1x24x8xf32>, vector<1x24x8xf32>, vector<1x24x8xf32>, vector<1x24x8xf32> -> vector<4x24x8xf32>
    %494 = arith.truncf %493 : vector<4x24x8xf32> to vector<4x24x8xbf16>
    %495 = vector.extract_strided_slice %474 {offsets = [0, 0], sizes = [24, 8], strides = [1, 1]} : vector<24x32xf32> to vector<24x8xf32>
    %496 = vector.extract_strided_slice %474 {offsets = [0, 8], sizes = [24, 8], strides = [1, 1]} : vector<24x32xf32> to vector<24x8xf32>
    %497 = vector.extract_strided_slice %474 {offsets = [0, 16], sizes = [24, 8], strides = [1, 1]} : vector<24x32xf32> to vector<24x8xf32>
    %498 = vector.extract_strided_slice %474 {offsets = [0, 24], sizes = [24, 8], strides = [1, 1]} : vector<24x32xf32> to vector<24x8xf32>
    %499 = vector.shape_cast %495 : vector<24x8xf32> to vector<1x24x8xf32>
    %500 = vector.shape_cast %496 : vector<24x8xf32> to vector<1x24x8xf32>
    %501 = vector.shape_cast %497 : vector<24x8xf32> to vector<1x24x8xf32>
    %502 = vector.shape_cast %498 : vector<24x8xf32> to vector<1x24x8xf32>
    %503 = tpu.concatenate %499, %500, %501, %502 in 0 : vector<1x24x8xf32>, vector<1x24x8xf32>, vector<1x24x8xf32>, vector<1x24x8xf32> -> vector<4x24x8xf32>
    %504 = arith.truncf %503 : vector<4x24x8xf32> to vector<4x24x8xbf16>
    "tpu.trace_start"() <{level = 10 : i32, message = "hqf,hkf->hqk"}> : () -> ()
    %cst_138 = arith.constant dense<0.000000e+00> : vector<4x16x24xf32>
    %505 = tpu.matmul %484, %494, %cst_138 {dimension_numbers = #tpu.dot_dimension_numbers<[2], [2], [1], [1], [0, 0, 0, 1, 1, 1], [0], [0]>} : vector<4x16x8xbf16>, vector<4x24x8xbf16>, vector<4x16x24xf32> -> vector<4x16x24xf32>
    "tpu.trace_stop"() : () -> ()
    %cst_139 = arith.constant 0.353553385 : f32
    %506 = vector.broadcast %cst_139 : f32 to vector<4x16x24xf32>
    %507 = arith.mulf %505, %506 : vector<4x16x24xf32>
    %508 = vector.shape_cast %42 : vector<16x24xf32> to vector<1x16x24xf32>
    %509 = vector.broadcast %508 : vector<1x16x24xf32> to vector<4x16x24xf32>
    %510 = arith.addf %507, %509 : vector<4x16x24xf32>
    %cst_140 = arith.constant dense<0xFF800000> : vector<4x16xf32>
    %511 = vector.multi_reduction <maximumf>, %510, %cst_140 [2] : vector<4x16x24xf32> to vector<4x16xf32>
    %512 = vector.shape_cast %511 : vector<4x16xf32> to vector<4x16x1xf32>
    %513 = vector.broadcast %512 : vector<4x16x1xf32> to vector<4x16x24xf32>
    %514 = arith.subf %510, %513 : vector<4x16x24xf32>
    %515 = math.exp %514 : vector<4x16x24xf32>
    %cst_141 = arith.constant dense<0.000000e+00> : vector<4x16xf32>
    %516 = vector.multi_reduction <add>, %515, %cst_141 [2] : vector<4x16x24xf32> to vector<4x16xf32>
    %517 = vector.shape_cast %516 : vector<4x16xf32> to vector<4x16x1xf32>
    %518 = tpu.reciprocal %517 {approx = true} : vector<4x16x1xf32> -> vector<4x16x1xf32>
    %519 = vector.broadcast %518 : vector<4x16x1xf32> to vector<4x16x24xf32>
    %520 = arith.mulf %515, %519 : vector<4x16x24xf32>
    %521 = arith.truncf %520 : vector<4x16x24xf32> to vector<4x16x24xbf16>
    "tpu.trace_start"() <{level = 10 : i32, message = "hqk,hkf->hqf"}> : () -> ()
    %cst_142 = arith.constant dense<0.000000e+00> : vector<4x16x8xf32>
    %522 = tpu.matmul %521, %504, %cst_142 {dimension_numbers = #tpu.dot_dimension_numbers<[2], [1], [1], [2], [0, 0, 0, 1, 1, 2], [0], [0]>} : vector<4x16x24xbf16>, vector<4x24x8xbf16>, vector<4x16x8xf32> -> vector<4x16x8xf32>
    "tpu.trace_stop"() : () -> ()
    %523 = vector.extract_strided_slice %522 {offsets = [0, 0, 0], sizes = [1, 16, 8], strides = [1, 1, 1]} : vector<4x16x8xf32> to vector<1x16x8xf32>
    %524 = vector.shape_cast %523 : vector<1x16x8xf32> to vector<16x8xf32>
    %525 = vector.extract_strided_slice %522 {offsets = [1, 0, 0], sizes = [1, 16, 8], strides = [1, 1, 1]} : vector<4x16x8xf32> to vector<1x16x8xf32>
    %526 = vector.shape_cast %525 : vector<1x16x8xf32> to vector<16x8xf32>
    %527 = vector.extract_strided_slice %522 {offsets = [2, 0, 0], sizes = [1, 16, 8], strides = [1, 1, 1]} : vector<4x16x8xf32> to vector<1x16x8xf32>
    %528 = vector.shape_cast %527 : vector<1x16x8xf32> to vector<16x8xf32>
    %529 = vector.extract_strided_slice %522 {offsets = [3, 0, 0], sizes = [1, 16, 8], strides = [1, 1, 1]} : vector<4x16x8xf32> to vector<1x16x8xf32>
    %530 = vector.shape_cast %529 : vector<1x16x8xf32> to vector<16x8xf32>
    %531 = tpu.concatenate %524, %526, %528, %530 in 1 : vector<16x8xf32>, vector<16x8xf32>, vector<16x8xf32>, vector<16x8xf32> -> vector<16x32xf32>
    %532 = arith.truncf %531 : vector<16x32xf32> to vector<16x32xbf16>
    %c1_143 = arith.constant 1 : index
    %c0_144 = arith.constant 0 : index
    %c0_145 = arith.constant 0 : index
    %533 = vector.load %arg15[%c1_143, %c0_144, %c0_145] : memref<2x32x32xbf16, #tpu.memory_space<vmem>>, vector<1x32x32xbf16>
    %534 = vector.shape_cast %533 : vector<1x32x32xbf16> to vector<32x32xbf16>
    %cst_146 = arith.constant dense<0.000000e+00> : vector<16x32xf32>
    %535 = tpu.matmul %532, %534, %cst_146 {dimension_numbers = #tpu.dot_dimension_numbers<[1], [0], [0], [1], [0, 0, 1, 1], [], []>} : vector<16x32xbf16>, vector<32x32xbf16>, vector<16x32xf32> -> vector<16x32xf32>
    %536 = arith.addf %427, %535 : vector<16x32xf32>
    %c1_147 = arith.constant 1 : index
    %c0_148 = arith.constant 0 : index
    %537 = vector.load %arg16[%c1_147, %c0_148] : memref<2x32xf32, #tpu.memory_space<vmem>>, vector<1x32xf32>
    %538 = vector.shape_cast %537 : vector<1x32xf32> to vector<32xf32>
    %539 = vector.shape_cast %538 : vector<32xf32> to vector<1x32xf32>
    %540 = vector.broadcast %539 : vector<1x32xf32> to vector<16x32xf32>
    %541 = arith.addf %536, %540 : vector<16x32xf32>
    %542 = vector.extract_strided_slice %318 {offsets = [2, 0], sizes = [1, 32], strides = [1, 1]} : vector<3x32xf32> to vector<1x32xf32>
    %543 = vector.shape_cast %542 : vector<1x32xf32> to vector<32xf32>
    %544 = vector.extract_strided_slice %320 {offsets = [2, 0], sizes = [1, 32], strides = [1, 1]} : vector<3x32xf32> to vector<1x32xf32>
    %545 = vector.shape_cast %544 : vector<1x32xf32> to vector<32xf32>
    %cst_149 = arith.constant dense<0.000000e+00> : vector<16xf32>
    %546 = vector.multi_reduction <add>, %541, %cst_149 [1] : vector<16x32xf32> to vector<16xf32>
    %547 = vector.shape_cast %546 : vector<16xf32> to vector<16x1xf32>
    %cst_150 = arith.constant 3.200000e+01 : f32
    %548 = vector.broadcast %cst_150 : f32 to vector<16x1xf32>
    %549 = arith.divf %547, %548 : vector<16x1xf32>
    %550 = vector.broadcast %549 : vector<16x1xf32> to vector<16x32xf32>
    %551 = arith.subf %541, %550 : vector<16x32xf32>
    %552 = arith.mulf %551, %551 : vector<16x32xf32>
    %cst_151 = arith.constant dense<0.000000e+00> : vector<16xf32>
    %553 = vector.multi_reduction <add>, %552, %cst_151 [1] : vector<16x32xf32> to vector<16xf32>
    %554 = vector.shape_cast %553 : vector<16xf32> to vector<16x1xf32>
    %cst_152 = arith.constant 3.200000e+01 : f32
    %555 = vector.broadcast %cst_152 : f32 to vector<16x1xf32>
    %556 = arith.divf %554, %555 : vector<16x1xf32>
    %557 = vector.broadcast %549 : vector<16x1xf32> to vector<16x32xf32>
    %558 = arith.subf %541, %557 : vector<16x32xf32>
    %559 = vector.shape_cast %543 : vector<32xf32> to vector<1x32xf32>
    %560 = vector.broadcast %559 : vector<1x32xf32> to vector<16x32xf32>
    %561 = arith.mulf %560, %558 : vector<16x32xf32>
    %cst_153 = arith.constant 9.99999997E-7 : f32
    %562 = vector.broadcast %cst_153 : f32 to vector<16x1xf32>
    %563 = arith.addf %556, %562 : vector<16x1xf32>
    %564 = math.rsqrt %563 : vector<16x1xf32>
    %565 = vector.broadcast %564 : vector<16x1xf32> to vector<16x32xf32>
    %566 = arith.mulf %561, %565 : vector<16x32xf32>
    %567 = vector.shape_cast %545 : vector<32xf32> to vector<1x32xf32>
    %568 = vector.broadcast %567 : vector<1x32xf32> to vector<16x32xf32>
    %569 = arith.addf %566, %568 : vector<16x32xf32>
    %570 = arith.truncf %569 : vector<16x32xf32> to vector<16x32xbf16>
    %c1_154 = arith.constant 1 : index
    %c0_155 = arith.constant 0 : index
    %c0_156 = arith.constant 0 : index
    %571 = vector.load %arg17[%c1_154, %c0_155, %c0_156] : memref<2x32x64xbf16, #tpu.memory_space<vmem>>, vector<1x32x64xbf16>
    %572 = vector.shape_cast %571 : vector<1x32x64xbf16> to vector<32x64xbf16>
    %cst_157 = arith.constant dense<0.000000e+00> : vector<16x64xf32>
    %573 = tpu.matmul %570, %572, %cst_157 {dimension_numbers = #tpu.dot_dimension_numbers<[1], [0], [0], [1], [0, 0, 1, 1], [], []>} : vector<16x32xbf16>, vector<32x64xbf16>, vector<16x64xf32> -> vector<16x64xf32>
    %c1_158 = arith.constant 1 : index
    %c0_159 = arith.constant 0 : index
    %574 = vector.load %arg18[%c1_158, %c0_159] : memref<2x64xf32, #tpu.memory_space<vmem>>, vector<1x64xf32>
    %575 = vector.shape_cast %574 : vector<1x64xf32> to vector<64xf32>
    %576 = vector.shape_cast %575 : vector<64xf32> to vector<1x64xf32>
    %577 = vector.broadcast %576 : vector<1x64xf32> to vector<16x64xf32>
    %578 = arith.addf %573, %577 : vector<16x64xf32>
    %cst_160 = arith.constant 0.000000e+00 : f32
    %579 = vector.broadcast %cst_160 : f32 to vector<16x64xf32>
    %580 = arith.maximumf %578, %579 : vector<16x64xf32>
    %581 = arith.truncf %580 : vector<16x64xf32> to vector<16x64xbf16>
    %c1_161 = arith.constant 1 : index
    %c0_162 = arith.constant 0 : index
    %c0_163 = arith.constant 0 : index
    %582 = vector.load %arg19[%c1_161, %c0_162, %c0_163] : memref<2x64x32xbf16, #tpu.memory_space<vmem>>, vector<1x64x32xbf16>
    %583 = vector.shape_cast %582 : vector<1x64x32xbf16> to vector<64x32xbf16>
    %cst_164 = arith.constant dense<0.000000e+00> : vector<16x32xf32>
    %584 = tpu.matmul %581, %583, %cst_164 {dimension_numbers = #tpu.dot_dimension_numbers<[1], [0], [0], [1], [0, 0, 1, 1], [], []>} : vector<16x64xbf16>, vector<64x32xbf16>, vector<16x32xf32> -> vector<16x32xf32>
    %585 = arith.addf %541, %584 : vector<16x32xf32>
    %c1_165 = arith.constant 1 : index
    %c0_166 = arith.constant 0 : index
    %586 = vector.load %arg20[%c1_165, %c0_166] : memref<2x32xf32, #tpu.memory_space<vmem>>, vector<1x32xf32>
    %587 = vector.shape_cast %586 : vector<1x32xf32> to vector<32xf32>
    %588 = vector.shape_cast %587 : vector<32xf32> to vector<1x32xf32>
    %589 = vector.broadcast %588 : vector<1x32xf32> to vector<16x32xf32>
    %590 = arith.addf %585, %589 : vector<16x32xf32>
    %c0_167 = arith.constant 0 : index
    %c0_168 = arith.constant 0 : index
    %591 = vector.load %arg23[%c0_167, %c0_168] : memref<2x32xf32, #tpu.memory_space<vmem>>, vector<2x32xf32>
    %592 = vector.extract_strided_slice %591 {offsets = [0, 0], sizes = [1, 32], strides = [1, 1]} : vector<2x32xf32> to vector<1x32xf32>
    %593 = vector.shape_cast %592 : vector<1x32xf32> to vector<32xf32>
    %594 = vector.extract_strided_slice %591 {offsets = [1, 0], sizes = [1, 32], strides = [1, 1]} : vector<2x32xf32> to vector<1x32xf32>
    %595 = vector.shape_cast %594 : vector<1x32xf32> to vector<32xf32>
    %cst_169 = arith.constant dense<0.000000e+00> : vector<16xf32>
    %596 = vector.multi_reduction <add>, %590, %cst_169 [1] : vector<16x32xf32> to vector<16xf32>
    %597 = vector.shape_cast %596 : vector<16xf32> to vector<16x1xf32>
    %cst_170 = arith.constant 3.200000e+01 : f32
    %598 = vector.broadcast %cst_170 : f32 to vector<16x1xf32>
    %599 = arith.divf %597, %598 : vector<16x1xf32>
    %600 = vector.broadcast %599 : vector<16x1xf32> to vector<16x32xf32>
    %601 = arith.subf %590, %600 : vector<16x32xf32>
    %602 = arith.mulf %601, %601 : vector<16x32xf32>
    %cst_171 = arith.constant dense<0.000000e+00> : vector<16xf32>
    %603 = vector.multi_reduction <add>, %602, %cst_171 [1] : vector<16x32xf32> to vector<16xf32>
    %604 = vector.shape_cast %603 : vector<16xf32> to vector<16x1xf32>
    %cst_172 = arith.constant 3.200000e+01 : f32
    %605 = vector.broadcast %cst_172 : f32 to vector<16x1xf32>
    %606 = arith.divf %604, %605 : vector<16x1xf32>
    %607 = vector.broadcast %599 : vector<16x1xf32> to vector<16x32xf32>
    %608 = arith.subf %590, %607 : vector<16x32xf32>
    %609 = vector.shape_cast %593 : vector<32xf32> to vector<1x32xf32>
    %610 = vector.broadcast %609 : vector<1x32xf32> to vector<16x32xf32>
    %611 = arith.mulf %610, %608 : vector<16x32xf32>
    %cst_173 = arith.constant 9.99999997E-7 : f32
    %612 = vector.broadcast %cst_173 : f32 to vector<16x1xf32>
    %613 = arith.addf %606, %612 : vector<16x1xf32>
    %614 = math.rsqrt %613 : vector<16x1xf32>
    %615 = vector.broadcast %614 : vector<16x1xf32> to vector<16x32xf32>
    %616 = arith.mulf %611, %615 : vector<16x32xf32>
    %617 = vector.shape_cast %595 : vector<32xf32> to vector<1x32xf32>
    %618 = vector.broadcast %617 : vector<1x32xf32> to vector<16x32xf32>
    %619 = arith.addf %616, %618 : vector<16x32xf32>
    %620 = arith.truncf %619 : vector<16x32xf32> to vector<16x32xbf16>
    %c0_174 = arith.constant 0 : index
    %c0_175 = arith.constant 0 : index
    %621 = vector.load %arg24[%c0_174, %c0_175] : memref<32x16xbf16, #tpu.memory_space<vmem>>, vector<32x16xbf16>
    %cst_176 = arith.constant dense<0.000000e+00> : vector<16x16xf32>
    %622 = tpu.matmul %620, %621, %cst_176 {dimension_numbers = #tpu.dot_dimension_numbers<[1], [0], [0], [1], [0, 0, 1, 1], [], []>} : vector<16x32xbf16>, vector<32x16xbf16>, vector<16x16xf32> -> vector<16x16xf32>
    %c0_177 = arith.constant 0 : index
    %c0_178 = arith.constant 0 : index
    %623 = vector.load %arg25[%c0_177, %c0_178] : memref<1x16xf32, #tpu.memory_space<vmem>>, vector<1x16xf32>
    %624 = vector.broadcast %623 : vector<1x16xf32> to vector<16x16xf32>
    %625 = arith.addf %622, %624 : vector<16x16xf32>
    %626 = arith.truncf %625 : vector<16x16xf32> to vector<16x16xbf16>
    %c0_179 = arith.constant 0 : index
    %c0_180 = arith.constant 0 : index
    %627 = vector.load %arg26[%c0_179, %c0_180] : memref<16x128xbf16, #tpu.memory_space<vmem>>, vector<16x128xbf16>
    %cst_181 = arith.constant dense<0.000000e+00> : vector<16x128xf32>
    %628 = tpu.matmul %626, %627, %cst_181 {dimension_numbers = #tpu.dot_dimension_numbers<[1], [0], [0], [1], [0, 0, 1, 1], [], []>} : vector<16x16xbf16>, vector<16x128xbf16>, vector<16x128xf32> -> vector<16x128xf32>
    %c0_182 = arith.constant 0 : index
    %c0_183 = arith.constant 0 : index
    %629 = vector.load %arg27[%c0_182, %c0_183] : memref<1x128xf32, #tpu.memory_space<vmem>>, vector<1x128xf32>
    %630 = vector.broadcast %629 : vector<1x128xf32> to vector<16x128xf32>
    %631 = arith.addf %628, %630 : vector<16x128xf32>
    %cst_184 = arith.constant dense<0xFF800000> : vector<16xf32>
    %632 = vector.multi_reduction <maximumf>, %631, %cst_184 [1] : vector<16x128xf32> to vector<16xf32>
    %633 = vector.shape_cast %632 : vector<16xf32> to vector<16x1xf32>
    %634 = vector.broadcast %633 : vector<16x1xf32> to vector<16x128xf32>
    %635 = arith.subf %631, %634 : vector<16x128xf32>
    %636 = math.exp %635 : vector<16x128xf32>
    %cst_185 = arith.constant dense<0.000000e+00> : vector<16xf32>
    %637 = vector.multi_reduction <add>, %636, %cst_185 [1] : vector<16x128xf32> to vector<16xf32>
    %638 = vector.shape_cast %637 : vector<16xf32> to vector<16x1xf32>
    %639 = math.log %638 : vector<16x1xf32>
    %640 = arith.addf %639, %633 : vector<16x1xf32>
    %641 = vector.broadcast %640 : vector<16x1xf32> to vector<16x128xf32>
    %642 = arith.subf %631, %641 : vector<16x128xf32>
    %c0_186 = arith.constant 0 : index
    %c0_187 = arith.constant 0 : index
    %643 = vector.load %arg29[%c0_186, %c0_187] : memref<16x128xf32, #tpu.memory_space<vmem>>, vector<16x128xf32>
    tpu.vector_store %arg29[%c0_186, %c0_187], %642 {strides = array<i32>} : memref<16x128xf32, #tpu.memory_space<vmem>>, vector<16x128xf32>,
    %644 = tpu.iota {dimensions = array<i32: 1>} : vector<16x128xi32>
    %c0_188 = arith.constant 0 : index
    %c0_189 = arith.constant 0 : index
    %645 = vector.load %arg28[%c0_188, %c0_189] : memref<16x1xi32, #tpu.memory_space<vmem>>, vector<16x1xi32>
    %646 = vector.broadcast %645 : vector<16x1xi32> to vector<16x128xi32>
    %647 = arith.cmpi eq, %644, %646 : vector<16x128xi32>
    %cst_190 = arith.constant 0.000000e+00 : f32
    %648 = vector.broadcast %cst_190 : f32 to vector<16x128xf32>
    %649 = arith.select %647, %642, %648 : vector<16x128xi1>, vector<16x128xf32>
    %cst_191 = arith.constant dense<0.000000e+00> : vector<16xf32>
    %650 = vector.multi_reduction <add>, %649, %cst_191 [1] : vector<16x128xf32> to vector<16xf32>
    %651 = vector.shape_cast %650 : vector<16xf32> to vector<16x1xf32>
    %cst_192 = arith.constant 0.000000e+00 : f32
    %652 = vector.broadcast %cst_192 : f32 to vector<16x1xf32>
    %653 = arith.subf %652, %651 : vector<16x1xf32>
    %654 = arith.mulf %653, %13 : vector<16x1xf32>
    %655 = vector.shape_cast %654 : vector<16x1xf32> to vector<1x16x1xf32>
    %cst_193 = arith.constant dense<0.000000e+00> : vector<1xf32>
    %656 = vector.multi_reduction <add>, %655, %cst_193 [1, 2] : vector<1x16x1xf32> to vector<1xf32>
    %657 = vector.shape_cast %656 : vector<1xf32> to vector<1x1x1xf32>
    %658 = vector.extract %657[0, 0, 0] : f32 from vector<1x1x1xf32>
    %659 = vector.broadcast %658 : f32 to vector<1x1xf32>
    %c0_194 = arith.constant 0 : index
    %c0_195 = arith.constant 0 : index
    %660 = vector.load %arg30[%c0_194, %c0_195] : memref<1x1xf32, #tpu.memory_space<vmem>>, vector<1x1xf32>
    tpu.vector_store %arg30[%c0_194, %c0_195], %659 {strides = array<i32>} : memref<1x1xf32, #tpu.memory_space<vmem>>, vector<1x1xf32>,
    return
  }
}

</mosaic_0001>

<bundles_post_ra>
// kernel: _device_forward.1
= control target key start
LH: loop header
LB: loop body
LE: loop exit
PB: predicated region body
PF: predicated region fallthrough
CT: control target
= control target key end

     0   :  { %s5242_s6 = smov 1   ;;  %s5243_s10 = smov 2   ;;  %s6326_s0 = inlined_call_operand.smem [shape: u32[31], index: -1, kind: input, shape index: {}] }
   0x1   :  { %s5297_s5 = sld [smem:[%s6326_s0]]   ;;  %s5244_s14 = smov 3  }
   0x2   :  { %s5302_s9 = sld [smem:[%s6326_s0 + %s5242_s6]]   ;;  %s5245_s18 = smov 4  }
   0x3   :  { %s5307_s13 = sld [smem:[%s6326_s0 + %s5243_s10]]   ;;  %s5246_s22 = smov 5  }
   0x4   :  { %s5312_s17 = sld [smem:[%s6326_s0 + %s5244_s14]]   ;;  %s5247_s26 = smov 6  }
   0x5   :  { %s5317_s21 = sld [smem:[%s6326_s0 + %s5245_s18]]   ;;  %s5248_s30 = smov 7  }
   0x6   :  { %s5322_s25 = sld [smem:[%s6326_s0 + %s5246_s22]]   ;;  %s5249_s4 = smov 8  }
   0x7   :  { %s5327_s29 = sld [smem:[%s6326_s0 + %s5247_s26]]   ;;  %s5250_s10 = smov 9  }
   0x8   :  { %s5332_s3 = sld [smem:[%s6326_s0 + %s5248_s30]]   ;;  %s5251_s15 = smov 10  }
   0x9   :  { %s5337_s8 = sld [smem:[%s6326_s0 + %s5249_s4]]   ;;  %s5252_s20 = smov 11  }
   0xa   :  { %s5342_s14 = sld [smem:[%s6326_s0 + %s5250_s10]]   ;;  %s5253_s26 = smov 12  }
   0xb   :  { %s5347_s19 = sld [smem:[%s6326_s0 + %s5251_s15]]   ;;  %s5254_s1 = smov 13  }
   0xc   :  { %6336 = sst [smem:[#allocation8_spill]] %s5322_s25  ;;  %s5255_s7 = smov 14  }
   0xd   :  { %s5352_s24 = sld [smem:[%s6326_s0 + %s5252_s20]]   ;;  %s5256_s15 = smov 15  }
   0xe   :  { %s5357_s30 = sld [smem:[%s6326_s0 + %s5253_s26]]   ;;  %s5257_s22 = smov 16  }
   0xf   :  { %s5362_s6 = sld [smem:[%s6326_s0 + %s5254_s1]]   ;;  %s5258_s28 = smov 17  }
  0x10   :  { %s5367_s12 = sld [smem:[%s6326_s0 + %s5255_s7]]   ;;  %s5259_s7 = smov 18  }
  0x11   :  { %6337 = sst [smem:[#allocation9_spill]] %s5347_s19 }
  0x12   :  { %s5372_s20 = sld [smem:[%s6326_s0 + %s5256_s15]]   ;;  %s5260_s15 = smov 19  }
  0x13   :  { %s5377_s27 = sld [smem:[%s6326_s0 + %s5257_s22]]   ;;  %s5261_s22 = smov 20  }
  0x14   :  { %6338 = sst [smem:[#allocation10_spill]] %s5357_s30 }
  0x15   :  { %s5382_s4 = sld [smem:[%s6326_s0 + %s5258_s28]]   ;;  %s5262_s28 = smov 21  }
  0x16   :  { %s5387_s25 = sld [smem:[%s6326_s0 + %s5259_s7]]   ;;  %s5263_s7 = smov 22  }
  0x18   :  { %6339 = sst [smem:[#allocation11_spill]] %s5372_s20 }
  0x19   :  { %6340 = sst [smem:[#allocation12_spill]] %s5377_s27 }
  0x1a   :  { %s5392_s20 = sld [smem:[%s6326_s0 + %s5260_s15]]   ;;  %s5264_s15 = smov 23  }
  0x1b   :  { %6341 = sst [smem:[#allocation13_spill]] %s5382_s4 }
  0x1c   :  { %6342 = sst [smem:[#allocation14_spill]] %s5387_s25 }
  0x1d   :  { %s5397_s27 = sld [smem:[%s6326_s0 + %s5261_s22]]   ;;  %s5265_s22 = smov 24  }
  0x1e   :  { %s5402_s4 = sld [smem:[%s6326_s0 + %s5262_s28]]   ;;  %s5266_s28 = smov 25  }
  0x1f   :  { %s5407_s25 = sld [smem:[%s6326_s0 + %s5263_s7]]   ;;  %s5267_s7 = smov 26  }
  0x20   :  { %6343 = sst [smem:[#allocation15_spill]] %s5392_s20 }
  0x21   :  { %s5412_s20 = sld [smem:[%s6326_s0 + %s5264_s15]]   ;;  %s5268_s15 = smov 27  }
  0x22   :  { %s5422_s19 = sld [smem:[%s6326_s0 + %s5266_s28]]   ;;  %s5270_s28 = smov 29  }
  0x23   :  { %6344 = sst [smem:[#allocation16_spill]] %s5397_s27 }
  0x24   :  { %s5417_s27 = sld [smem:[%s6326_s0 + %s5265_s22]]   ;;  %s5269_s22 = smov 28  }
  0x25   :  { %s5427_s30 = sld [smem:[%s6326_s0 + %s5267_s7]]   ;;  %s5271_s7 = smov 30  }
  0x27   :  { %6345 = sst [smem:[#allocation17_spill]] %s5412_s20 }
  0x28   :  { %6347 = sst [smem:[#allocation19_spill]] %s5422_s19 }
  0x29   :  { %s5432_s20 = sld [smem:[%s6326_s0 + %s5268_s15]]  }
  0x2a   :  { %6346 = sst [smem:[#allocation18_spill]] %s5417_s27 }
  0x2b   :  { %6348 = sst [smem:[#allocation20_spill]] %s5427_s30 }
  0x2c   :  { %s5437_s27 = sld [smem:[%s6326_s0 + %s5269_s22]]  }
  0x2d   :  { %s5442_s19 = sld [smem:[%s6326_s0 + %s5270_s28]]  }
  0x2e   :  { %s5447_s30 = sld [smem:[%s6326_s0 + %s5271_s7]]  }
  0x2f   :  { %67 = vsyncpa [#allocation3], 0  ;;  %v4983_v0 = vld [vmem:[%s5327_s29] sm:$0xff]   ;;  %v5272_v1 = vmov 0.0   ;;  %vm5273_vm0 = vmmov 0   ;;  %vm143_vm1 = vcmask 130048  }
  0x30   :  { %4416 = vmatprep.subr.bf16.mxu0 %v5272_v1  ;;  %v4984_v2 = vld [vmem:[%s5297_s5] sm:$0xff]   ;;  %4422 = vmatprep.subr.bf16.mxu1 %v5272_v1 }
  0x31   :  { %4417 = vmatpush3.bf16.msra.mxu0 %v4983_v0  ;;  %4418 = vmatprep.mubr.msk.bf16.mxu0 %vm5273_vm0, %v5272_v1 }
  0x32   :  { %4426 = vmatprep.mubr.msk.bf16.mxu1 %vm5273_vm0, %v5272_v1  ;;  %4430 = vmatprep.subr.bf16.mxu0 %v5272_v1 }
  0x34   :  { %4419 = vmatmul.mubr.msk.bf16.vlgmr.msra.gmra.mrb[0].mxu0 %vm143_vm1, %v4984_v2 }
  0x35   :  { %4432 = vmatprep.mubr.msk.bf16.mxu0 %vm5273_vm0, %v5272_v1 }
  0x36   :  { %68 = vsyncpa [#allocation5], 0  ;;  %v190_v4 = vld [vmem:[%s5302_s9] sm:$0xff]  ;;  %v191_v8 = vld [vmem:[%s5302_s9 + $0x8] sm:$0xff]  ;;  %vm263_vm2 = vcmask 261120   ;;  %v211_v27 = vlaneseq  ;;  %s5274_s0 = smov 112  }
  0x37   :  { %v4985_v25 = vld [vmem:[%s5332_s3] sm:$0xff]   ;;  %v4986_v26 = vld [vmem:[%s5332_s3 + $0x8] sm:$0xff]   ;;  %s5275_s5 = smov 120   ;;  %s5276_s9 = smov 104   ;;  %v5277_v58 = vmov 0   ;;  %vm396_vm3 = vcmask 64512  }
  0x38   :  { %4423 = vmatpush3.bf16.msra.mxu1 %v4985_v25  ;;  %v5480_v31 = vshrl.u32 %v211_v27, 7  ;;  %v5486_v36 = vld [vmem:[%s5402_s4] sm:$0x7]  ;;  %4845 = vset.pattern.permute.xlu0 %v5277_v58  ;;  %s5278_s29 = smov 96   ;;  %s5282_s15 = smov 8   ;;  %vm918_vm14 = vcmask 195584  }
  0x39   :  { %4424 = vmatprep.subr.bf16.mxu1 %v5272_v1  ;;  %v5491_v39 = vld [vmem:[%s5407_s25] sm:$0x7]  ;;  %4844 = vset.pattern.permute.xlu1 %v5277_v58  ;;  %s5283_s16 = smov 16   ;;  %s5284_s18 = smov 24  }
  0x3a   :  { %v5483_v35 = vsub.s32 0, %v5480_v31  ;;  %v4144_v49 = vld [vmem:[%s5337_s8] ss:$0 sm:$0xff]  ;;  %v5554_v25 = vsub.s32 2, %v5480_v31  ;;  %s6349_s22 = sld [smem:[#allocation10_spill]]  ;;  %s6350_s23 = sld [smem:[#allocation9_spill]] }
  0x3b   :  { %s6351_s26 = sld [smem:[#allocation8_spill]]  ;;  %s6352_s28 = sld [smem:[#allocation11_spill]] }
  0x3c   :  { %4425 = vmatpush3.bf16.msra.mxu1 %v4986_v26  ;;  %v288_v37 = vrot.slane %v5486_v36, %v5483_v35  ;;  %v300_v43 = vrot.slane %v5491_v39, %v5483_v35  ;;  %s6353_s1 = sld [smem:[#allocation12_spill]]  ;;  %s6354_s2 = sld [smem:[#allocation13_spill]] }
  0x3d   :  { %4436 = vmatprep.subr.bf16.mxu1 %v5272_v1  ;;  %s6355_s7 = sld [smem:[#allocation15_spill]]  ;;  %s6356_s10 = sld [smem:[#allocation14_spill]] }
  0x3e   :  { %s6357_s11 = sld [smem:[#allocation16_spill]] }
 0x107   :  { %v181_v3 = vpop.f32.mrb[0].mxu0 }
 0x108   :  { %v188_v5 = vmul.f32 5.656854, %v181_v3  ;;  %v4420_v6 = vpop.f32.mrb[1].mxu0 }
 0x109   :  { %v184_v7 = vpop.f32.mrb[2].mxu0 }
 0x10a   :  { %v5463_v9 = vadd.f32 %v190_v4, %v188_v5  ;;  %v189_v10 = vmul.f32 5.656854, %v184_v7  ;;  %v4421_v11 = vpop.f32.mrb[3].mxu0  ;;  %v197_v7 = vld [vmem:[%s5312_s17] sm:$0xff] }
 0x10c   :  { %v5465_v12 = vadd.f32 %v191_v8, %v189_v10  ;;  %v264_v13 = vsel %vm263_vm2, %v5463_v9, 0.0 }
 0x10d   :  { %265 = vadd.xlane.f32.xlu0 %v264_v13  ;;  %v198_v13 = vld [vmem:[%s5312_s17 + $0x8] sm:$0xff] }
 0x10e   :  { %v267_v14 = vsel %vm263_vm2, %v5465_v12, 0.0 }
 0x111   :  { %268 = vadd.xlane.f32.xlu0 %v267_v14  ;;  %v5279_v14 = vmov 1  }
 0x19a   :  { %v266_v15 = vpop.xlane.xlu0 %265 }
 0x19b   :  { %v271_v16 = vmul.f32 0.03125, %v266_v15 }
 0x19d   :  { %v273_v17 = vsub.f32 %v5463_v9, %v271_v16 }
 0x19e   :  { %v269_v18 = vpop.xlane.xlu0 %268 }
 0x19f   :  { %v272_v19 = vmul.f32 0.03125, %v269_v18  ;;  %v275_v20 = vmul.f32 %v273_v17, %v273_v17  ;;  %v289_v40 = vmul.f32 %v288_v37, %v273_v17 }
 0x1a1   :  { %v274_v21 = vsub.f32 %v5465_v12, %v272_v19  ;;  %v277_v22 = vsel %vm263_vm2, %v275_v20, 0.0 }
 0x1a2   :  { %278 = vadd.xlane.f32.xlu1 %v277_v22  ;;  %v199_v22 = vld [vmem:[%s5317_s21] sm:$0x7]  ;;  %s5281_s21 = smov 64  }
 0x1a3   :  { %v276_v23 = vmul.f32 %v274_v21, %v274_v21  ;;  %v290_v41 = vmul.f32 %v288_v37, %v274_v21  ;;  %vm233_vm4 = vcmp.gt.f32.partialorder %v199_v22, 0.5  ;;  %v214_v26 = vrot.slane %v199_v22, %v5483_v35 }
 0x1a5   :  { %v280_v24 = vsel %vm263_vm2, %v276_v23, 0.0  ;;  %v5551_v23 = vsub.s32 1, %v5480_v31  ;;  %v5280_v31 = vmov -1e+09  }
 0x1a6   :  { %281 = vadd.xlane.f32.xlu1 %v280_v24 }
 0x22f   :  { %v279_v28 = vpop.xlane.xlu1 %278 }
 0x230   :  { %v283_v29 = vmul.f32 0.03125, %v279_v28  ;;  %v228_v28 = vrot.slane %v199_v22, %v5551_v23 }
 0x232   :  { %v291_v30 = vadd.f32 1e-06, %v283_v29  ;;  %v234_v29 = vsel %vm233_vm4, 1, %v5277_v58 }
 0x233   :  { %v282_v32 = vpop.xlane.xlu1 %281 }
 0x234   :  { %5022 = vrsqrt.f32 %v291_v30  ;;  %v284_v33 = vmul.f32 0.03125, %v282_v32  ;;  %v238_v30 = vrot.slane %v234_v29, %v5554_v25 }
 0x236   :  { %v292_v34 = vadd.f32 1e-06, %v284_v33  ;;  %vm239_vm9 = vcmp.eq.s32.totalorder %v238_v30, 1 }
 0x238   :  { %5024 = vrsqrt.f32 %v292_v34 }
 0x23e   :  { %v5023_v38 = vpop.eup %5022 }
 0x23f   :  { %v295_v42 = vmul.f32 %v5023_v38, %v289_v40 }
 0x241   :  { %v301_v46 = vadd.f32 %v300_v43, %v295_v42 }
 0x242   :  { %v5025_v44 = vpop.eup %5024 }
 0x243   :  { %v296_v45 = vmul.f32 %v5025_v44, %v290_v41 }
 0x245   :  { %v302_v47 = vadd.f32 %v300_v43, %v296_v45 }
 0x247   :  { %v303_v48 = vpack.c.bf16 %v302_v47, %v301_v46 }
 0x249   :  { %4427 = vmatmul.mubr.msk.bf16.vlgmr.msra.gmra.mrb[0].mxu1 %vm263_vm2, %v303_v48 }
 0x24a   :  { %4438 = vmatprep.mubr.msk.bf16.mxu1 %vm5273_vm0, %v5272_v1 }
 0x31c   :  { %v362_v50 = vpop.f32.mrb[0].mxu1 }
 0x31d   :  { %v4428_v51 = vpop.f32.mrb[1].mxu1  ;;  %v363_v53 = vadd.f32 %v4144_v49, %v362_v50 }
 0x31e   :  { %v365_v52 = vpop.f32.mrb[2].mxu1 }
 0x31f   :  { %v366_v54 = vadd.f32 %v4144_v49, %v365_v52  ;;  %v4429_v55 = vpop.f32.mrb[3].mxu1 }
 0x321   :  { %v4834_v56 = vpack.i.bf16 %v366_v54, %v363_v53  ;;  %v5499_v57 = vpack.c.bf16 %v366_v54, %v363_v53 }
 0x323   :  { %4835 = vrot.lane.b32.xlu1 %v4834_v56, %s5274_s0  ;;  %4830 = vrot.lane.b32.xlu0 %v4834_v56, %s5275_s5 }
 0x327   :  { %4840 = vrot.lane.b32.xlu1 %v4834_v56, %s5276_s9 }
 0x32b   :  { %394 = vrot.lane.b32.xlu1 %v5499_v57, %s5278_s29 }
 0x395   :  { %v4836_v59 = vpop.permute.xlu1 %4835  ;;  %v4831_v60 = vpop.permute.xlu0 %4830 }
 0x396   :  { %v4838_v61 = vunpack.i.h.bf16 %v4836_v59  ;;  %v4837_v62 = vunpack.i.l.bf16 %v4836_v59  ;;  %v4833_v63 = vunpack.i.h.bf16 %v4831_v60  ;;  %v4832_v0 = vunpack.i.l.bf16 %v4831_v60 }
 0x398   :  { %v5508_v2 = vpack.c.bf16 %v4833_v63, %v4832_v0  ;;  %v5510_v3 = vpack.c.bf16 %v4838_v61, %v4837_v62 }
 0x399   :  { %v4841_v4 = vpop.permute.xlu1 %4840 }
 0x39a   :  { %v4843_v5 = vunpack.i.h.bf16 %v4841_v4  ;;  %v4842_v6 = vunpack.i.l.bf16 %v4841_v4  ;;  %445 = vrot.lane.b32.xlu0 %v5508_v2, %s5278_s29  ;;  %495 = vrot.lane.b32.xlu1 %v5510_v3, %s5278_s29 }
 0x39c   :  { %v5517_v8 = vpack.c.bf16 %v4843_v5, %v4842_v6 }
 0x39d   :  { %v395_v10 = vpop.permute.xlu1 %394 }
 0x39e   :  { %v401_v11 = vsel %vm396_vm3, %v395_v10, 0  ;;  %545 = vrot.lane.b32.xlu0 %v5517_v8, %s5278_s29  ;;  %203 = vperm.xlu1 %4844, %v197_v7  }
 0x39f   :  { %4431 = vmatpush3.bf16.xpose.msra.mxu0 %v401_v11 }
 0x3a0   :  { %4442 = vmatprep.subr.bf16.mxu0 %v5272_v1 }
 0x3a2   :  { %4846 = vset.pattern.permute.xlu1 %v5279_v14  ;;  %208 = vperm.xlu0 %4845, %v198_v13  }
 0x3a3   :  { %218 = vperm.xlu1 %4846, %v197_v7  }
 0x3a6   :  { %4433 = vmatmul.mubr.msk.bf16.vlgmr.msra.gmra.mrb[4].mxu0 %vm396_vm3, %v5499_v57 }
 0x3a7   :  { %222 = vperm.xlu1 %4846, %v198_v13   ;;  %4444 = vmatprep.mubr.msk.bf16.mxu0 %vm5273_vm0, %v5272_v1 }
 0x3ab   :  { %4982 = vset.pattern.permute.xlu1 %v5277_v58 }
 0x40c   :  { %v446_v15 = vpop.permute.xlu0 %445  ;;  %v496_v16 = vpop.permute.xlu1 %495 }
 0x40d   :  { %v451_v17 = vsel %vm396_vm3, %v446_v15, 0  ;;  %v501_v18 = vsel %vm396_vm3, %v496_v16, 0 }
 0x40e   :  { %4437 = vmatpush3.bf16.xpose.msra.mxu1 %v451_v17  ;;  %4443 = vmatpush3.bf16.xpose.msra.mxu0 %v501_v18 }
 0x40f   :  { %4448 = vmatprep.subr.bf16.mxu1 %v5272_v1  ;;  %4454 = vmatprep.subr.bf16.mxu0 %v5272_v1 }
 0x410   :  { %v546_v19 = vpop.permute.xlu0 %545 }
 0x411   :  { %v551_v20 = vsel %vm396_vm3, %v546_v19, 0 }
 0x415   :  { %4439 = vmatmul.mubr.msk.bf16.vlgmr.msra.gmra.mrb[4].mxu1 %vm396_vm3, %v5508_v2  ;;  %4445 = vmatmul.mubr.msk.bf16.vlgmr.msra.gmra.mrb[8].mxu0 %vm396_vm3, %v5510_v3 }
 0x416   :  { %4449 = vmatpush3.bf16.xpose.msra.mxu1 %v551_v20  ;;  %4450 = vmatprep.mubr.msk.bf16.mxu1 %vm5273_vm0, %v5272_v1 }
 0x417   :  { %4460 = vmatprep.subr.bf16.mxu1 %v5272_v1  ;;  %4456 = vmatprep.mubr.msk.bf16.mxu0 %vm5273_vm0, %v5272_v1 }
 0x41d   :  { %4451 = vmatmul.mubr.msk.bf16.vlgmr.msra.gmra.mrb[8].mxu1 %vm396_vm3, %v5517_v8  ;;  %v5547_v21 = vpop.permute.xlu1 %203 }
 0x41e   :  { %4462 = vmatprep.mubr.msk.bf16.mxu1 %vm5273_vm0, %v5272_v1  ;;  %vm215_vm5 = vcmp.eq.f32.partialorder %v5547_v21, %v214_v26 }
 0x421   :  { %v5560_v32 = vpop.permute.xlu0 %208 }
 0x422   :  { %v219_v24 = vpop.permute.xlu1 %218  ;;  %vm216_vm7 = vcmp.eq.f32.partialorder %v5560_v32, %v214_v26 }
 0x423   :  { %vm229_vm6 = vcmp.ge.f32.partialorder %v219_v24, %v228_v28 }
 0x424   :  { %vm231_vm10 = vmand %vm215_vm5, %vm229_vm6 }
 0x425   :  { %vm240_vm12 = vmand %vm231_vm10, %vm239_vm9  ;;  %vm2004_vm10 = vcmask 523264  }
 0x426   :  { %v223_v33 = vpop.permute.xlu1 %222  ;;  %v5565_v34 = vsel %vm240_vm12, 0.0, %v5280_v31 }
 0x427   :  { %vm230_vm8 = vcmp.ge.f32.partialorder %v223_v33, %v228_v28 }
 0x428   :  { %vm232_vm11 = vmand %vm216_vm7, %vm230_vm8 }
 0x429   :  { %vm241_vm13 = vmand %vm232_vm11, %vm239_vm9  ;;  %vm1558_vm9 = vcmask 1043456  }
 0x42a   :  { %v5568_v41 = vsel %vm241_vm13, 0.0, %v5280_v31 }
 0x479   :  { %v437_v37 = vpop.f32.mrb[4].mxu0 }
 0x47a   :  { %v594_v38 = vmul.f32 0.35355338, %v437_v37  ;;  %v4434_v40 = vpop.f32.mrb[5].mxu0 }
 0x47b   :  { %v440_v42 = vpop.f32.mrb[6].mxu0 }
 0x47c   :  { %v595_v43 = vmul.f32 0.35355338, %v440_v42  ;;  %v4435_v44 = vpop.f32.mrb[7].mxu0  ;;  %v602_v45 = vadd.f32 %v594_v38, %v5565_v34 }
 0x47e   :  { %v610_v46 = vsel %vm143_vm1, %v602_v45, -inf  ;;  %v603_v47 = vadd.f32 %v595_v43, %v5568_v41 }
 0x47f   :  { %611 = vmax.xlane.f32.xlu0 %v610_v46 }
 0x480   :  { %v613_v48 = vsel %vm143_vm1, %v603_v47, -inf }
 0x481   :  { %614 = vmax.xlane.f32.xlu1 %v613_v48 }
 0x4e8   :  { %v487_v49 = vpop.f32.mrb[4].mxu1  ;;  %v537_v50 = vpop.f32.mrb[8].mxu0 }
 0x4e9   :  { %v596_v51 = vmul.f32 0.35355338, %v487_v49  ;;  %v4440_v52 = vpop.f32.mrb[5].mxu1  ;;  %v4446_v53 = vpop.f32.mrb[9].mxu0  ;;  %v598_v63 = vmul.f32 0.35355338, %v537_v50 }
 0x4ea   :  { %v490_v54 = vpop.f32.mrb[6].mxu1  ;;  %v540_v55 = vpop.f32.mrb[10].mxu0 }
 0x4eb   :  { %v597_v56 = vmul.f32 0.35355338, %v490_v54  ;;  %v599_v59 = vmul.f32 0.35355338, %v540_v55  ;;  %v4441_v60 = vpop.f32.mrb[7].mxu1  ;;  %v4447_v61 = vpop.f32.mrb[11].mxu0  ;;  %v604_v62 = vadd.f32 %v596_v51, %v5565_v34  ;;  %v606_v14 = vadd.f32 %v598_v63, %v5565_v34 }
 0x4ed   :  { %v616_v0 = vsel %vm143_vm1, %v604_v62, -inf  ;;  %v607_v4 = vadd.f32 %v599_v59, %v5568_v41  ;;  %v605_v5 = vadd.f32 %v597_v56, %v5568_v41  ;;  %v622_v18 = vsel %vm143_vm1, %v606_v14, -inf }
 0x4ee   :  { %617 = vmax.xlane.f32.xlu0 %v616_v0 }
 0x4ef   :  { %v625_v6 = vsel %vm143_vm1, %v607_v4, -inf  ;;  %v619_v13 = vsel %vm143_vm1, %v605_v5, -inf }
 0x4f0   :  { %v587_v7 = vpop.f32.mrb[8].mxu1  ;;  %626 = vmax.xlane.f32.xlu1 %v625_v6 }
 0x4f1   :  { %v600_v10 = vmul.f32 0.35355338, %v587_v7  ;;  %v4452_v11 = vpop.f32.mrb[9].mxu1 }
 0x4f2   :  { %v590_v15 = vpop.f32.mrb[10].mxu1  ;;  %620 = vmax.xlane.f32.xlu0 %v619_v13 }
 0x4f3   :  { %v601_v16 = vmul.f32 0.35355338, %v590_v15  ;;  %v4453_v17 = vpop.f32.mrb[11].mxu1  ;;  %v608_v20 = vadd.f32 %v600_v10, %v5565_v34 }
 0x4f5   :  { %v609_v19 = vadd.f32 %v601_v16, %v5568_v41  ;;  %v628_v24 = vsel %vm143_vm1, %v608_v20, -inf }
 0x4f6   :  { %623 = vmax.xlane.f32.xlu0 %v622_v18 }
 0x4f7   :  { %v631_v22 = vsel %vm143_vm1, %v609_v19, -inf }
 0x4f8   :  { %632 = vmax.xlane.f32.xlu1 %v631_v22 }
 0x4fa   :  { %629 = vmax.xlane.f32.xlu0 %v628_v24 }
 0x50c   :  { %v612_v26 = vpop.xlane.xlu0 %611 }
 0x50d   :  { %v634_v28 = vsub.f32 %v602_v45, %v612_v26 }
 0x50e   :  { %v615_v29 = vpop.xlane.xlu1 %614 }
 0x50f   :  { %v642_v30 = vmul.f32 1.442695, %v634_v28  ;;  %v635_v33 = vsub.f32 %v603_v47, %v615_v29 }
 0x511   :  { %5026 = vpow2.f32 %v642_v30  ;;  %v644_v37 = vmul.f32 1.442695, %v635_v33 }
 0x513   :  { %5028 = vpow2.f32 %v644_v37 }
 0x51b   :  { %v5586_v38 = vpop.eup %5026 }
 0x51c   :  { %v658_v40 = vsel %vm143_vm1, %v5586_v38, 0.0 }
 0x51d   :  { %v5590_v42 = vpop.eup %5028  ;;  %659 = vadd.xlane.f32.xlu0 %v658_v40 }
 0x51e   :  { %v661_v43 = vsel %vm143_vm1, %v5590_v42, 0.0 }
 0x51f   :  { %662 = vadd.xlane.f32.xlu1 %v661_v43 }
 0x57b   :  { %v618_v44 = vpop.xlane.xlu0 %617 }
 0x57c   :  { %v636_v45 = vsub.f32 %v604_v62, %v618_v44 }
 0x57d   :  { %v627_v46 = vpop.xlane.xlu1 %626 }
 0x57e   :  { %v646_v48 = vmul.f32 1.442695, %v636_v45  ;;  %v639_v47 = vsub.f32 %v607_v4, %v627_v46 }
 0x57f   :  { %v621_v49 = vpop.xlane.xlu0 %620 }
 0x580   :  { %5030 = vpow2.f32 %v646_v48  ;;  %v637_v50 = vsub.f32 %v605_v5, %v621_v49  ;;  %v652_v51 = vmul.f32 1.442695, %v639_v47 }
 0x582   :  { %v648_v52 = vmul.f32 1.442695, %v637_v50 }
 0x583   :  { %v624_v53 = vpop.xlane.xlu0 %623 }
 0x584   :  { %5032 = vpow2.f32 %v648_v52  ;;  %v638_v54 = vsub.f32 %v606_v14, %v624_v53 }
 0x585   :  { %5034 = vpow2.f32 %v652_v51  ;;  %v633_v13 = vpop.xlane.xlu1 %632 }
 0x586   :  { %v650_v55 = vmul.f32 1.442695, %v638_v54  ;;  %v641_v14 = vsub.f32 %v609_v19, %v633_v13 }
 0x587   :  { %v630_v56 = vpop.xlane.xlu0 %629 }
 0x588   :  { %5036 = vpow2.f32 %v650_v55  ;;  %v640_v59 = vsub.f32 %v608_v20, %v630_v56  ;;  %v656_v15 = vmul.f32 1.442695, %v641_v14 }
 0x58a   :  { %v5031_v60 = vpop.eup %5030  ;;  %v654_v61 = vmul.f32 1.442695, %v640_v59 }
 0x58b   :  { %v664_v62 = vsel %vm143_vm1, %v5031_v60, 0.0 }
 0x58c   :  { %5038 = vpow2.f32 %v654_v61  ;;  %665 = vadd.xlane.f32.xlu0 %v664_v62 }
 0x58d   :  { %5040 = vpow2.f32 %v656_v15 }
 0x58e   :  { %v5033_v63 = vpop.eup %5032 }
 0x58f   :  { %v667_v0 = vsel %vm143_vm1, %v5033_v63, 0.0  ;;  %v5035_v4 = vpop.eup %5034 }
 0x590   :  { %668 = vadd.xlane.f32.xlu1 %v667_v0  ;;  %v673_v7 = vsel %vm143_vm1, %v5035_v4, 0.0 }
 0x592   :  { %v5037_v5 = vpop.eup %5036 }
 0x593   :  { %v670_v6 = vsel %vm143_vm1, %v5037_v5, 0.0 }
 0x594   :  { %671 = vadd.xlane.f32.xlu0 %v670_v6  ;;  %674 = vadd.xlane.f32.xlu1 %v673_v7 }
 0x596   :  { %v5598_v10 = vpop.eup %5038 }
 0x597   :  { %v676_v11 = vsel %vm143_vm1, %v5598_v10, 0.0  ;;  %v5041_v16 = vpop.eup %5040 }
 0x598   :  { %677 = vadd.xlane.f32.xlu0 %v676_v11  ;;  %v679_v17 = vsel %vm143_vm1, %v5041_v16, 0.0 }
 0x5a5   :  { %749 = vrot.lane.b32.xlu1 %v5508_v2, %s5281_s21 }
 0x5a9   :  { %796 = vrot.lane.b32.xlu1 %v5510_v3, %s5281_s21 }
 0x5aa   :  { %v660_v18 = vpop.xlane.xlu0 %659 }
 0x5ac   :  { %v663_v20 = vpop.xlane.xlu1 %662 }
 0x5ad   :  { %5042 = vrcp.f32 %v663_v20 }
 0x5ae   :  { %702 = vrot.lane.b32.xlu0 %v5499_v57, %s5281_s21  ;;  %5044 = vrcp.f32 %v660_v18 }
 0x5b7   :  { %v5043_v19 = vpop.eup %5042 }
 0x5b8   :  { %v5045_v24 = vpop.eup %5044 }
 0x5b9   :  { %v690_v33 = vmul.f32 %v5045_v24, %v5586_v38 }
 0x5cd   :  { %680 = vadd.xlane.f32.xlu1 %v679_v17 }
 0x5de   :  { %843 = vrot.lane.b32.xlu1 %v5517_v8, %s5281_s21  ;;  %v691_v8 = vmul.f32 %v5043_v19, %v5590_v42 }
 0x5e0   :  { %v698_v44 = vpack.c.bf16 %v691_v8, %v690_v33 }
 0x619   :  { %v666_v2 = vpop.xlane.xlu0 %665 }
 0x61a   :  { %5046 = vrcp.f32 %v666_v2 }
 0x61d   :  { %v669_v3 = vpop.xlane.xlu1 %668 }
 0x61e   :  { %5048 = vrcp.f32 %v669_v3 }
 0x621   :  { %v672_v57 = vpop.xlane.xlu0 %671  ;;  %v675_v22 = vpop.xlane.xlu1 %674 }
 0x622   :  { %5050 = vrcp.f32 %v672_v57 }
 0x623   :  { %5052 = vrcp.f32 %v675_v22 }
 0x624   :  { %v5047_v29 = vpop.eup %5046 }
 0x625   :  { %v678_v26 = vpop.xlane.xlu0 %677  ;;  %v750_v28 = vpop.permute.xlu1 %749  ;;  %v692_v37 = vmul.f32 %v5047_v29, %v5031_v60 }
 0x626   :  { %4461 = vmatpush3.bf16.msra.mxu1 %v750_v28  ;;  %5054 = vrcp.f32 %v678_v26 }
 0x627   :  { %4472 = vmatprep.subr.bf16.mxu1 %v5272_v1 }
 0x628   :  { %v5049_v30 = vpop.eup %5048 }
 0x629   :  { %v693_v40 = vmul.f32 %v5049_v30, %v5033_v63  ;;  %v703_v43 = vpop.permute.xlu0 %702  ;;  %v797_v47 = vpop.permute.xlu1 %796 }
 0x62a   :  { %4455 = vmatpush3.bf16.msra.mxu0 %v703_v43 }
 0x62b   :  { %v699_v45 = vpack.c.bf16 %v693_v40, %v692_v37  ;;  %4466 = vmatprep.subr.bf16.mxu0 %v5272_v1 }
 0x62c   :  { %v5051_v46 = vpop.eup %5050 }
 0x62d   :  { %v5053_v48 = vpop.eup %5052  ;;  %4457 = vmatmul.mubr.msk.bf16.vlgmr.msra.gmra.mrb[12].mxu0 %vm143_vm1, %v698_v44  ;;  %4463 = vmatmul.mubr.msk.bf16.vlgmr.msra.gmra.mrb[12].mxu1 %vm143_vm1, %v699_v45  ;;  %v694_v38 = vmul.f32 %v5051_v46, %v5037_v5 }
 0x62e   :  { %4467 = vmatpush3.bf16.msra.mxu0 %v797_v47  ;;  %4468 = vmatprep.mubr.msk.bf16.mxu0 %vm5273_vm0, %v5272_v1  ;;  %v695_v42 = vmul.f32 %v5053_v48, %v5035_v4  ;;  %v4987_v4 = vld [vmem:[%s5362_s6] sm:$0xff]  }
 0x62f   :  { %4474 = vmatprep.mubr.msk.bf16.mxu1 %vm5273_vm0, %v5272_v1  ;;  %4478 = vmatprep.subr.bf16.mxu0 %v5272_v1  ;;  %v4159_v47 = vld [vmem:[%s5367_s12] ss:$0 sm:$0xff] }
 0x630   :  { %v700_v49 = vpack.c.bf16 %v695_v42, %v694_v38  ;;  %v5055_v52 = vpop.eup %5054 }
 0x631   :  { %v696_v54 = vmul.f32 %v5055_v52, %v5598_v10 }
 0x635   :  { %4469 = vmatmul.mubr.msk.bf16.vlgmr.msra.gmra.mrb[16].mxu0 %vm143_vm1, %v700_v49 }
 0x636   :  { %4482 = vmatprep.mubr.msk.bf16.mxu0 %vm5273_vm0, %v5272_v1  ;;  %4479 = vmatpush3.bf16.msra.mxu0 %v4987_v4 }
 0x637   :  { %4480 = vmatprep.subr.bf16.mxu0 %v5272_v1 }
 0x65a   :  { %v681_v50 = vpop.xlane.xlu1 %680 }
 0x65b   :  { %5056 = vrcp.f32 %v681_v50 }
 0x65e   :  { %v844_v51 = vpop.permute.xlu1 %843 }
 0x65f   :  { %4473 = vmatpush3.bf16.msra.mxu1 %v844_v51 }
 0x660   :  { %4486 = vmatprep.subr.bf16.mxu1 %v5272_v1 }
 0x665   :  { %v5057_v53 = vpop.eup %5056 }
 0x666   :  { %v697_v55 = vmul.f32 %v5057_v53, %v5041_v16  ;;  %v4988_v16 = vld [vmem:[%s5362_s6 + $0x8] sm:$0xff]  }
 0x667   :  { %4481 = vmatpush3.bf16.msra.mxu0 %v4988_v16 }
 0x668   :  { %v701_v56 = vpack.c.bf16 %v697_v55, %v696_v54 }
 0x66a   :  { %4475 = vmatmul.mubr.msk.bf16.vlgmr.msra.gmra.mrb[16].mxu1 %vm143_vm1, %v701_v56  ;;  %v4989_v56 = vld [vmem:[%s5352_s24] sm:$0xff]  }
 0x66b   :  { %4490 = vmatprep.mubr.msk.bf16.mxu1 %vm5273_vm0, %v5272_v1  ;;  %4494 = vmatprep.subr.bf16.mxu0 %v4989_v56 }
 0x700   :  { %v742_v59 = vpop.f32.mrb[12].mxu0  ;;  %v789_v60 = vpop.f32.mrb[12].mxu1 }
 0x701   :  { %v4458_v61 = vpop.f32.mrb[13].mxu0  ;;  %v4464_v62 = vpop.f32.mrb[13].mxu1 }
 0x702   :  { %v745_v63 = vpop.f32.mrb[14].mxu0  ;;  %v792_v0 = vpop.f32.mrb[14].mxu1 }
 0x703   :  { %v4847_v5 = vpack.i.bf16 %v792_v0, %v789_v60  ;;  %v4459_v6 = vpop.f32.mrb[15].mxu0  ;;  %v4465_v7 = vpop.f32.mrb[15].mxu1 }
 0x705   :  { %4848 = vrot.lane.b32.xlu0 %v4847_v5, %s5282_s15 }
 0x708   :  { %v836_v10 = vpop.f32.mrb[16].mxu0 }
 0x709   :  { %v4470_v11 = vpop.f32.mrb[17].mxu0 }
 0x70a   :  { %v839_v13 = vpop.f32.mrb[18].mxu0  ;;  %v4993_v11 = vld [vmem:[%s5342_s14] sm:$0xff]  }
 0x70b   :  { %v4852_v14 = vpack.i.bf16 %v839_v13, %v836_v10  ;;  %v4471_v15 = vpop.f32.mrb[19].mxu0  ;;  %4487 = vmatpush3.bf16.msra.mxu1 %v4993_v11  ;;  %v4994_v13 = vld [vmem:[%s5342_s14 + $0x8] sm:$0xff]  }
 0x70c   :  { %4488 = vmatprep.subr.bf16.mxu1 %v5272_v1 }
 0x70d   :  { %4853 = vrot.lane.b32.xlu1 %v4852_v14, %s5283_s16  ;;  %v4164_v14 = vld [vmem:[%s6349_s22] ss:$0 sm:$0xff] }
 0x70f   :  { %4489 = vmatpush3.bf16.msra.mxu1 %v4994_v13 }
 0x710   :  { %4502 = vmatprep.subr.bf16.mxu1 %v5272_v1 }
 0x73d   :  { %v883_v17 = vpop.f32.mrb[16].mxu1 }
 0x73e   :  { %v4476_v18 = vpop.f32.mrb[17].mxu1 }
 0x73f   :  { %v886_v20 = vpop.f32.mrb[18].mxu1 }
 0x740   :  { %v4857_v2 = vpack.i.bf16 %v886_v20, %v883_v17  ;;  %v4477_v3 = vpop.f32.mrb[19].mxu1 }
 0x742   :  { %4858 = vrot.lane.b32.xlu0 %v4857_v2, %s5284_s18 }
 0x777   :  { %v4849_v57 = vpop.permute.xlu0 %4848 }
 0x778   :  { %v4851_v19 = vunpack.i.h.bf16 %v4849_v57  ;;  %v4850_v24 = vunpack.i.l.bf16 %v4849_v57 }
 0x77a   :  { %v914_v8 = vsel %vm396_vm3, %v742_v59, %v4850_v24  ;;  %v915_v30 = vsel %vm396_vm3, %v745_v63, %v4851_v19  ;;  %v4991_v59 = vld [vmem:[%s5307_s13] sm:$0xff]  }
 0x77f   :  { %v4854_v22 = vpop.permute.xlu1 %4853 }
 0x780   :  { %v4856_v26 = vunpack.i.h.bf16 %v4854_v22  ;;  %v4855_v28 = vunpack.i.l.bf16 %v4854_v22 }
 0x782   :  { %v917_v40 = vsel %vm143_vm1, %v915_v30, %v4856_v26  ;;  %v916_v43 = vsel %vm143_vm1, %v914_v8, %v4855_v28  ;;  %v1014_v30 = vrot.slane %v5486_v36, %v5551_v23 }
 0x7b4   :  { %v4859_v29 = vpop.permute.xlu0 %4858 }
 0x7b5   :  { %v4861_v33 = vunpack.i.h.bf16 %v4859_v29  ;;  %v4860_v37 = vunpack.i.l.bf16 %v4859_v29 }
 0x7b7   :  { %v919_v44 = vsel %vm918_vm14, %v916_v43, %v4860_v37  ;;  %v920_v45 = vsel %vm918_vm14, %v917_v40, %v4861_v33 }
 0x7b8   :  { %v921_v46 = vpack.c.bf16 %v920_v45, %v919_v44  ;;  %v1026_v44 = vrot.slane %v5491_v39, %v5551_v23 }
 0x7ba   :  { %4483 = vmatmul.mubr.msk.bf16.vlgmr.msra.gmra.mrb[20].mxu0 %vm263_vm2, %v921_v46 }
 0x7bb   :  { %4498 = vmatprep.mubr.msk.bf16.mxu0 %vm263_vm2, %v4991_v59  ;;  %4495 = vmatpush3.bf16.msra.mxu0 %v4989_v56 }
 0x88d   :  { %v975_v48 = vpop.f32.mrb[20].mxu0 }
 0x88e   :  { %v982_v38 = vadd.f32 %v975_v48, %v5463_v9  ;;  %v4484_v42 = vpop.f32.mrb[21].mxu0  ;;  %v4990_v9 = vld [vmem:[%s5352_s24 + $0x8] sm:$0xff]  }
 0x88f   :  { %v978_v49 = vpop.f32.mrb[22].mxu0  ;;  %4496 = vmatprep.subr.bf16.mxu0 %v4990_v9 }
 0x890   :  { %v5645_v50 = vadd.f32 %v4159_v47, %v982_v38  ;;  %v983_v51 = vadd.f32 %v978_v49, %v5465_v12  ;;  %v4485_v52 = vpop.f32.mrb[23].mxu0  ;;  %v4992_v12 = vld [vmem:[%s5307_s13 + $0x8] ss:$0 sps:$4 sm:$0xff]   ;;  %4497 = vmatpush3.bf16.msra.mxu0 %v4990_v9 }
 0x891   :  { %4510 = vmatprep.subr.bf16.mxu0 %v5272_v1 }
 0x892   :  { %v5648_v53 = vadd.f32 %v4159_v47, %v983_v51  ;;  %v991_v54 = vsel %vm263_vm2, %v5645_v50, 0.0 }
 0x893   :  { %992 = vadd.xlane.f32.xlu1 %v991_v54  ;;  %4499 = vmatmul.mubr.msk.bf16.vlgmr.msra.gmra.mrb[24].mxu0 %vm263_vm2, %v4992_v12 }
 0x894   :  { %v994_v55 = vsel %vm263_vm2, %v5648_v53, 0.0  ;;  %4514 = vmatprep.mubr.msk.bf16.mxu0 %vm5273_vm0, %v5272_v1 }
 0x895   :  { %995 = vadd.xlane.f32.xlu0 %v994_v55 }
 0x920   :  { %v993_v60 = vpop.xlane.xlu1 %992 }
 0x921   :  { %v997_v61 = vmul.f32 0.03125, %v993_v60 }
 0x922   :  { %v996_v62 = vpop.xlane.xlu0 %995 }
 0x923   :  { %v999_v63 = vsub.f32 %v5645_v50, %v997_v61  ;;  %v998_v0 = vmul.f32 0.03125, %v996_v62  ;;  %v4160_v62 = vld [vmem:[%s6350_s23] ss:$0 sm:$0xff] }
 0x925   :  { %v1000_v4 = vsub.f32 %v5648_v53, %v998_v0  ;;  %v1001_v5 = vmul.f32 %v999_v63, %v999_v63  ;;  %v1015_v37 = vmul.f32 %v1014_v30, %v999_v63 }
 0x927   :  { %v1003_v6 = vsel %vm263_vm2, %v1001_v5, 0.0  ;;  %v1002_v7 = vmul.f32 %v1000_v4, %v1000_v4  ;;  %v1016_v40 = vmul.f32 %v1014_v30, %v1000_v4 }
 0x928   :  { %1004 = vadd.xlane.f32.xlu0 %v1003_v6 }
 0x929   :  { %v1006_v10 = vsel %vm263_vm2, %v1002_v7, 0.0 }
 0x92c   :  { %1007 = vadd.xlane.f32.xlu0 %v1006_v10 }
 0x966   :  { %v4500_v15 = vpop.f32.mrb[24].mxu0 }
 0x967   :  { %v5672_v16 = vadd.f32 %v4500_v15, %v4164_v14  ;;  %v1164_v17 = vpop.f32.mrb[25].mxu0 }
 0x968   :  { %v1165_v18 = vadd.f32 %v4164_v14, %v1164_v17  ;;  %v4501_v20 = vpop.f32.mrb[26].mxu0 }
 0x969   :  { %v1167_v2 = vpop.f32.mrb[27].mxu0  ;;  %1209 = vrot.lane.b32.xlu0 %v5672_v16, %s5275_s5  ;;  %v5695_v36 = vpack.c.bf16 %v5672_v16, %v5672_v16 }
 0x96a   :  { %v1168_v3 = vadd.f32 %v4164_v14, %v1167_v2 }
 0x96b   :  { %v1247_v39 = vsel %vm396_vm3, %v5695_v36, 0 }
 0x96c   :  { %v4862_v57 = vpack.i.bf16 %v1168_v3, %v1165_v18  ;;  %v5676_v22 = vpack.c.bf16 %v1168_v3, %v1165_v18 }
 0x96d   :  { %1218 = vrot.lane.b32.xlu0 %v5672_v16, %s5274_s0 }
 0x96e   :  { %4863 = vrot.lane.b32.xlu1 %v4862_v57, %s5275_s5  ;;  %v1244_v42 = vsel %vm396_vm3, %v5676_v22, 0 }
 0x972   :  { %4868 = vrot.lane.b32.xlu1 %v4862_v57, %s5274_s0 }
 0x976   :  { %4873 = vrot.lane.b32.xlu1 %v4862_v57, %s5276_s9 }
 0x9b5   :  { %v1005_v19 = vpop.xlane.xlu0 %1004 }
 0x9b6   :  { %v1009_v24 = vmul.f32 0.03125, %v1005_v19 }
 0x9b8   :  { %v1017_v26 = vadd.f32 1e-06, %v1009_v24 }
 0x9b9   :  { %v1008_v28 = vpop.xlane.xlu0 %1007 }
 0x9ba   :  { %5058 = vrsqrt.f32 %v1017_v26  ;;  %v1010_v29 = vmul.f32 0.03125, %v1008_v28 }
 0x9bc   :  { %v1018_v8 = vadd.f32 1e-06, %v1010_v29 }
 0x9be   :  { %5060 = vrsqrt.f32 %v1018_v8 }
 0x9c4   :  { %v5059_v33 = vpop.eup %5058 }
 0x9c5   :  { %v1021_v43 = vmul.f32 %v5059_v33, %v1015_v37 }
 0x9c7   :  { %v1027_v48 = vadd.f32 %v1026_v44, %v1021_v43 }
 0x9c8   :  { %v5061_v45 = vpop.eup %5060 }
 0x9c9   :  { %v1022_v46 = vmul.f32 %v5061_v45, %v1016_v40 }
 0x9cb   :  { %v1028_v47 = vadd.f32 %v1026_v44, %v1022_v46 }
 0x9cd   :  { %v1029_v38 = vpack.c.bf16 %v1028_v47, %v1027_v48  ;;  %v200_v47 = vld [vmem:[%s6351_s26] sm:$0x3] }
 0x9ce   :  { %vm250_vm15 = vcmp.gt.f32.partialorder %v200_v47, 0.5 }
 0x9cf   :  { %4491 = vmatmul.mubr.msk.bf16.vlgmr.msra.gmra.mrb[20].mxu1 %vm263_vm2, %v1029_v38  ;;  %v251_v38 = vsel %vm250_vm15, 1, %v5277_v58 }
 0x9d0   :  { %4503 = vmatpush3.bf16.xpose.msra.mxu1 %v1244_v42  ;;  %4506 = vmatprep.mubr.msk.bf16.mxu1 %vm5273_vm0, %v5272_v1  ;;  %v247_v42 = vrot.slane %v200_v47, %v5483_v35 }
 0x9d1   :  { %4504 = vmatprep.subr.bf16.mxu1 %v5272_v1 }
 0x9d2   :  { %vm248_vm5 = vcmp.eq.f32.partialorder %v5547_v21, %v247_v42  ;;  %vm249_vm6 = vcmp.eq.f32.partialorder %v5560_v32, %v247_v42 }
 0x9d8   :  { %4505 = vmatpush3.bf16.xpose.msra.mxu1 %v1247_v39  ;;  %v255_v39 = vrot.slane %v251_v38, %v5551_v23 }
 0x9d9   :  { %4518 = vmatprep.subr.bf16.mxu1 %v5272_v1 }
 0x9da   :  { %vm256_vm4 = vcmp.eq.s32.totalorder %v255_v39, 1 }
 0x9db   :  { %v1210_v56 = vpop.permute.xlu0 %1209  ;;  %vm257_vm7 = vmand %vm248_vm5, %vm256_vm4 }
 0x9dc   :  { %v5704_v9 = vpack.c.bf16 %v1210_v56, %v1210_v56  ;;  %vm258_vm8 = vmand %vm249_vm6, %vm256_vm4 }
 0x9de   :  { %v1297_v59 = vsel %vm396_vm3, %v5704_v9, 0 }
 0x9df   :  { %v1219_v15 = vpop.permute.xlu0 %1218 }
 0x9e0   :  { %v4864_v49 = vpop.permute.xlu1 %4863  ;;  %v5720_v17 = vpack.c.bf16 %v1219_v15, %v1219_v15 }
 0x9e1   :  { %v4866_v51 = vunpack.i.h.bf16 %v4864_v49  ;;  %v4865_v52 = vunpack.i.l.bf16 %v4864_v49 }
 0x9e2   :  { %v1347_v18 = vsel %vm396_vm3, %v5720_v17, 0 }
 0x9e3   :  { %v5700_v54 = vpack.c.bf16 %v4866_v51, %v4865_v52 }
 0x9e4   :  { %v4869_v12 = vpop.permute.xlu1 %4868 }
 0x9e5   :  { %v1294_v55 = vsel %vm396_vm3, %v5700_v54, 0  ;;  %v4871_v60 = vunpack.i.h.bf16 %v4869_v12  ;;  %v4870_v61 = vunpack.i.l.bf16 %v4869_v12 }
 0x9e6   :  { %4511 = vmatpush3.bf16.xpose.msra.mxu0 %v1294_v55  ;;  %v5755_v55 = vsel %vm257_vm7, 0.0, %v5280_v31 }
 0x9e7   :  { %4512 = vmatprep.subr.bf16.mxu0 %v5272_v1  ;;  %v5711_v5 = vpack.c.bf16 %v4871_v60, %v4870_v61  ;;  %v5759_v60 = vsel %vm258_vm8, 0.0, %v5280_v31 }
 0x9e8   :  { %v4874_v20 = vpop.permute.xlu1 %4873 }
 0x9e9   :  { %v1344_v14 = vsel %vm396_vm3, %v5711_v5, 0  ;;  %v4876_v2 = vunpack.i.h.bf16 %v4874_v20  ;;  %v4875_v3 = vunpack.i.l.bf16 %v4874_v20 }
 0x9eb   :  { %v5729_v24 = vpack.c.bf16 %v4876_v2, %v4875_v3 }
 0x9ed   :  { %v1394_v33 = vsel %vm396_vm3, %v5729_v24, 0 }
 0x9ee   :  { %4513 = vmatpush3.bf16.xpose.msra.mxu0 %v1297_v59 }
 0x9ef   :  { %4526 = vmatprep.subr.bf16.mxu0 %v5272_v1 }
 0xaa2   :  { %v1088_v63 = vpop.f32.mrb[20].mxu1 }
 0xaa3   :  { %v4492_v0 = vpop.f32.mrb[21].mxu1  ;;  %v1089_v6 = vadd.f32 %v4160_v62, %v1088_v63 }
 0xaa4   :  { %v1091_v4 = vpop.f32.mrb[22].mxu1 }
 0xaa5   :  { %v1092_v7 = vadd.f32 %v4160_v62, %v1091_v4  ;;  %v4493_v10 = vpop.f32.mrb[23].mxu1 }
 0xaa7   :  { %v1198_v11 = vpack.c.bf16 %v1092_v7, %v1089_v6  ;;  %v4882_v13 = vpack.i.bf16 %v1092_v7, %v1089_v6 }
 0xaa9   :  { %4883 = vrot.lane.b32.xlu0 %v4882_v13, %s5274_s0  ;;  %4878 = vrot.lane.b32.xlu1 %v4882_v13, %s5275_s5 }
 0xaaa   :  { %4507 = vmatmul.mubr.msk.bf16.vlgmr.msra.gmra.mrb[24].mxu1 %vm396_vm3, %v1198_v11 }
 0xaab   :  { %4519 = vmatpush3.bf16.xpose.msra.mxu1 %v1344_v14  ;;  %4522 = vmatprep.mubr.msk.bf16.mxu1 %vm5273_vm0, %v5272_v1 }
 0xaac   :  { %4520 = vmatprep.subr.bf16.mxu1 %v5272_v1 }
 0xaad   :  { %1227 = vrot.lane.b32.xlu1 %v5672_v16, %s5276_s9 }
 0xab1   :  { %4888 = vrot.lane.b32.xlu1 %v4882_v13, %s5276_s9 }
 0xab3   :  { %4521 = vmatpush3.bf16.xpose.msra.mxu1 %v1347_v18 }
 0xab4   :  { %4534 = vmatprep.subr.bf16.mxu1 %v5272_v1 }
 0xb1b   :  { %v4884_v57 = vpop.permute.xlu0 %4883  ;;  %v4879_v19 = vpop.permute.xlu1 %4878 }
 0xb1c   :  { %v4886_v26 = vunpack.i.h.bf16 %v4884_v57  ;;  %v4885_v28 = vunpack.i.l.bf16 %v4884_v57  ;;  %v4881_v29 = vunpack.i.h.bf16 %v4879_v19  ;;  %v4880_v8 = vunpack.i.l.bf16 %v4879_v19 }
 0xb1e   :  { %v1200_v16 = vpack.c.bf16 %v4886_v26, %v4885_v28  ;;  %v1199_v30 = vpack.c.bf16 %v4881_v29, %v4880_v8 }
 0xb1f   :  { %v1228_v37 = vpop.permute.xlu1 %1227 }
 0xb20   :  { %4515 = vmatmul.mubr.msk.bf16.vlgmr.msra.gmra.mrb[28].mxu0 %vm396_vm3, %v1199_v30  ;;  %4523 = vmatmul.mubr.msk.bf16.vlgmr.msra.gmra.mrb[28].mxu1 %vm396_vm3, %v1200_v16  ;;  %v5740_v40 = vpack.c.bf16 %v1228_v37, %v1228_v37 }
 0xb21   :  { %4527 = vmatpush3.bf16.xpose.msra.mxu0 %v1394_v33  ;;  %4530 = vmatprep.mubr.msk.bf16.mxu0 %vm5273_vm0, %v5272_v1 }
 0xb22   :  { %4528 = vmatprep.subr.bf16.mxu0 %v5272_v1  ;;  %4538 = vmatprep.mubr.msk.bf16.mxu1 %vm5273_vm0, %v5272_v1  ;;  %v1397_v44 = vsel %vm396_vm3, %v5740_v40, 0 }
 0xb23   :  { %v4889_v43 = vpop.permute.xlu1 %4888 }
 0xb24   :  { %v4891_v45 = vunpack.i.h.bf16 %v4889_v43  ;;  %v4890_v46 = vunpack.i.l.bf16 %v4889_v43 }
 0xb26   :  { %v1201_v48 = vpack.c.bf16 %v4891_v45, %v4890_v46 }
 0xb29   :  { %4529 = vmatpush3.bf16.xpose.msra.mxu0 %v1397_v44 }
 0xb2a   :  { %4542 = vmatprep.subr.bf16.mxu0 %v5272_v1 }
 0xb30   :  { %4531 = vmatmul.mubr.msk.bf16.vlgmr.msra.gmra.mrb[32].mxu0 %vm396_vm3, %v1201_v48 }
 0xb31   :  { %4546 = vmatprep.mubr.msk.bf16.mxu0 %vm5273_vm0, %v5272_v1 }
 0xb7d   :  { %v1283_v49 = vpop.f32.mrb[24].mxu1 }
 0xb7e   :  { %v1440_v51 = vmul.f32 0.35355338, %v1283_v49  ;;  %v4508_v52 = vpop.f32.mrb[25].mxu1 }
 0xb7f   :  { %v1286_v56 = vpop.f32.mrb[26].mxu1 }
 0xb80   :  { %v1441_v59 = vmul.f32 0.35355338, %v1286_v56  ;;  %v4509_v58 = vpop.f32.mrb[27].mxu1  ;;  %v1448_v12 = vadd.f32 %v1440_v51, %v5755_v55 }
 0xb82   :  { %v1456_v21 = vsel %vm918_vm14, %v1448_v12, -inf  ;;  %v1449_v32 = vadd.f32 %v1441_v59, %v5759_v60 }
 0xb83   :  { %1457 = vmax.xlane.f32.xlu0 %v1456_v21 }
 0xb84   :  { %v1459_v61 = vsel %vm918_vm14, %v1449_v32, -inf }
 0xb85   :  { %1460 = vmax.xlane.f32.xlu1 %v1459_v61 }
 0xbf3   :  { %v1333_v62 = vpop.f32.mrb[28].mxu0  ;;  %v1383_v63 = vpop.f32.mrb[28].mxu1 }
 0xbf4   :  { %v1442_v0 = vmul.f32 0.35355338, %v1333_v62  ;;  %v4516_v4 = vpop.f32.mrb[29].mxu0  ;;  %v4524_v6 = vpop.f32.mrb[29].mxu1  ;;  %v1444_v18 = vmul.f32 0.35355338, %v1383_v63 }
 0xbf5   :  { %v1336_v7 = vpop.f32.mrb[30].mxu0  ;;  %v1386_v10 = vpop.f32.mrb[30].mxu1 }
 0xbf6   :  { %v1443_v11 = vmul.f32 0.35355338, %v1336_v7  ;;  %v1445_v13 = vmul.f32 0.35355338, %v1386_v10  ;;  %v4517_v14 = vpop.f32.mrb[31].mxu0  ;;  %v4525_v31 = vpop.f32.mrb[31].mxu1  ;;  %v1450_v15 = vadd.f32 %v1442_v0, %v5755_v55  ;;  %v1452_v26 = vadd.f32 %v1444_v18, %v5755_v55 }
 0xbf8   :  { %v1462_v20 = vsel %vm918_vm14, %v1450_v15, -inf  ;;  %v1453_v2 = vadd.f32 %v1445_v13, %v5759_v60  ;;  %v1451_v3 = vadd.f32 %v1443_v11, %v5759_v60  ;;  %v1468_v28 = vsel %vm918_vm14, %v1452_v26, -inf }
 0xbf9   :  { %1463 = vmax.xlane.f32.xlu0 %v1462_v20 }
 0xbfa   :  { %v1471_v57 = vsel %vm918_vm14, %v1453_v2, -inf  ;;  %v1465_v19 = vsel %vm918_vm14, %v1451_v3, -inf }
 0xbfb   :  { %1472 = vmax.xlane.f32.xlu1 %v1471_v57 }
 0xbfd   :  { %1466 = vmax.xlane.f32.xlu0 %v1465_v19 }
 0xc01   :  { %1469 = vmax.xlane.f32.xlu0 %v1468_v28 }
 0xc03   :  { %v1433_v29 = vpop.f32.mrb[32].mxu0 }
 0xc04   :  { %v1446_v8 = vmul.f32 0.35355338, %v1433_v29  ;;  %v4532_v16 = vpop.f32.mrb[33].mxu0 }
 0xc05   :  { %v1436_v30 = vpop.f32.mrb[34].mxu0 }
 0xc06   :  { %v1447_v33 = vmul.f32 0.35355338, %v1436_v30  ;;  %v4533_v37 = vpop.f32.mrb[35].mxu0  ;;  %v1454_v43 = vadd.f32 %v1446_v8, %v5755_v55 }
 0xc08   :  { %v1474_v44 = vsel %vm918_vm14, %v1454_v43, -inf  ;;  %v1455_v45 = vadd.f32 %v1447_v33, %v5759_v60 }
 0xc09   :  { %1475 = vmax.xlane.f32.xlu0 %v1474_v44 }
 0xc0a   :  { %v1477_v46 = vsel %vm918_vm14, %v1455_v45, -inf }
 0xc0b   :  { %1478 = vmax.xlane.f32.xlu1 %v1477_v46 }
 0xc10   :  { %v1458_v48 = vpop.xlane.xlu0 %1457 }
 0xc11   :  { %v1480_v47 = vsub.f32 %v1448_v12, %v1458_v48 }
 0xc12   :  { %v1461_v42 = vpop.xlane.xlu1 %1460 }
 0xc13   :  { %v1488_v38 = vmul.f32 1.442695, %v1480_v47 }
 0xc15   :  { %5062 = vpow2.f32 %v1488_v38 }
 0xc1c   :  { %1605 = vrot.lane.b32.xlu1 %v5700_v54, %s5278_s29  ;;  %v1481_v54 = vsub.f32 %v1449_v32, %v1461_v42 }
 0xc1e   :  { %v1490_v39 = vmul.f32 1.442695, %v1481_v54 }
 0xc1f   :  { %1550 = vrot.lane.b32.xlu0 %v5676_v22, %s5278_s29  ;;  %v5788_v22 = vpop.eup %5062 }
 0xc20   :  { %1552 = vrot.lane.b32.xlu1 %v5695_v36, %s5278_s29  ;;  %5064 = vpow2.f32 %v1490_v39  ;;  %v1504_v36 = vsel %vm918_vm14, %v5788_v22, 0.0 }
 0xc23   :  { %1659 = vrot.lane.b32.xlu0 %v5711_v5, %s5278_s29 }
 0xc24   :  { %1607 = vrot.lane.b32.xlu1 %v5704_v9, %s5278_s29 }
 0xc28   :  { %1713 = vrot.lane.b32.xlu1 %v5729_v24, %s5278_s29 }
 0xc2a   :  { %v5792_v5 = vpop.eup %5064 }
 0xc2b   :  { %v1507_v9 = vsel %vm918_vm14, %v5792_v5, 0.0 }
 0xc42   :  { %1505 = vadd.xlane.f32.xlu0 %v1504_v36 }
 0xc4c   :  { %1508 = vadd.xlane.f32.xlu1 %v1507_v9 }
 0xc86   :  { %v1464_v24 = vpop.xlane.xlu0 %1463 }
 0xc87   :  { %v1482_v49 = vsub.f32 %v1450_v15, %v1464_v24 }
 0xc88   :  { %v1473_v51 = vpop.xlane.xlu1 %1472 }
 0xc89   :  { %v1492_v52 = vmul.f32 1.442695, %v1482_v49  ;;  %v1485_v56 = vsub.f32 %v1453_v2, %v1473_v51 }
 0xc8a   :  { %v1467_v59 = vpop.xlane.xlu0 %1466 }
 0xc8b   :  { %5066 = vpow2.f32 %v1492_v52  ;;  %v1483_v58 = vsub.f32 %v1451_v3, %v1467_v59  ;;  %v1498_v12 = vmul.f32 1.442695, %v1485_v56 }
 0xc8d   :  { %v1494_v21 = vmul.f32 1.442695, %v1483_v58 }
 0xc8e   :  { %v1470_v32 = vpop.xlane.xlu0 %1469 }
 0xc8f   :  { %5068 = vpow2.f32 %v1494_v21  ;;  %v1484_v61 = vsub.f32 %v1452_v26, %v1470_v32 }
 0xc90   :  { %5070 = vpow2.f32 %v1498_v12 }
 0xc91   :  { %v1496_v62 = vmul.f32 1.442695, %v1484_v61 }
 0xc93   :  { %5072 = vpow2.f32 %v1496_v62 }
 0xc95   :  { %v5796_v63 = vpop.eup %5066 }
 0xc96   :  { %v1476_v0 = vpop.xlane.xlu0 %1475  ;;  %v1510_v4 = vsel %vm918_vm14, %v5796_v63, 0.0 }
 0xc97   :  { %v1486_v6 = vsub.f32 %v1454_v43, %v1476_v0  ;;  %1511 = vadd.xlane.f32.xlu0 %v1510_v4 }
 0xc98   :  { %v1479_v7 = vpop.xlane.xlu1 %1478 }
 0xc99   :  { %v5800_v10 = vpop.eup %5068  ;;  %v1500_v11 = vmul.f32 1.442695, %v1486_v6  ;;  %v1487_v13 = vsub.f32 %v1455_v45, %v1479_v7 }
 0xc9a   :  { %v1551_v14 = vpop.permute.xlu0 %1550  ;;  %v1513_v31 = vsel %vm918_vm14, %v5800_v10, 0.0  ;;  %v5804_v15 = vpop.eup %5070 }
 0xc9b   :  { %5074 = vpow2.f32 %v1500_v11  ;;  %v1502_v18 = vmul.f32 1.442695, %v1487_v13  ;;  %4535 = vmatpush3.bf16.msra.mxu1 %v1551_v14  ;;  %1514 = vadd.xlane.f32.xlu1 %v1513_v31  ;;  %v1519_v57 = vsel %vm918_vm14, %v5804_v15, 0.0  ;;  %v4995_v31 = vld [vmem:[%s6352_s28] sm:$0xff]  }
 0xc9c   :  { %v1606_v20 = vpop.permute.xlu1 %1605  ;;  %4536 = vmatprep.subr.bf16.mxu1 %v5272_v1 }
 0xc9d   :  { %v5073_v2 = vpop.eup %5072  ;;  %5076 = vpow2.f32 %v1502_v18  ;;  %4543 = vmatpush3.bf16.msra.mxu0 %v1606_v20 }
 0xc9e   :  { %v1516_v3 = vsel %vm918_vm14, %v5073_v2, 0.0  ;;  %4544 = vmatprep.subr.bf16.mxu0 %v5272_v1  ;;  %v1660_v37 = vpop.permute.xlu0 %1659 }
 0xc9f   :  { %1517 = vadd.xlane.f32.xlu0 %v1516_v3  ;;  %1520 = vadd.xlane.f32.xlu1 %v1519_v57 }
 0xca0   :  { %v1553_v19 = vpop.permute.xlu1 %1552 }
 0xca1   :  { %v1560_v26 = vsel %vm1558_vm9, %v1553_v19, 0 }
 0xca2   :  { %4537 = vmatpush3.bf16.msra.mxu1 %v1560_v26 }
 0xca3   :  { %4550 = vmatprep.subr.bf16.mxu1 %v5272_v1 }
 0xca4   :  { %v1608_v28 = vpop.permute.xlu1 %1607 }
 0xca5   :  { %v5813_v29 = vpop.eup %5074  ;;  %v1614_v8 = vsel %vm1558_vm9, %v1608_v28, 0  ;;  %v4996_v28 = vld [vmem:[%s6352_s28 + $0x8] sm:$0xff]  }
 0xca6   :  { %4545 = vmatpush3.bf16.msra.mxu0 %v1614_v8  ;;  %v1522_v16 = vsel %vm918_vm14, %v5813_v29, 0.0 }
 0xca7   :  { %v5077_v30 = vpop.eup %5076  ;;  %1523 = vadd.xlane.f32.xlu0 %v1522_v16  ;;  %4558 = vmatprep.subr.bf16.mxu0 %v5272_v1 }
 0xca8   :  { %v1525_v33 = vsel %vm918_vm14, %v5077_v30, 0.0  ;;  %v1714_v43 = vpop.permute.xlu1 %1713 }
 0xca9   :  { %1526 = vadd.xlane.f32.xlu1 %v1525_v33 }
 0xcba   :  { %1715 = vrot.lane.b32.xlu1 %v5740_v40, %s5278_s29 }
 0xcbd   :  { %1661 = vrot.lane.b32.xlu0 %v5720_v17, %s5278_s29 }
 0xccf   :  { %v1506_v44 = vpop.xlane.xlu0 %1505 }
 0xcd0   :  { %5078 = vrcp.f32 %v1506_v44 }
 0xcd9   :  { %v1509_v45 = vpop.xlane.xlu1 %1508 }
 0xcda   :  { %5080 = vrcp.f32 %v1509_v45  ;;  %v5079_v46 = vpop.eup %5078 }
 0xcdb   :  { %v1536_v47 = vmul.f32 %v5079_v46, %v5788_v22 }
 0xce4   :  { %v5081_v48 = vpop.eup %5080 }
 0xce5   :  { %v1537_v38 = vmul.f32 %v5081_v48, %v5792_v5 }
 0xce7   :  { %v1544_v42 = vpack.c.bf16 %v1537_v38, %v1536_v47 }
 0xce9   :  { %4539 = vmatmul.mubr.msk.bf16.vlgmr.msra.gmra.mrb[32].mxu1 %vm918_vm14, %v1544_v42 }
 0xcea   :  { %4551 = vmatpush3.bf16.msra.mxu1 %v1660_v37  ;;  %4554 = vmatprep.mubr.msk.bf16.mxu1 %vm5273_vm0, %v5272_v1 }
 0xceb   :  { %4552 = vmatprep.subr.bf16.mxu1 %v5272_v1 }
 0xd24   :  { %v1512_v17 = vpop.xlane.xlu0 %1511 }
 0xd25   :  { %5082 = vrcp.f32 %v1512_v17 }
 0xd28   :  { %v1515_v40 = vpop.xlane.xlu1 %1514 }
 0xd29   :  { %5084 = vrcp.f32 %v1515_v40 }
 0xd2c   :  { %v1518_v54 = vpop.xlane.xlu0 %1517  ;;  %v1521_v39 = vpop.xlane.xlu1 %1520 }
 0xd2d   :  { %5086 = vrcp.f32 %v1518_v54 }
 0xd2e   :  { %5088 = vrcp.f32 %v1521_v39 }
 0xd2f   :  { %v5083_v22 = vpop.eup %5082 }
 0xd30   :  { %v1538_v5 = vmul.f32 %v5083_v22, %v5796_v63 }
 0xd33   :  { %v5085_v36 = vpop.eup %5084 }
 0xd34   :  { %v1539_v9 = vmul.f32 %v5085_v36, %v5800_v10  ;;  %v1524_v24 = vpop.xlane.xlu0 %1523 }
 0xd35   :  { %5090 = vrcp.f32 %v1524_v24 }
 0xd36   :  { %v1527_v49 = vpop.xlane.xlu1 %1526  ;;  %v1545_v51 = vpack.c.bf16 %v1539_v9, %v1538_v5 }
 0xd37   :  { %v5087_v52 = vpop.eup %5086  ;;  %5092 = vrcp.f32 %v1527_v49 }
 0xd38   :  { %v5089_v56 = vpop.eup %5088  ;;  %v1540_v59 = vmul.f32 %v5087_v52, %v5073_v2  ;;  %v1662_v58 = vpop.permute.xlu0 %1661  ;;  %4547 = vmatmul.mubr.msk.bf16.vlgmr.msra.gmra.mrb[36].mxu0 %vm918_vm14, %v1545_v51  ;;  %v4182_v51 = vld [vmem:[%s6353_s1] ss:$0 sm:$0xff] }
 0xd39   :  { %v1541_v12 = vmul.f32 %v5089_v56, %v5804_v15  ;;  %v1668_v21 = vsel %vm1558_vm9, %v1662_v58, 0  ;;  %4559 = vmatpush3.bf16.msra.mxu0 %v1714_v43  ;;  %4562 = vmatprep.mubr.msk.bf16.mxu0 %vm5273_vm0, %v5272_v1 }
 0xd3a   :  { %4553 = vmatpush3.bf16.msra.mxu1 %v1668_v21  ;;  %v1716_v32 = vpop.permute.xlu1 %1715  ;;  %4560 = vmatprep.subr.bf16.mxu0 %v5272_v1 }
 0xd3b   :  { %v1722_v61 = vsel %vm1558_vm9, %v1716_v32, 0  ;;  %v1546_v62 = vpack.c.bf16 %v1541_v12, %v1540_v59  ;;  %4566 = vmatprep.subr.bf16.mxu1 %v5272_v1 }
 0xd3d   :  { %4555 = vmatmul.mubr.msk.bf16.vlgmr.msra.gmra.mrb[36].mxu1 %vm918_vm14, %v1546_v62  ;;  %4561 = vmatpush3.bf16.msra.mxu0 %v1722_v61 }
 0xd3e   :  { %4570 = vmatprep.mubr.msk.bf16.mxu1 %vm5273_vm0, %v5272_v1  ;;  %4574 = vmatprep.subr.bf16.mxu0 %v5272_v1 }
 0xd3f   :  { %v5091_v63 = vpop.eup %5090  ;;  %4567 = vmatpush3.bf16.msra.mxu1 %v4995_v31  ;;  %v4998_v31 = vld [vmem:[%s6354_s2 + $0x8] sm:$0xff]  }
 0xd40   :  { %v1542_v4 = vmul.f32 %v5091_v63, %v5813_v29  ;;  %4568 = vmatprep.subr.bf16.mxu1 %v5272_v1 }
 0xd41   :  { %v5093_v0 = vpop.eup %5092 }
 0xd42   :  { %v1543_v6 = vmul.f32 %v5093_v0, %v5077_v30 }
 0xd43   :  { %4569 = vmatpush3.bf16.msra.mxu1 %v4996_v28  ;;  %v5186_v28 = vld [vmem:[%s5402_s4] sm:$0x7] }
 0xd44   :  { %v1547_v7 = vpack.c.bf16 %v1543_v6, %v1542_v4  ;;  %4582 = vmatprep.subr.bf16.mxu1 %v5272_v1 }
 0xd46   :  { %4563 = vmatmul.mubr.msk.bf16.vlgmr.msra.gmra.mrb[40].mxu0 %vm918_vm14, %v1547_v7 }
 0xd47   :  { %4578 = vmatprep.mubr.msk.bf16.mxu0 %vm5273_vm0, %v5272_v1 }
 0xdbc   :  { %v1596_v10 = vpop.f32.mrb[32].mxu1 }
 0xdbd   :  { %v4540_v11 = vpop.f32.mrb[33].mxu1 }
 0xdbe   :  { %v1599_v13 = vpop.f32.mrb[34].mxu1 }
 0xdbf   :  { %v4541_v14 = vpop.f32.mrb[35].mxu1 }
 0xdc0   :  { %v4997_v14 = vld [vmem:[%s6354_s2] sm:$0xff]  }
 0xdc1   :  { %4575 = vmatpush3.bf16.msra.mxu0 %v4997_v14 }
 0xdc2   :  { %4576 = vmatprep.subr.bf16.mxu0 %v5272_v1 }
 0xdc5   :  { %4577 = vmatpush3.bf16.msra.mxu0 %v4998_v31  ;;  %v5003_v31 = vld [vmem:[%s5332_s3 + $0x10] sm:$0xff]  }
 0xdc6   :  { %4594 = vmatprep.subr.bf16.mxu0 %v5272_v1 }
 0xe0b   :  { %v1650_v15 = vpop.f32.mrb[36].mxu0 }
 0xe0c   :  { %v4548_v18 = vpop.f32.mrb[37].mxu0 }
 0xe0d   :  { %v1653_v20 = vpop.f32.mrb[38].mxu0  ;;  %v5000_v18 = vld [vmem:[%s6355_s7 + $0x8] sm:$0xff]  }
 0xe0e   :  { %v4892_v2 = vpack.i.bf16 %v1653_v20, %v1650_v15  ;;  %v4549_v3 = vpop.f32.mrb[39].mxu0  ;;  %v4999_v15 = vld [vmem:[%s6355_s7] sm:$0xff]  }
 0xe10   :  { %v1704_v57 = vpop.f32.mrb[36].mxu1  ;;  %4893 = vrot.lane.b32.xlu0 %v4892_v2, %s5282_s15 }
 0xe11   :  { %v4556_v19 = vpop.f32.mrb[37].mxu1 }
 0xe12   :  { %v1707_v26 = vpop.f32.mrb[38].mxu1 }
 0xe13   :  { %v4897_v29 = vpack.i.bf16 %v1707_v26, %v1704_v57  ;;  %v4557_v8 = vpop.f32.mrb[39].mxu1 }
 0xe15   :  { %4898 = vrot.lane.b32.xlu1 %v4897_v29, %s5283_s16  ;;  %v1888_v29 = vrot.slane %v5186_v28, %v5554_v25 }
 0xe19   :  { %v1758_v16 = vpop.f32.mrb[40].mxu0 }
 0xe1a   :  { %v4564_v30 = vpop.f32.mrb[41].mxu0 }
 0xe1b   :  { %v1761_v33 = vpop.f32.mrb[42].mxu0 }
 0xe1c   :  { %v4902_v37 = vpack.i.bf16 %v1761_v33, %v1758_v16  ;;  %v4565_v43 = vpop.f32.mrb[43].mxu0 }
 0xe1e   :  { %4903 = vrot.lane.b32.xlu0 %v4902_v37, %s5284_s18  ;;  %v5187_v37 = vld [vmem:[%s5407_s25] sm:$0x7] }
 0xe1f   :  { %v1900_v43 = vrot.slane %v5187_v37, %v5554_v25 }
 0xe82   :  { %v4894_v44 = vpop.permute.xlu0 %4893 }
 0xe83   :  { %v4896_v46 = vunpack.i.h.bf16 %v4894_v44  ;;  %v4895_v48 = vunpack.i.l.bf16 %v4894_v44 }
 0xe85   :  { %v1789_v17 = vsel %vm396_vm3, %v1596_v10, %v4895_v48  ;;  %v1790_v40 = vsel %vm396_vm3, %v1599_v13, %v4896_v46 }
 0xe87   :  { %v4899_v45 = vpop.permute.xlu1 %4898 }
 0xe88   :  { %v4901_v47 = vunpack.i.h.bf16 %v4899_v45  ;;  %v4900_v38 = vunpack.i.l.bf16 %v4899_v45 }
 0xe8a   :  { %v1792_v22 = vsel %vm143_vm1, %v1790_v40, %v4901_v47  ;;  %v1791_v36 = vsel %vm143_vm1, %v1789_v17, %v4900_v38  ;;  %v5001_v38 = vld [vmem:[%s6355_s7 + $0x10] sm:$0xff]   ;;  %v4183_v17 = vld [vmem:[%s6356_s10] ss:$0 sm:$0xff] }
 0xe90   :  { %v4904_v42 = vpop.permute.xlu0 %4903 }
 0xe91   :  { %v4906_v54 = vunpack.i.h.bf16 %v4904_v42  ;;  %v4905_v39 = vunpack.i.l.bf16 %v4904_v42  ;;  %v5002_v42 = vld [vmem:[%s6355_s7 + $0x18] sm:$0xff]  }
 0xe93   :  { %v1793_v5 = vsel %vm918_vm14, %v1791_v36, %v4905_v39  ;;  %v1794_v9 = vsel %vm918_vm14, %v1792_v22, %v4906_v54 }
 0xe94   :  { %v1795_v24 = vpack.c.bf16 %v1794_v9, %v1793_v5 }
 0xe96   :  { %4571 = vmatmul.mubr.msk.bf16.vlgmr.msra.gmra.mrb[40].mxu1 %vm263_vm2, %v1795_v24 }
 0xe97   :  { %4590 = vmatprep.mubr.msk.bf16.mxu1 %vm5273_vm0, %v5272_v1  ;;  %4583 = vmatpush3.bf16.msra.mxu1 %v4999_v15  ;;  %v5004_v15 = vld [vmem:[%s5332_s3 + $0x18] sm:$0xff]   ;;  %s6360_s3 = sld [smem:[#allocation20_spill]] }
 0xe98   :  { %4584 = vmatprep.subr.bf16.mxu1 %v5272_v1 }
 0xe9b   :  { %4585 = vmatpush3.bf16.msra.mxu1 %v5000_v18 }
 0xe9c   :  { %4586 = vmatprep.subr.bf16.mxu1 %v5272_v1 }
 0xe9f   :  { %4587 = vmatpush3.bf16.msra.mxu1 %v5001_v38 }
 0xea0   :  { %4588 = vmatprep.subr.bf16.mxu1 %v5272_v1 }
 0xea3   :  { %4589 = vmatpush3.bf16.msra.mxu1 %v5002_v42 }
 0xea4   :  { %4608 = vmatprep.subr.bf16.mxu1 %v5272_v1 }
 0xf69   :  { %v1849_v49 = vpop.f32.mrb[40].mxu1 }
 0xf6a   :  { %v1856_v52 = vadd.f32 %v1849_v49, %v5645_v50  ;;  %v4572_v56 = vpop.f32.mrb[41].mxu1 }
 0xf6b   :  { %v1852_v59 = vpop.f32.mrb[42].mxu1 }
 0xf6c   :  { %v5866_v58 = vadd.f32 %v4182_v51, %v1856_v52  ;;  %v1857_v12 = vadd.f32 %v1852_v59, %v5648_v53  ;;  %v4573_v21 = vpop.f32.mrb[43].mxu1  ;;  %v4192_v52 = vld [vmem:[%s6357_s11] ss:$0 sm:$0xff] }
 0xf6e   :  { %v5869_v32 = vadd.f32 %v4182_v51, %v1857_v12  ;;  %v1865_v61 = vsel %vm263_vm2, %v5866_v58, 0.0 }
 0xf6f   :  { %1866 = vadd.xlane.f32.xlu1 %v1865_v61 }
 0xf70   :  { %v1868_v62 = vsel %vm263_vm2, %v5869_v32, 0.0 }
 0xf71   :  { %1869 = vadd.xlane.f32.xlu0 %v1868_v62 }
 0xffc   :  { %v1867_v50 = vpop.xlane.xlu1 %1866 }
 0xffd   :  { %v1871_v63 = vmul.f32 0.03125, %v1867_v50 }
 0xffe   :  { %v1870_v0 = vpop.xlane.xlu0 %1869 }
 0xfff   :  { %v1873_v4 = vsub.f32 %v5866_v58, %v1871_v63  ;;  %v1872_v53 = vmul.f32 0.03125, %v1870_v0 }
0x1001   :  { %v1874_v6 = vsub.f32 %v5869_v32, %v1872_v53  ;;  %v1875_v7 = vmul.f32 %v1873_v4, %v1873_v4  ;;  %v1889_v16 = vmul.f32 %v1888_v29, %v1873_v4 }
0x1003   :  { %v1877_v10 = vsel %vm263_vm2, %v1875_v7, 0.0  ;;  %v1876_v11 = vmul.f32 %v1874_v6, %v1874_v6  ;;  %v1890_v30 = vmul.f32 %v1888_v29, %v1874_v6  ;;  %v5927_v29 = vld [vmem:[%s5407_s25 + $0x4] sm:$0x7] }
0x1004   :  { %1878 = vadd.xlane.f32.xlu0 %v1877_v10  ;;  %v2097_v37 = vrot.slane %v5927_v29, %v5483_v35 }
0x1005   :  { %v1880_v13 = vsel %vm263_vm2, %v1876_v11, 0.0 }
0x1008   :  { %1881 = vadd.xlane.f32.xlu0 %v1880_v13 }
0x1091   :  { %v1879_v20 = vpop.xlane.xlu0 %1878 }
0x1092   :  { %v1883_v2 = vmul.f32 0.03125, %v1879_v20 }
0x1094   :  { %v1891_v3 = vadd.f32 1e-06, %v1883_v2 }
0x1095   :  { %v1882_v57 = vpop.xlane.xlu0 %1881 }
0x1096   :  { %5094 = vrsqrt.f32 %v1891_v3  ;;  %v1884_v19 = vmul.f32 0.03125, %v1882_v57 }
0x1098   :  { %v1892_v26 = vadd.f32 1e-06, %v1884_v19 }
0x109a   :  { %5096 = vrsqrt.f32 %v1892_v26  ;;  %v5922_v26 = vld [vmem:[%s5402_s4 + $0x4] sm:$0x7] }
0x109b   :  { %v2085_v28 = vrot.slane %v5922_v26, %v5483_v35 }
0x10a0   :  { %v5095_v8 = vpop.eup %5094 }
0x10a1   :  { %v1895_v33 = vmul.f32 %v5095_v8, %v1889_v16 }
0x10a3   :  { %v1901_v46 = vadd.f32 %v1900_v43, %v1895_v33 }
0x10a4   :  { %v5097_v44 = vpop.eup %5096 }
0x10a5   :  { %v1896_v45 = vmul.f32 %v5097_v44, %v1890_v30 }
0x10a7   :  { %v1902_v48 = vadd.f32 %v1900_v43, %v1896_v45 }
0x10a9   :  { %v1903_v47 = vpack.c.bf16 %v1902_v48, %v1901_v46 }
0x10ab   :  { %4579 = vmatmul.mubr.msk.bf16.vlgmr.msra.gmra.mrb[44].mxu0 %vm263_vm2, %v1903_v47  ;;  %v4199_v47 = vld [vmem:[%s5337_s8 + $0x1] ss:$0 sm:$0xff]  ;;  %s6361_s8 = sld [smem:[#allocation19_spill]] }
0x10ac   :  { %4598 = vmatprep.mubr.msk.bf16.mxu0 %vm5273_vm0, %v5272_v1  ;;  %4595 = vmatpush3.bf16.msra.mxu0 %v5003_v31 }
0x10ad   :  { %4596 = vmatprep.subr.bf16.mxu0 %v5272_v1 }
0x10b0   :  { %4597 = vmatpush3.bf16.msra.mxu0 %v5004_v15 }
0x10b1   :  { %4602 = vmatprep.subr.bf16.mxu0 %v5272_v1 }
0x117e   :  { %v1962_v40 = vpop.f32.mrb[44].mxu0 }
0x117f   :  { %v1963_v54 = vadd.f32 %v4183_v17, %v1962_v40  ;;  %v4580_v39 = vpop.f32.mrb[45].mxu0 }
0x1180   :  { %v1965_v22 = vpop.f32.mrb[46].mxu0 }
0x1181   :  { %v1966_v36 = vadd.f32 %v4183_v17, %v1965_v22  ;;  %v4581_v5 = vpop.f32.mrb[47].mxu0  ;;  %v1969_v9 = vmax.f32 %v1963_v54, 0.0 }
0x1183   :  { %v1970_v24 = vmax.f32 %v1966_v36, 0.0 }
0x1185   :  { %v1971_v49 = vpack.c.bf16 %v1970_v24, %v1969_v9 }
0x1187   :  { %4591 = vmatmul.mubr.msk.bf16.vlgmr.msra.gmra.mrb[44].mxu1 %vm2004_vm10, %v1971_v49 }
0x1188   :  { %4610 = vmatprep.mubr.msk.bf16.mxu1 %vm5273_vm0, %v5272_v1 }
0x125a   :  { %v2042_v51 = vpop.f32.mrb[44].mxu1 }
0x125b   :  { %v2049_v56 = vadd.f32 %v2042_v51, %v5866_v58  ;;  %v4592_v59 = vpop.f32.mrb[45].mxu1 }
0x125c   :  { %v2045_v12 = vpop.f32.mrb[46].mxu1 }
0x125d   :  { %v5904_v21 = vadd.f32 %v4192_v52, %v2049_v56  ;;  %v2050_v61 = vadd.f32 %v2045_v12, %v5869_v32  ;;  %v4593_v62 = vpop.f32.mrb[47].mxu1 }
0x125f   :  { %v5907_v50 = vadd.f32 %v4192_v52, %v2050_v61  ;;  %v2062_v63 = vsel %vm263_vm2, %v5904_v21, 0.0 }
0x1260   :  { %2063 = vadd.xlane.f32.xlu1 %v2062_v63 }
0x1261   :  { %v2065_v0 = vsel %vm263_vm2, %v5907_v50, 0.0 }
0x1262   :  { %2066 = vadd.xlane.f32.xlu0 %v2065_v0 }
0x12ed   :  { %v2064_v58 = vpop.xlane.xlu1 %2063 }
0x12ee   :  { %v2068_v4 = vmul.f32 0.03125, %v2064_v58 }
0x12ef   :  { %v2067_v53 = vpop.xlane.xlu0 %2066 }
0x12f0   :  { %v2070_v6 = vsub.f32 %v5904_v21, %v2068_v4  ;;  %v2069_v7 = vmul.f32 0.03125, %v2067_v53 }
0x12f2   :  { %v2071_v32 = vsub.f32 %v5907_v50, %v2069_v7  ;;  %v2072_v10 = vmul.f32 %v2070_v6, %v2070_v6  ;;  %v2086_v8 = vmul.f32 %v2085_v28, %v2070_v6 }
0x12f4   :  { %v2074_v11 = vsel %vm263_vm2, %v2072_v10, 0.0  ;;  %v2073_v13 = vmul.f32 %v2071_v32, %v2071_v32  ;;  %v2087_v30 = vmul.f32 %v2085_v28, %v2071_v32 }
0x12f5   :  { %2075 = vadd.xlane.f32.xlu1 %v2074_v11 }
0x12f6   :  { %v2077_v14 = vsel %vm263_vm2, %v2073_v13, 0.0 }
0x12f7   :  { %2078 = vadd.xlane.f32.xlu0 %v2077_v14 }
0x1382   :  { %v2076_v18 = vpop.xlane.xlu1 %2075 }
0x1383   :  { %v2080_v20 = vmul.f32 0.03125, %v2076_v18 }
0x1384   :  { %v2079_v2 = vpop.xlane.xlu0 %2078 }
0x1385   :  { %v2088_v3 = vadd.f32 1e-06, %v2080_v20  ;;  %v2081_v57 = vmul.f32 0.03125, %v2079_v2 }
0x1387   :  { %5098 = vrsqrt.f32 %v2088_v3  ;;  %v2089_v19 = vadd.f32 1e-06, %v2081_v57 }
0x1389   :  { %5100 = vrsqrt.f32 %v2089_v19 }
0x1391   :  { %v5099_v16 = vpop.eup %5098 }
0x1392   :  { %v2092_v33 = vmul.f32 %v5099_v16, %v2086_v8 }
0x1393   :  { %v5101_v43 = vpop.eup %5100 }
0x1394   :  { %v2093_v44 = vmul.f32 %v5101_v43, %v2087_v30  ;;  %v2098_v45 = vadd.f32 %v2097_v37, %v2092_v33 }
0x1396   :  { %v2099_v46 = vadd.f32 %v2097_v37, %v2093_v44 }
0x1398   :  { %v2100_v48 = vpack.c.bf16 %v2099_v46, %v2098_v45 }
0x139a   :  { %4599 = vmatmul.mubr.msk.bf16.vlgmr.msra.gmra.mrb[48].mxu0 %vm263_vm2, %v2100_v48 }
0x139b   :  { %4604 = vmatprep.mubr.msk.bf16.mxu0 %vm5273_vm0, %v5272_v1 }
0x146d   :  { %v2160_v38 = vpop.f32.mrb[48].mxu0 }
0x146e   :  { %v4600_v42 = vpop.f32.mrb[49].mxu0  ;;  %v2161_v40 = vadd.f32 %v4199_v47, %v2160_v38 }
0x146f   :  { %v2163_v17 = vpop.f32.mrb[50].mxu0 }
0x1470   :  { %v2164_v54 = vadd.f32 %v4199_v47, %v2163_v17  ;;  %v4601_v39 = vpop.f32.mrb[51].mxu0 }
0x1472   :  { %v4912_v22 = vpack.i.bf16 %v2164_v54, %v2161_v40  ;;  %v5935_v36 = vpack.c.bf16 %v2164_v54, %v2161_v40 }
0x1474   :  { %4913 = vrot.lane.b32.xlu0 %v4912_v22, %s5274_s0  ;;  %4908 = vrot.lane.b32.xlu1 %v4912_v22, %s5275_s5 }
0x1478   :  { %4918 = vrot.lane.b32.xlu1 %v4912_v22, %s5276_s9 }
0x147c   :  { %2192 = vrot.lane.b32.xlu1 %v5935_v36, %s5278_s29 }
0x14e6   :  { %v4914_v5 = vpop.permute.xlu0 %4913  ;;  %v4909_v9 = vpop.permute.xlu1 %4908 }
0x14e7   :  { %v4916_v24 = vunpack.i.h.bf16 %v4914_v5  ;;  %v4915_v49 = vunpack.i.l.bf16 %v4914_v5  ;;  %v4911_v51 = vunpack.i.h.bf16 %v4909_v9  ;;  %v4910_v52 = vunpack.i.l.bf16 %v4909_v9 }
0x14e9   :  { %v5942_v56 = vpack.c.bf16 %v4916_v24, %v4915_v49  ;;  %v5944_v59 = vpack.c.bf16 %v4911_v51, %v4910_v52 }
0x14ea   :  { %v4919_v12 = vpop.permute.xlu1 %4918 }
0x14eb   :  { %v4921_v61 = vunpack.i.h.bf16 %v4919_v12  ;;  %v4920_v62 = vunpack.i.l.bf16 %v4919_v12  ;;  %2292 = vrot.lane.b32.xlu0 %v5942_v56, %s5278_s29  ;;  %2242 = vrot.lane.b32.xlu1 %v5944_v59, %s5278_s29 }
0x14ed   :  { %v5950_v63 = vpack.c.bf16 %v4921_v61, %v4920_v62 }
0x14ee   :  { %v2193_v0 = vpop.permute.xlu1 %2192 }
0x14ef   :  { %v2198_v58 = vsel %vm396_vm3, %v2193_v0, 0  ;;  %2342 = vrot.lane.b32.xlu1 %v5950_v63, %s5278_s29 }
0x14f0   :  { %4603 = vmatpush3.bf16.xpose.msra.mxu0 %v2198_v58 }
0x14f1   :  { %4614 = vmatprep.subr.bf16.mxu0 %v5272_v1 }
0x14f7   :  { %4605 = vmatmul.mubr.msk.bf16.vlgmr.msra.gmra.mrb[52].mxu0 %vm396_vm3, %v5935_v36 }
0x14f8   :  { %4616 = vmatprep.mubr.msk.bf16.mxu0 %vm5273_vm0, %v5272_v1 }
0x155d   :  { %v2293_v4 = vpop.permute.xlu0 %2292  ;;  %v2243_v53 = vpop.permute.xlu1 %2242 }
0x155e   :  { %v2298_v6 = vsel %vm396_vm3, %v2293_v4, 0  ;;  %v2248_v7 = vsel %vm396_vm3, %v2243_v53, 0 }
0x155f   :  { %4609 = vmatpush3.bf16.xpose.msra.mxu1 %v2248_v7  ;;  %4615 = vmatpush3.bf16.xpose.msra.mxu0 %v2298_v6 }
0x1560   :  { %4620 = vmatprep.subr.bf16.mxu1 %v5272_v1  ;;  %4626 = vmatprep.subr.bf16.mxu0 %v5272_v1 }
0x1561   :  { %v2343_v32 = vpop.permute.xlu1 %2342 }
0x1562   :  { %v2348_v10 = vsel %vm396_vm3, %v2343_v32, 0 }
0x1566   :  { %4611 = vmatmul.mubr.msk.bf16.vlgmr.msra.gmra.mrb[48].mxu1 %vm396_vm3, %v5944_v59  ;;  %4617 = vmatmul.mubr.msk.bf16.vlgmr.msra.gmra.mrb[56].mxu0 %vm396_vm3, %v5942_v56 }
0x1567   :  { %4621 = vmatpush3.bf16.xpose.msra.mxu1 %v2348_v10  ;;  %4622 = vmatprep.mubr.msk.bf16.mxu1 %vm5273_vm0, %v5272_v1 }
0x1568   :  { %4632 = vmatprep.subr.bf16.mxu1 %v5272_v1  ;;  %4628 = vmatprep.mubr.msk.bf16.mxu0 %vm5273_vm0, %v5272_v1 }
0x156e   :  { %4623 = vmatmul.mubr.msk.bf16.vlgmr.msra.gmra.mrb[52].mxu1 %vm396_vm3, %v5950_v63 }
0x156f   :  { %4634 = vmatprep.mubr.msk.bf16.mxu1 %vm5273_vm0, %v5272_v1 }
0x15ca   :  { %v2234_v11 = vpop.f32.mrb[52].mxu0 }
0x15cb   :  { %v2391_v13 = vmul.f32 0.35355338, %v2234_v11  ;;  %v4606_v14 = vpop.f32.mrb[53].mxu0 }
0x15cc   :  { %v2237_v31 = vpop.f32.mrb[54].mxu0 }
0x15cd   :  { %v2392_v15 = vmul.f32 0.35355338, %v2237_v31  ;;  %v4607_v18 = vpop.f32.mrb[55].mxu0  ;;  %v2399_v20 = vadd.f32 %v2391_v13, %v5565_v34 }
0x15cf   :  { %v2407_v2 = vsel %vm143_vm1, %v2399_v20, -inf  ;;  %v2400_v3 = vadd.f32 %v2392_v15, %v5568_v41 }
0x15d0   :  { %2408 = vmax.xlane.f32.xlu0 %v2407_v2 }
0x15d1   :  { %v2410_v57 = vsel %vm143_vm1, %v2400_v3, -inf }
0x15d2   :  { %2411 = vmax.xlane.f32.xlu1 %v2410_v57 }
0x1639   :  { %v2284_v19 = vpop.f32.mrb[48].mxu1  ;;  %v2334_v28 = vpop.f32.mrb[56].mxu0 }
0x163a   :  { %v2393_v8 = vmul.f32 0.35355338, %v2284_v19  ;;  %v4612_v16 = vpop.f32.mrb[49].mxu1  ;;  %v4618_v30 = vpop.f32.mrb[57].mxu0  ;;  %v2395_v47 = vmul.f32 0.35355338, %v2334_v28 }
0x163b   :  { %v2287_v33 = vpop.f32.mrb[50].mxu1  ;;  %v2337_v37 = vpop.f32.mrb[58].mxu0 }
0x163c   :  { %v2394_v43 = vmul.f32 0.35355338, %v2287_v33  ;;  %v2396_v44 = vmul.f32 0.35355338, %v2337_v37  ;;  %v4613_v45 = vpop.f32.mrb[51].mxu1  ;;  %v4619_v46 = vpop.f32.mrb[59].mxu0  ;;  %v2401_v48 = vadd.f32 %v2393_v8, %v5565_v34  ;;  %v2403_v9 = vadd.f32 %v2395_v47, %v5565_v34 }
0x163e   :  { %v2404_v38 = vadd.f32 %v2396_v44, %v5568_v41  ;;  %v2413_v42 = vsel %vm143_vm1, %v2401_v48, -inf  ;;  %v2402_v17 = vadd.f32 %v2394_v43, %v5568_v41  ;;  %v2419_v61 = vsel %vm143_vm1, %v2403_v9, -inf }
0x163f   :  { %2414 = vmax.xlane.f32.xlu0 %v2413_v42 }
0x1640   :  { %v2422_v40 = vsel %vm143_vm1, %v2404_v38, -inf  ;;  %v2416_v5 = vsel %vm143_vm1, %v2402_v17, -inf }
0x1641   :  { %2423 = vmax.xlane.f32.xlu1 %v2422_v40  ;;  %v2384_v54 = vpop.f32.mrb[52].mxu1 }
0x1642   :  { %v2397_v39 = vmul.f32 0.35355338, %v2384_v54  ;;  %v4624_v22 = vpop.f32.mrb[53].mxu1 }
0x1643   :  { %2417 = vmax.xlane.f32.xlu0 %v2416_v5  ;;  %v2387_v24 = vpop.f32.mrb[54].mxu1 }
0x1644   :  { %v2398_v49 = vmul.f32 0.35355338, %v2387_v24  ;;  %v4625_v51 = vpop.f32.mrb[55].mxu1  ;;  %v2405_v52 = vadd.f32 %v2397_v39, %v5565_v34 }
0x1646   :  { %v2406_v12 = vadd.f32 %v2398_v49, %v5568_v41  ;;  %v2425_v0 = vsel %vm143_vm1, %v2405_v52, -inf }
0x1647   :  { %2420 = vmax.xlane.f32.xlu0 %v2419_v61 }
0x1648   :  { %v2428_v62 = vsel %vm143_vm1, %v2406_v12, -inf }
0x1649   :  { %2429 = vmax.xlane.f32.xlu1 %v2428_v62 }
0x164b   :  { %2426 = vmax.xlane.f32.xlu0 %v2425_v0 }
0x165d   :  { %v2409_v58 = vpop.xlane.xlu0 %2408 }
0x165e   :  { %v2431_v4 = vsub.f32 %v2399_v20, %v2409_v58 }
0x165f   :  { %v2412_v53 = vpop.xlane.xlu1 %2411 }
0x1660   :  { %v2439_v6 = vmul.f32 1.442695, %v2431_v4  ;;  %v2432_v7 = vsub.f32 %v2400_v3, %v2412_v53 }
0x1662   :  { %5102 = vpow2.f32 %v2439_v6  ;;  %v2441_v32 = vmul.f32 1.442695, %v2432_v7 }
0x1664   :  { %5104 = vpow2.f32 %v2441_v32 }
0x166c   :  { %v5994_v34 = vpop.eup %5102 }
0x166d   :  { %v2455_v41 = vsel %vm143_vm1, %v5994_v34, 0.0 }
0x166e   :  { %v5998_v10 = vpop.eup %5104  ;;  %2456 = vadd.xlane.f32.xlu0 %v2455_v41 }
0x166f   :  { %v2458_v11 = vsel %vm143_vm1, %v5998_v10, 0.0 }
0x1670   :  { %2459 = vadd.xlane.f32.xlu1 %v2458_v11 }
0x16cc   :  { %v2415_v13 = vpop.xlane.xlu0 %2414 }
0x16cd   :  { %v2433_v14 = vsub.f32 %v2401_v48, %v2415_v13 }
0x16ce   :  { %v2424_v31 = vpop.xlane.xlu1 %2423 }
0x16cf   :  { %v2443_v15 = vmul.f32 1.442695, %v2433_v14  ;;  %v2436_v18 = vsub.f32 %v2404_v38, %v2424_v31 }
0x16d0   :  { %v2418_v20 = vpop.xlane.xlu0 %2417 }
0x16d1   :  { %5106 = vpow2.f32 %v2443_v15  ;;  %v2434_v2 = vsub.f32 %v2402_v17, %v2418_v20  ;;  %v2449_v3 = vmul.f32 1.442695, %v2436_v18 }
0x16d3   :  { %v2445_v57 = vmul.f32 1.442695, %v2434_v2 }
0x16d4   :  { %v2421_v19 = vpop.xlane.xlu0 %2420 }
0x16d5   :  { %5108 = vpow2.f32 %v2445_v57  ;;  %v2435_v28 = vsub.f32 %v2403_v9, %v2421_v19 }
0x16d6   :  { %5110 = vpow2.f32 %v2449_v3  ;;  %v2430_v40 = vpop.xlane.xlu1 %2429 }
0x16d7   :  { %v2447_v8 = vmul.f32 1.442695, %v2435_v28  ;;  %v2438_v54 = vsub.f32 %v2406_v12, %v2430_v40 }
0x16d8   :  { %v2427_v16 = vpop.xlane.xlu0 %2426 }
0x16d9   :  { %5112 = vpow2.f32 %v2447_v8  ;;  %v2437_v30 = vsub.f32 %v2405_v52, %v2427_v16  ;;  %v2453_v39 = vmul.f32 1.442695, %v2438_v54 }
0x16db   :  { %v5107_v33 = vpop.eup %5106  ;;  %v2451_v37 = vmul.f32 1.442695, %v2437_v30 }
0x16dc   :  { %v2461_v43 = vsel %vm143_vm1, %v5107_v33, 0.0 }
0x16dd   :  { %5114 = vpow2.f32 %v2451_v37  ;;  %2462 = vadd.xlane.f32.xlu0 %v2461_v43  ;;  %v5005_v37 = vld [vmem:[%s5362_s6 + $0x10] sm:$0xff]  }
0x16de   :  { %5116 = vpow2.f32 %v2453_v39 }
0x16df   :  { %v5109_v44 = vpop.eup %5108 }
0x16e0   :  { %v2464_v45 = vsel %vm143_vm1, %v5109_v44, 0.0  ;;  %v5111_v46 = vpop.eup %5110 }
0x16e1   :  { %2465 = vadd.xlane.f32.xlu1 %v2464_v45  ;;  %v2470_v38 = vsel %vm143_vm1, %v5111_v46, 0.0 }
0x16e3   :  { %v5113_v48 = vpop.eup %5112 }
0x16e4   :  { %v2467_v47 = vsel %vm143_vm1, %v5113_v48, 0.0 }
0x16e5   :  { %2468 = vadd.xlane.f32.xlu0 %v2467_v47  ;;  %2471 = vadd.xlane.f32.xlu1 %v2470_v38 }
0x16e7   :  { %v6006_v42 = vpop.eup %5114 }
0x16e8   :  { %v2473_v17 = vsel %vm143_vm1, %v6006_v42, 0.0  ;;  %v5117_v22 = vpop.eup %5116 }
0x16e9   :  { %2474 = vadd.xlane.f32.xlu0 %v2473_v17  ;;  %v2476_v5 = vsel %vm143_vm1, %v5117_v22, 0.0  ;;  %v5006_v17 = vld [vmem:[%s5362_s6 + $0x18] sm:$0xff]  }
0x16f6   :  { %2546 = vrot.lane.b32.xlu1 %v5944_v59, %s5281_s21 }
0x16fa   :  { %2593 = vrot.lane.b32.xlu1 %v5942_v56, %s5281_s21 }
0x16fb   :  { %v2457_v9 = vpop.xlane.xlu0 %2456 }
0x16fd   :  { %v2460_v24 = vpop.xlane.xlu1 %2459 }
0x16fe   :  { %5118 = vrcp.f32 %v2460_v24 }
0x16ff   :  { %2499 = vrot.lane.b32.xlu0 %v5935_v36, %s5281_s21  ;;  %5120 = vrcp.f32 %v2457_v9 }
0x1708   :  { %v5119_v51 = vpop.eup %5118 }
0x1709   :  { %v5121_v52 = vpop.eup %5120 }
0x170a   :  { %v2487_v58 = vmul.f32 %v5121_v52, %v5994_v34 }
0x171e   :  { %2477 = vadd.xlane.f32.xlu1 %v2476_v5 }
0x172f   :  { %2640 = vrot.lane.b32.xlu1 %v5950_v63, %s5281_s21  ;;  %v2488_v63 = vmul.f32 %v5119_v51, %v5998_v10 }
0x1731   :  { %v2495_v7 = vpack.c.bf16 %v2488_v63, %v2487_v58 }
0x176a   :  { %v2463_v59 = vpop.xlane.xlu0 %2462 }
0x176b   :  { %5122 = vrcp.f32 %v2463_v59 }
0x176e   :  { %v2466_v56 = vpop.xlane.xlu1 %2465 }
0x176f   :  { %5124 = vrcp.f32 %v2466_v56 }
0x1772   :  { %v2469_v36 = vpop.xlane.xlu0 %2468  ;;  %v2472_v49 = vpop.xlane.xlu1 %2471 }
0x1773   :  { %5126 = vrcp.f32 %v2469_v36 }
0x1774   :  { %5128 = vrcp.f32 %v2472_v49 }
0x1775   :  { %v5123_v62 = vpop.eup %5122 }
0x1776   :  { %v2475_v12 = vpop.xlane.xlu0 %2474  ;;  %v2547_v61 = vpop.permute.xlu1 %2546  ;;  %v2489_v4 = vmul.f32 %v5123_v62, %v5107_v33 }
0x1777   :  { %4633 = vmatpush3.bf16.msra.mxu1 %v2547_v61  ;;  %5130 = vrcp.f32 %v2475_v12 }
0x1778   :  { %4644 = vmatprep.subr.bf16.mxu1 %v5272_v1 }
0x1779   :  { %v5125_v0 = vpop.eup %5124 }
0x177a   :  { %v2490_v53 = vmul.f32 %v5125_v0, %v5109_v44  ;;  %v2500_v6 = vpop.permute.xlu0 %2499  ;;  %v2594_v13 = vpop.permute.xlu1 %2593 }
0x177b   :  { %4627 = vmatpush3.bf16.msra.mxu0 %v2500_v6  ;;  %v5188_v6 = vld [vmem:[%s5307_s13] sm:$0xff]  }
0x177c   :  { %v2496_v32 = vpack.c.bf16 %v2490_v53, %v2489_v4  ;;  %4638 = vmatprep.subr.bf16.mxu0 %v5272_v1 }
0x177d   :  { %v5127_v41 = vpop.eup %5126 }
0x177e   :  { %v5129_v11 = vpop.eup %5128  ;;  %4629 = vmatmul.mubr.msk.bf16.vlgmr.msra.gmra.mrb[60].mxu0 %vm143_vm1, %v2495_v7  ;;  %4635 = vmatmul.mubr.msk.bf16.vlgmr.msra.gmra.mrb[56].mxu1 %vm143_vm1, %v2496_v32  ;;  %v2491_v34 = vmul.f32 %v5127_v41, %v5113_v48  ;;  %v4218_v32 = vld [vmem:[%s5367_s12 + $0x1] ss:$0 sm:$0xff] }
0x177f   :  { %4639 = vmatpush3.bf16.msra.mxu0 %v2594_v13  ;;  %4640 = vmatprep.mubr.msk.bf16.mxu0 %vm5273_vm0, %v5272_v1  ;;  %v2492_v10 = vmul.f32 %v5129_v11, %v5111_v46 }
0x1780   :  { %4646 = vmatprep.mubr.msk.bf16.mxu1 %vm5273_vm0, %v5272_v1  ;;  %4650 = vmatprep.subr.bf16.mxu0 %v5272_v1 }
0x1781   :  { %v2497_v14 = vpack.c.bf16 %v2492_v10, %v2491_v34  ;;  %v5131_v18 = vpop.eup %5130 }
0x1782   :  { %v2493_v2 = vmul.f32 %v5131_v18, %v6006_v42 }
0x1786   :  { %4641 = vmatmul.mubr.msk.bf16.vlgmr.msra.gmra.mrb[64].mxu0 %vm143_vm1, %v2497_v14 }
0x1787   :  { %4654 = vmatprep.mubr.msk.bf16.mxu0 %vm5273_vm0, %v5272_v1  ;;  %4651 = vmatpush3.bf16.msra.mxu0 %v5005_v37 }
0x1788   :  { %4652 = vmatprep.subr.bf16.mxu0 %v5272_v1 }
0x178b   :  { %4653 = vmatpush3.bf16.msra.mxu0 %v5006_v17 }
0x17ab   :  { %v2478_v31 = vpop.xlane.xlu1 %2477 }
0x17ac   :  { %5132 = vrcp.f32 %v2478_v31 }
0x17af   :  { %v2641_v15 = vpop.permute.xlu1 %2640 }
0x17b0   :  { %4645 = vmatpush3.bf16.msra.mxu1 %v2641_v15 }
0x17b1   :  { %4658 = vmatprep.subr.bf16.mxu1 %v5272_v1 }
0x17b6   :  { %v5133_v20 = vpop.eup %5132 }
0x17b7   :  { %v2494_v3 = vmul.f32 %v5133_v20, %v5117_v22  ;;  %v5007_v20 = vld [vmem:[%s5352_s24 + $0x10] sm:$0xff]  }
0x17b8   :  { %4666 = vmatprep.subr.bf16.mxu0 %v5007_v20 }
0x17b9   :  { %v2498_v57 = vpack.c.bf16 %v2494_v3, %v2493_v2 }
0x17bb   :  { %4647 = vmatmul.mubr.msk.bf16.vlgmr.msra.gmra.mrb[60].mxu1 %vm143_vm1, %v2498_v57 }
0x17bc   :  { %4662 = vmatprep.mubr.msk.bf16.mxu1 %vm5273_vm0, %v5272_v1 }
0x1851   :  { %v2539_v19 = vpop.f32.mrb[60].mxu0  ;;  %v2586_v28 = vpop.f32.mrb[56].mxu1 }
0x1852   :  { %v4630_v8 = vpop.f32.mrb[61].mxu0  ;;  %v4636_v16 = vpop.f32.mrb[57].mxu1 }
0x1853   :  { %v2542_v30 = vpop.f32.mrb[62].mxu0  ;;  %v2589_v33 = vpop.f32.mrb[58].mxu1 }
0x1854   :  { %v4922_v43 = vpack.i.bf16 %v2589_v33, %v2586_v28  ;;  %v4631_v44 = vpop.f32.mrb[63].mxu0  ;;  %v4637_v45 = vpop.f32.mrb[59].mxu1 }
0x1855   :  { %v5010_v44 = vld [vmem:[%s5342_s14 + $0x18] sm:$0xff]   ;;  %v4231_v45 = vld [vmem:[%s6349_s22 + $0x1] ss:$0 sm:$0xff] }
0x1856   :  { %4923 = vrot.lane.b32.xlu0 %v4922_v43, %s5282_s15  ;;  %v5009_v43 = vld [vmem:[%s5342_s14 + $0x10] sm:$0xff]   ;;  %s5285_s14 = smov 126  }
0x1857   :  { %4659 = vmatpush3.bf16.msra.mxu1 %v5009_v43 }
0x1858   :  { %4660 = vmatprep.subr.bf16.mxu1 %v5272_v1 }
0x1859   :  { %v2633_v46 = vpop.f32.mrb[64].mxu0 }
0x185a   :  { %v4642_v48 = vpop.f32.mrb[65].mxu0 }
0x185b   :  { %v2636_v47 = vpop.f32.mrb[66].mxu0  ;;  %4661 = vmatpush3.bf16.msra.mxu1 %v5010_v44 }
0x185c   :  { %v4927_v38 = vpack.i.bf16 %v2636_v47, %v2633_v46  ;;  %v4643_v42 = vpop.f32.mrb[67].mxu0  ;;  %4674 = vmatprep.subr.bf16.mxu1 %v5272_v1 }
0x185e   :  { %4928 = vrot.lane.b32.xlu1 %v4927_v38, %s5283_s16 }
0x188e   :  { %v2680_v40 = vpop.f32.mrb[60].mxu1 }
0x188f   :  { %v4648_v54 = vpop.f32.mrb[61].mxu1 }
0x1890   :  { %v2683_v39 = vpop.f32.mrb[62].mxu1 }
0x1891   :  { %v4932_v22 = vpack.i.bf16 %v2683_v39, %v2680_v40  ;;  %v4649_v5 = vpop.f32.mrb[63].mxu1 }
0x1893   :  { %4933 = vrot.lane.b32.xlu0 %v4932_v22, %s5284_s18 }
0x18c8   :  { %v4924_v9 = vpop.permute.xlu0 %4923 }
0x18c9   :  { %v4926_v59 = vunpack.i.h.bf16 %v4924_v9  ;;  %v4925_v56 = vunpack.i.l.bf16 %v4924_v9 }
0x18cb   :  { %v2712_v52 = vsel %vm396_vm3, %v2542_v30, %v4926_v59  ;;  %v2711_v12 = vsel %vm396_vm3, %v2539_v19, %v4925_v56 }
0x18d0   :  { %v4929_v24 = vpop.permute.xlu1 %4928 }
0x18d1   :  { %v4931_v36 = vunpack.i.h.bf16 %v4929_v24  ;;  %v4930_v49 = vunpack.i.l.bf16 %v4929_v24 }
0x18d3   :  { %v2713_v63 = vsel %vm143_vm1, %v2711_v12, %v4930_v49  ;;  %v2714_v0 = vsel %vm143_vm1, %v2712_v52, %v4931_v36  ;;  %v2811_v36 = vrot.slane %v5922_v26, %v5551_v23 }
0x1905   :  { %v4934_v51 = vpop.permute.xlu0 %4933 }
0x1906   :  { %v4936_v61 = vunpack.i.h.bf16 %v4934_v51  ;;  %v4935_v62 = vunpack.i.l.bf16 %v4934_v51 }
0x1908   :  { %v2716_v58 = vsel %vm918_vm14, %v2714_v0, %v4936_v61  ;;  %v2715_v4 = vsel %vm918_vm14, %v2713_v63, %v4935_v62  ;;  %v2823_v61 = vrot.slane %v5927_v29, %v5551_v23 }
0x1909   :  { %v2717_v53 = vpack.c.bf16 %v2716_v58, %v2715_v4 }
0x190b   :  { %4655 = vmatmul.mubr.msk.bf16.vlgmr.msra.gmra.mrb[68].mxu0 %vm263_vm2, %v2717_v53 }
0x190c   :  { %4670 = vmatprep.mubr.msk.bf16.mxu0 %vm263_vm2, %v5188_v6  ;;  %4667 = vmatpush3.bf16.msra.mxu0 %v5007_v20 }
0x19de   :  { %v2772_v7 = vpop.f32.mrb[68].mxu0 }
0x19df   :  { %v2779_v41 = vadd.f32 %v2772_v7, %v5904_v21  ;;  %v4656_v11 = vpop.f32.mrb[69].mxu0  ;;  %v5008_v21 = vld [vmem:[%s5352_s24 + $0x18] sm:$0xff]   ;;  %s5286_s24 = smov [#allocation2]  }
0x19e0   :  { %v2775_v13 = vpop.f32.mrb[70].mxu0  ;;  %4668 = vmatprep.subr.bf16.mxu0 %v5008_v21  ;;  %s4086_s6 = sshll.u32 %s5286_s24, 4  ;;  %s4087_s6 = int_to_ptr.vmem [resolvable:$true] %s4086_s6 }
0x19e1   :  { %v6055_v34 = vadd.f32 %v4218_v32, %v2779_v41  ;;  %v2780_v10 = vadd.f32 %v2775_v13, %v5907_v50  ;;  %v4657_v14 = vpop.f32.mrb[71].mxu0  ;;  %4669 = vmatpush3.bf16.msra.mxu0 %v5008_v21  ;;  %v5189_v50 = vld [vmem:[%s5307_s13 + $0x8] ss:$0 sps:$4 sm:$0xff]   ;;  %v4223_v21 = vld [vmem:[%s6350_s23 + $0x1] ss:$0 sm:$0xff]  ;;  %s6358_s13 = sld [smem:[#allocation18_spill]]  ;;  %p5199_p1 = scmp.lt.s32.totalorder %s4087_s6, %s4087_s6 }
0x19e2   :  { %4682 = vmatprep.subr.bf16.mxu0 %v5272_v1  ;;  %s5194_s12 = scalar_lea.vmem %s4087_s6, 256 }
0x19e3   :  { %v6058_v31 = vadd.f32 %v4218_v32, %v2780_v10  ;;  %v2788_v15 = vsel %vm263_vm2, %v6055_v34, 0.0  ;;  %p5195_p0 = scmp.ne.s32.totalorder %s4087_s6, %s5194_s12  ;;  %p5200_p2 = scmp.lt.s32.totalorder %s5194_s12, %s5194_s12 }
0x19e4   :  { %2789 = vadd.xlane.f32.xlu1 %v2788_v15  ;;  %4671 = vmatmul.mubr.msk.bf16.vlgmr.msra.gmra.mrb[72].mxu0 %vm263_vm2, %v5189_v50 }
0x19e5   :  { %v2791_v18 = vsel %vm263_vm2, %v6058_v31, 0.0  ;;  %4686 = vmatprep.mubr.msk.bf16.mxu0 %vm5273_vm0, %v5272_v1  ;;  %p5201_p3 = por %p5200_p2, %p5199_p1 }
0x19e6   :  { %2792 = vadd.xlane.f32.xlu0 %v2791_v18 }
0x19e7   :  { %p5202_p4 = pnand %p5201_p3, %p5195_p0 }
0x1a71   :  { %v2790_v2 = vpop.xlane.xlu1 %2789 }
0x1a72   :  { %v2794_v3 = vmul.f32 0.03125, %v2790_v2 }
0x1a73   :  { %v2793_v57 = vpop.xlane.xlu0 %2792 }
0x1a74   :  { %v2796_v19 = vsub.f32 %v6055_v34, %v2794_v3  ;;  %v2795_v28 = vmul.f32 0.03125, %v2793_v57 }
0x1a76   :  { %v2797_v8 = vsub.f32 %v6058_v31, %v2795_v28  ;;  %v2798_v16 = vmul.f32 %v2796_v19, %v2796_v19  ;;  %v2812_v51 = vmul.f32 %v2811_v36, %v2796_v19 }
0x1a78   :  { %v2800_v30 = vsel %vm263_vm2, %v2798_v16, 0.0  ;;  %v2799_v33 = vmul.f32 %v2797_v8, %v2797_v8  ;;  %v2813_v52 = vmul.f32 %v2811_v36, %v2797_v8 }
0x1a79   :  { %2801 = vadd.xlane.f32.xlu0 %v2800_v30 }
0x1a7a   :  { %v2803_v37 = vsel %vm263_vm2, %v2799_v33, 0.0 }
0x1a7d   :  { %2804 = vadd.xlane.f32.xlu0 %v2803_v37 }
0x1ab7   :  { %v4672_v46 = vpop.f32.mrb[72].mxu0 }
0x1ab8   :  { %v6080_v48 = vadd.f32 %v4672_v46, %v4231_v45  ;;  %v2949_v47 = vpop.f32.mrb[73].mxu0 }
0x1ab9   :  { %v2950_v38 = vadd.f32 %v4231_v45, %v2949_v47  ;;  %v4673_v42 = vpop.f32.mrb[74].mxu0 }
0x1aba   :  { %v2952_v17 = vpop.f32.mrb[75].mxu0  ;;  %2994 = vrot.lane.b32.xlu0 %v6080_v48, %s5275_s5  ;;  %v6103_v26 = vpack.c.bf16 %v6080_v48, %v6080_v48 }
0x1abb   :  { %v2953_v40 = vadd.f32 %v4231_v45, %v2952_v17 }
0x1abc   :  { %v3032_v29 = vsel %vm396_vm3, %v6103_v26, 0 }
0x1abd   :  { %v4937_v54 = vpack.i.bf16 %v2953_v40, %v2950_v38  ;;  %v6084_v39 = vpack.c.bf16 %v2953_v40, %v2950_v38 }
0x1abe   :  { %3003 = vrot.lane.b32.xlu0 %v6080_v48, %s5274_s0 }
0x1abf   :  { %4938 = vrot.lane.b32.xlu1 %v4937_v54, %s5275_s5  ;;  %v3029_v53 = vsel %vm396_vm3, %v6084_v39, 0 }
0x1ac3   :  { %4943 = vrot.lane.b32.xlu1 %v4937_v54, %s5274_s0 }
0x1ac7   :  { %4948 = vrot.lane.b32.xlu1 %v4937_v54, %s5276_s9 }
0x1b06   :  { %v2802_v22 = vpop.xlane.xlu0 %2801 }
0x1b07   :  { %v2806_v5 = vmul.f32 0.03125, %v2802_v22 }
0x1b09   :  { %v2814_v9 = vadd.f32 1e-06, %v2806_v5 }
0x1b0a   :  { %v2805_v24 = vpop.xlane.xlu0 %2804 }
0x1b0b   :  { %5134 = vrsqrt.f32 %v2814_v9  ;;  %v2807_v59 = vmul.f32 0.03125, %v2805_v24 }
0x1b0d   :  { %v2815_v56 = vadd.f32 1e-06, %v2807_v59 }
0x1b0f   :  { %5136 = vrsqrt.f32 %v2815_v56 }
0x1b15   :  { %v5135_v49 = vpop.eup %5134 }
0x1b16   :  { %v2818_v12 = vmul.f32 %v5135_v49, %v2812_v51 }
0x1b18   :  { %v2824_v0 = vadd.f32 %v2823_v61, %v2818_v12 }
0x1b19   :  { %v5137_v62 = vpop.eup %5136 }
0x1b1a   :  { %v2819_v63 = vmul.f32 %v5137_v62, %v2813_v52 }
0x1b1c   :  { %v2825_v58 = vadd.f32 %v2823_v61, %v2819_v63 }
0x1b1e   :  { %v2826_v4 = vpack.c.bf16 %v2825_v58, %v2824_v0 }
0x1b20   :  { %4663 = vmatmul.mubr.msk.bf16.vlgmr.msra.gmra.mrb[64].mxu1 %vm263_vm2, %v2826_v4 }
0x1b21   :  { %4675 = vmatpush3.bf16.xpose.msra.mxu1 %v3029_v53  ;;  %4678 = vmatprep.mubr.msk.bf16.mxu1 %vm5273_vm0, %v5272_v1 }
0x1b22   :  { %4676 = vmatprep.subr.bf16.mxu1 %v5272_v1 }
0x1b29   :  { %4677 = vmatpush3.bf16.xpose.msra.mxu1 %v3032_v29 }
0x1b2a   :  { %4690 = vmatprep.subr.bf16.mxu1 %v5272_v1 }
0x1b2c   :  { %v2995_v13 = vpop.permute.xlu0 %2994 }
0x1b2d   :  { %v6112_v10 = vpack.c.bf16 %v2995_v13, %v2995_v13 }
0x1b2f   :  { %v3082_v14 = vsel %vm396_vm3, %v6112_v10, 0 }
0x1b30   :  { %v3004_v37 = vpop.permute.xlu0 %3003 }
0x1b31   :  { %v4939_v6 = vpop.permute.xlu1 %4938  ;;  %v6128_v43 = vpack.c.bf16 %v3004_v37, %v3004_v37 }
0x1b32   :  { %v4941_v7 = vunpack.i.h.bf16 %v4939_v6  ;;  %v4940_v32 = vunpack.i.l.bf16 %v4939_v6 }
0x1b33   :  { %v3132_v44 = vsel %vm396_vm3, %v6128_v43, 0 }
0x1b34   :  { %v6108_v41 = vpack.c.bf16 %v4941_v7, %v4940_v32 }
0x1b35   :  { %v4944_v15 = vpop.permute.xlu1 %4943 }
0x1b36   :  { %v3079_v11 = vsel %vm396_vm3, %v6108_v41, 0  ;;  %v4946_v18 = vunpack.i.h.bf16 %v4944_v15  ;;  %v4945_v20 = vunpack.i.l.bf16 %v4944_v15 }
0x1b37   :  { %4683 = vmatpush3.bf16.xpose.msra.mxu0 %v3079_v11 }
0x1b38   :  { %4684 = vmatprep.subr.bf16.mxu0 %v5272_v1  ;;  %v6119_v57 = vpack.c.bf16 %v4946_v18, %v4945_v20 }
0x1b39   :  { %v4949_v45 = vpop.permute.xlu1 %4948 }
0x1b3a   :  { %v3129_v33 = vsel %vm396_vm3, %v6119_v57, 0  ;;  %v4951_v46 = vunpack.i.h.bf16 %v4949_v45  ;;  %v4950_v47 = vunpack.i.l.bf16 %v4949_v45 }
0x1b3c   :  { %v6137_v38 = vpack.c.bf16 %v4951_v46, %v4950_v47 }
0x1b3e   :  { %v3179_v24 = vsel %vm396_vm3, %v6137_v38, 0 }
0x1b3f   :  { %4685 = vmatpush3.bf16.xpose.msra.mxu0 %v3082_v14 }
0x1b40   :  { %4698 = vmatprep.subr.bf16.mxu0 %v5272_v1 }
0x1bf3   :  { %v2886_v50 = vpop.f32.mrb[64].mxu1 }
0x1bf4   :  { %v4664_v2 = vpop.f32.mrb[65].mxu1  ;;  %v2887_v19 = vadd.f32 %v4223_v21, %v2886_v50 }
0x1bf5   :  { %v2889_v3 = vpop.f32.mrb[66].mxu1 }
0x1bf6   :  { %v2890_v28 = vadd.f32 %v4223_v21, %v2889_v3  ;;  %v4665_v8 = vpop.f32.mrb[67].mxu1 }
0x1bf8   :  { %v2983_v16 = vpack.c.bf16 %v2890_v28, %v2887_v19  ;;  %v4957_v30 = vpack.i.bf16 %v2890_v28, %v2887_v19 }
0x1bfa   :  { %4958 = vrot.lane.b32.xlu0 %v4957_v30, %s5274_s0  ;;  %4953 = vrot.lane.b32.xlu1 %v4957_v30, %s5275_s5 }
0x1bfb   :  { %4679 = vmatmul.mubr.msk.bf16.vlgmr.msra.gmra.mrb[68].mxu1 %vm396_vm3, %v2983_v16 }
0x1bfc   :  { %4691 = vmatpush3.bf16.xpose.msra.mxu1 %v3129_v33  ;;  %4694 = vmatprep.mubr.msk.bf16.mxu1 %vm5273_vm0, %v5272_v1 }
0x1bfd   :  { %4692 = vmatprep.subr.bf16.mxu1 %v5272_v1 }
0x1bfe   :  { %3012 = vrot.lane.b32.xlu1 %v6080_v48, %s5276_s9 }
0x1c02   :  { %4963 = vrot.lane.b32.xlu1 %v4957_v30, %s5276_s9 }
0x1c04   :  { %4693 = vmatpush3.bf16.xpose.msra.mxu1 %v3132_v44 }
0x1c05   :  { %4706 = vmatprep.subr.bf16.mxu1 %v5272_v1 }
0x1c6c   :  { %v4959_v42 = vpop.permute.xlu0 %4958  ;;  %v4954_v17 = vpop.permute.xlu1 %4953 }
0x1c6d   :  { %v4961_v40 = vunpack.i.h.bf16 %v4959_v42  ;;  %v4960_v54 = vunpack.i.l.bf16 %v4959_v42  ;;  %v4956_v22 = vunpack.i.h.bf16 %v4954_v17  ;;  %v4955_v5 = vunpack.i.l.bf16 %v4954_v17 }
0x1c6f   :  { %v2985_v48 = vpack.c.bf16 %v4961_v40, %v4960_v54  ;;  %v2984_v9 = vpack.c.bf16 %v4956_v22, %v4955_v5 }
0x1c70   :  { %v3013_v59 = vpop.permute.xlu1 %3012 }
0x1c71   :  { %4687 = vmatmul.mubr.msk.bf16.vlgmr.msra.gmra.mrb[76].mxu0 %vm396_vm3, %v2984_v9  ;;  %4695 = vmatmul.mubr.msk.bf16.vlgmr.msra.gmra.mrb[72].mxu1 %vm396_vm3, %v2985_v48  ;;  %v6148_v56 = vpack.c.bf16 %v3013_v59, %v3013_v59 }
0x1c72   :  { %4699 = vmatpush3.bf16.xpose.msra.mxu0 %v3179_v24  ;;  %4702 = vmatprep.mubr.msk.bf16.mxu0 %vm5273_vm0, %v5272_v1 }
0x1c73   :  { %4700 = vmatprep.subr.bf16.mxu0 %v5272_v1  ;;  %4710 = vmatprep.mubr.msk.bf16.mxu1 %vm5273_vm0, %v5272_v1  ;;  %v3182_v49 = vsel %vm396_vm3, %v6148_v56, 0 }
0x1c74   :  { %v4964_v36 = vpop.permute.xlu1 %4963 }
0x1c75   :  { %v4966_v51 = vunpack.i.h.bf16 %v4964_v36  ;;  %v4965_v52 = vunpack.i.l.bf16 %v4964_v36 }
0x1c77   :  { %v2986_v12 = vpack.c.bf16 %v4966_v51, %v4965_v52 }
0x1c7a   :  { %4701 = vmatpush3.bf16.xpose.msra.mxu0 %v3182_v49 }
0x1c7b   :  { %4714 = vmatprep.subr.bf16.mxu0 %v5272_v1 }
0x1c81   :  { %4703 = vmatmul.mubr.msk.bf16.vlgmr.msra.gmra.mrb[80].mxu0 %vm396_vm3, %v2986_v12 }
0x1c82   :  { %4718 = vmatprep.mubr.msk.bf16.mxu0 %vm5273_vm0, %v5272_v1 }
0x1cce   :  { %v3068_v61 = vpop.f32.mrb[68].mxu1 }
0x1ccf   :  { %v3225_v62 = vmul.f32 0.35355338, %v3068_v61  ;;  %v4680_v63 = vpop.f32.mrb[69].mxu1 }
0x1cd0   :  { %v3071_v0 = vpop.f32.mrb[70].mxu1 }
0x1cd1   :  { %v3233_v58 = vadd.f32 %v3225_v62, %v5755_v55  ;;  %v3226_v4 = vmul.f32 0.35355338, %v3071_v0  ;;  %v4681_v53 = vpop.f32.mrb[71].mxu1 }
0x1cd3   :  { %v3234_v29 = vadd.f32 %v3226_v4, %v5759_v60  ;;  %v3241_v6 = vsel %vm918_vm14, %v3233_v58, -inf }
0x1cd4   :  { %3242 = vmax.xlane.f32.xlu0 %v3241_v6 }
0x1cd5   :  { %v3244_v7 = vsel %vm918_vm14, %v3234_v29, -inf }
0x1cd6   :  { %3245 = vmax.xlane.f32.xlu1 %v3244_v7 }
0x1d44   :  { %v3118_v32 = vpop.f32.mrb[76].mxu0  ;;  %v3168_v11 = vpop.f32.mrb[72].mxu1 }
0x1d45   :  { %v3227_v13 = vmul.f32 0.35355338, %v3118_v32  ;;  %v4688_v14 = vpop.f32.mrb[77].mxu0  ;;  %v4696_v15 = vpop.f32.mrb[73].mxu1  ;;  %v3229_v28 = vmul.f32 0.35355338, %v3168_v11 }
0x1d46   :  { %v3121_v18 = vpop.f32.mrb[78].mxu0  ;;  %v3171_v20 = vpop.f32.mrb[74].mxu1 }
0x1d47   :  { %v3235_v21 = vadd.f32 %v3227_v13, %v5755_v55  ;;  %v3228_v50 = vmul.f32 0.35355338, %v3121_v18  ;;  %v3230_v2 = vmul.f32 0.35355338, %v3171_v20  ;;  %v4689_v3 = vpop.f32.mrb[79].mxu0  ;;  %v4697_v19 = vpop.f32.mrb[75].mxu1  ;;  %v3237_v37 = vadd.f32 %v3229_v28, %v5755_v55 }
0x1d49   :  { %v3236_v8 = vadd.f32 %v3228_v50, %v5759_v60  ;;  %v3238_v16 = vadd.f32 %v3230_v2, %v5759_v60  ;;  %v3247_v30 = vsel %vm918_vm14, %v3235_v21, -inf  ;;  %v3253_v45 = vsel %vm918_vm14, %v3237_v37, -inf }
0x1d4a   :  { %3248 = vmax.xlane.f32.xlu0 %v3247_v30 }
0x1d4b   :  { %v3256_v33 = vsel %vm918_vm14, %v3238_v16, -inf  ;;  %v3250_v44 = vsel %vm918_vm14, %v3236_v8, -inf }
0x1d4c   :  { %3257 = vmax.xlane.f32.xlu1 %v3256_v33 }
0x1d4e   :  { %3251 = vmax.xlane.f32.xlu0 %v3250_v44 }
0x1d52   :  { %3254 = vmax.xlane.f32.xlu0 %v3253_v45 }
0x1d54   :  { %v3218_v46 = vpop.f32.mrb[80].mxu0 }
0x1d55   :  { %v3231_v47 = vmul.f32 0.35355338, %v3218_v46  ;;  %v4704_v42 = vpop.f32.mrb[81].mxu0 }
0x1d56   :  { %v3221_v17 = vpop.f32.mrb[82].mxu0 }
0x1d57   :  { %v3239_v40 = vadd.f32 %v3231_v47, %v5755_v55  ;;  %v3232_v54 = vmul.f32 0.35355338, %v3221_v17  ;;  %v4705_v22 = vpop.f32.mrb[83].mxu0 }
0x1d59   :  { %v3240_v5 = vadd.f32 %v3232_v54, %v5759_v60  ;;  %v3259_v48 = vsel %vm918_vm14, %v3239_v40, -inf }
0x1d5a   :  { %3260 = vmax.xlane.f32.xlu0 %v3259_v48 }
0x1d5b   :  { %v3262_v9 = vsel %vm918_vm14, %v3240_v5, -inf }
0x1d5c   :  { %3263 = vmax.xlane.f32.xlu1 %v3262_v9 }
0x1d61   :  { %v3243_v55 = vpop.xlane.xlu0 %3242 }
0x1d62   :  { %v3265_v60 = vsub.f32 %v3233_v58, %v3243_v55 }
0x1d63   :  { %v3246_v59 = vpop.xlane.xlu1 %3245 }
0x1d64   :  { %v3273_v24 = vmul.f32 1.442695, %v3265_v60 }
0x1d66   :  { %5138 = vpow2.f32 %v3273_v24 }
0x1d6d   :  { %3389 = vrot.lane.b32.xlu1 %v6108_v41, %s5278_s29  ;;  %v3266_v41 = vsub.f32 %v3234_v29, %v3246_v59 }
0x1d6f   :  { %v3275_v36 = vmul.f32 1.442695, %v3266_v41 }
0x1d70   :  { %3335 = vrot.lane.b32.xlu0 %v6084_v39, %s5278_s29  ;;  %v6184_v39 = vpop.eup %5138 }
0x1d71   :  { %3337 = vrot.lane.b32.xlu1 %v6103_v26, %s5278_s29  ;;  %5140 = vpow2.f32 %v3275_v36  ;;  %v3289_v26 = vsel %vm918_vm14, %v6184_v39, 0.0 }
0x1d74   :  { %3443 = vrot.lane.b32.xlu0 %v6119_v57, %s5278_s29 }
0x1d75   :  { %3391 = vrot.lane.b32.xlu1 %v6112_v10, %s5278_s29 }
0x1d79   :  { %3497 = vrot.lane.b32.xlu1 %v6137_v38, %s5278_s29 }
0x1d7b   :  { %v6188_v57 = vpop.eup %5140 }
0x1d7c   :  { %v3292_v10 = vsel %vm918_vm14, %v6188_v57, 0.0 }
0x1d93   :  { %3290 = vadd.xlane.f32.xlu0 %v3289_v26 }
0x1d9d   :  { %3293 = vadd.xlane.f32.xlu1 %v3292_v10 }
0x1dd7   :  { %v3249_v38 = vpop.xlane.xlu0 %3248 }
0x1dd8   :  { %v3267_v49 = vsub.f32 %v3235_v21, %v3249_v38 }
0x1dd9   :  { %v3258_v51 = vpop.xlane.xlu1 %3257 }
0x1dda   :  { %v3277_v52 = vmul.f32 1.442695, %v3267_v49  ;;  %v3270_v12 = vsub.f32 %v3238_v16, %v3258_v51 }
0x1ddb   :  { %v3252_v61 = vpop.xlane.xlu0 %3251 }
0x1ddc   :  { %5142 = vpow2.f32 %v3277_v52  ;;  %v3268_v62 = vsub.f32 %v3236_v8, %v3252_v61  ;;  %v3283_v63 = vmul.f32 1.442695, %v3270_v12 }
0x1dde   :  { %v3279_v0 = vmul.f32 1.442695, %v3268_v62 }
0x1ddf   :  { %v3255_v58 = vpop.xlane.xlu0 %3254 }
0x1de0   :  { %5144 = vpow2.f32 %v3279_v0  ;;  %v3269_v4 = vsub.f32 %v3237_v37, %v3255_v58 }
0x1de1   :  { %5146 = vpow2.f32 %v3283_v63 }
0x1de2   :  { %v3281_v53 = vmul.f32 1.442695, %v3269_v4 }
0x1de4   :  { %5148 = vpow2.f32 %v3281_v53 }
0x1de6   :  { %v6192_v29 = vpop.eup %5142 }
0x1de7   :  { %v3261_v6 = vpop.xlane.xlu0 %3260  ;;  %v3295_v7 = vsel %vm918_vm14, %v6192_v29, 0.0 }
0x1de8   :  { %v3271_v32 = vsub.f32 %v3239_v40, %v3261_v6  ;;  %3296 = vadd.xlane.f32.xlu0 %v3295_v7 }
0x1de9   :  { %v3264_v11 = vpop.xlane.xlu1 %3263 }
0x1dea   :  { %v5145_v13 = vpop.eup %5144  ;;  %v3285_v14 = vmul.f32 1.442695, %v3271_v32  ;;  %v3272_v15 = vsub.f32 %v3240_v5, %v3264_v11 }
0x1deb   :  { %v3336_v18 = vpop.permute.xlu0 %3335  ;;  %v3298_v20 = vsel %vm918_vm14, %v5145_v13, 0.0  ;;  %v6197_v21 = vpop.eup %5146 }
0x1dec   :  { %5150 = vpow2.f32 %v3285_v14  ;;  %v3287_v50 = vmul.f32 1.442695, %v3272_v15  ;;  %4707 = vmatpush3.bf16.msra.mxu1 %v3336_v18  ;;  %3299 = vadd.xlane.f32.xlu1 %v3298_v20  ;;  %v3304_v28 = vsel %vm918_vm14, %v6197_v21, 0.0 }
0x1ded   :  { %v3390_v2 = vpop.permute.xlu1 %3389  ;;  %4708 = vmatprep.subr.bf16.mxu1 %v5272_v1 }
0x1dee   :  { %v5149_v3 = vpop.eup %5148  ;;  %5152 = vpow2.f32 %v3287_v50  ;;  %4715 = vmatpush3.bf16.msra.mxu0 %v3390_v2 }
0x1def   :  { %v3301_v19 = vsel %vm918_vm14, %v5149_v3, 0.0  ;;  %4716 = vmatprep.subr.bf16.mxu0 %v5272_v1  ;;  %v3444_v47 = vpop.permute.xlu0 %3443 }
0x1df0   :  { %3302 = vadd.xlane.f32.xlu0 %v3301_v19  ;;  %3305 = vadd.xlane.f32.xlu1 %v3304_v28  ;;  %v5012_v19 = vld [vmem:[%s6352_s28 + $0x18] sm:$0xff]  }
0x1df1   :  { %v3338_v8 = vpop.permute.xlu1 %3337 }
0x1df2   :  { %v3344_v16 = vsel %vm1558_vm9, %v3338_v8, 0 }
0x1df3   :  { %4709 = vmatpush3.bf16.msra.mxu1 %v3344_v16 }
0x1df4   :  { %4722 = vmatprep.subr.bf16.mxu1 %v5272_v1 }
0x1df5   :  { %v3392_v30 = vpop.permute.xlu1 %3391 }
0x1df6   :  { %v6206_v33 = vpop.eup %5150  ;;  %v3398_v37 = vsel %vm1558_vm9, %v3392_v30, 0 }
0x1df7   :  { %4717 = vmatpush3.bf16.msra.mxu0 %v3398_v37  ;;  %v3307_v44 = vsel %vm918_vm14, %v6206_v33, 0.0 }
0x1df8   :  { %v5153_v45 = vpop.eup %5152  ;;  %3308 = vadd.xlane.f32.xlu0 %v3307_v44  ;;  %4730 = vmatprep.subr.bf16.mxu0 %v5272_v1 }
0x1df9   :  { %v3310_v46 = vsel %vm918_vm14, %v5153_v45, 0.0  ;;  %v3498_v42 = vpop.permute.xlu1 %3497 }
0x1dfa   :  { %3311 = vadd.xlane.f32.xlu1 %v3310_v46 }
0x1e0b   :  { %3499 = vrot.lane.b32.xlu1 %v6148_v56, %s5278_s29 }
0x1e0e   :  { %3445 = vrot.lane.b32.xlu0 %v6128_v43, %s5278_s29 }
0x1e20   :  { %v3291_v17 = vpop.xlane.xlu0 %3290 }
0x1e21   :  { %5154 = vrcp.f32 %v3291_v17 }
0x1e2a   :  { %v3294_v40 = vpop.xlane.xlu1 %3293 }
0x1e2b   :  { %5156 = vrcp.f32 %v3294_v40  ;;  %v5155_v54 = vpop.eup %5154 }
0x1e2c   :  { %v3321_v5 = vmul.f32 %v5155_v54, %v6184_v39 }
0x1e35   :  { %v5157_v22 = vpop.eup %5156 }
0x1e36   :  { %v3322_v48 = vmul.f32 %v5157_v22, %v6188_v57 }
0x1e38   :  { %v3329_v9 = vpack.c.bf16 %v3322_v48, %v3321_v5 }
0x1e3a   :  { %4711 = vmatmul.mubr.msk.bf16.vlgmr.msra.gmra.mrb[76].mxu1 %vm918_vm14, %v3329_v9 }
0x1e3b   :  { %4723 = vmatpush3.bf16.msra.mxu1 %v3444_v47  ;;  %4726 = vmatprep.mubr.msk.bf16.mxu1 %vm5273_vm0, %v5272_v1 }
0x1e3c   :  { %4724 = vmatprep.subr.bf16.mxu1 %v5272_v1 }
0x1e75   :  { %v3297_v43 = vpop.xlane.xlu0 %3296 }
0x1e76   :  { %5158 = vrcp.f32 %v3297_v43 }
0x1e79   :  { %v3300_v56 = vpop.xlane.xlu1 %3299 }
0x1e7a   :  { %5160 = vrcp.f32 %v3300_v56 }
0x1e7d   :  { %v3303_v55 = vpop.xlane.xlu0 %3302  ;;  %v3306_v60 = vpop.xlane.xlu1 %3305 }
0x1e7e   :  { %5162 = vrcp.f32 %v3303_v55 }
0x1e7f   :  { %5164 = vrcp.f32 %v3306_v60 }
0x1e80   :  { %v5159_v24 = vpop.eup %5158 }
0x1e81   :  { %v3323_v41 = vmul.f32 %v5159_v24, %v6192_v29 }
0x1e84   :  { %v5161_v59 = vpop.eup %5160 }
0x1e85   :  { %v3324_v36 = vmul.f32 %v5161_v59, %v5145_v13  ;;  %v3309_v39 = vpop.xlane.xlu0 %3308  ;;  %v5011_v13 = vld [vmem:[%s6352_s28 + $0x10] sm:$0xff]  }
0x1e86   :  { %5166 = vrcp.f32 %v3309_v39 }
0x1e87   :  { %v3312_v26 = vpop.xlane.xlu1 %3311  ;;  %v3330_v57 = vpack.c.bf16 %v3324_v36, %v3323_v41  ;;  %v4251_v41 = vld [vmem:[%s6353_s1 + $0x1] ss:$0 sm:$0xff] }
0x1e88   :  { %v5163_v10 = vpop.eup %5162  ;;  %5168 = vrcp.f32 %v3312_v26 }
0x1e89   :  { %v5165_v38 = vpop.eup %5164  ;;  %v3325_v49 = vmul.f32 %v5163_v10, %v5149_v3  ;;  %v3446_v51 = vpop.permute.xlu0 %3445  ;;  %4719 = vmatmul.mubr.msk.bf16.vlgmr.msra.gmra.mrb[84].mxu0 %vm918_vm14, %v3330_v57 }
0x1e8a   :  { %v3326_v52 = vmul.f32 %v5165_v38, %v6197_v21  ;;  %v3452_v12 = vsel %vm1558_vm9, %v3446_v51, 0  ;;  %4731 = vmatpush3.bf16.msra.mxu0 %v3498_v42  ;;  %4734 = vmatprep.mubr.msk.bf16.mxu0 %vm5273_vm0, %v5272_v1 }
0x1e8b   :  { %4725 = vmatpush3.bf16.msra.mxu1 %v3452_v12  ;;  %v3500_v61 = vpop.permute.xlu1 %3499  ;;  %4732 = vmatprep.subr.bf16.mxu0 %v5272_v1 }
0x1e8c   :  { %v3506_v62 = vsel %vm1558_vm9, %v3500_v61, 0  ;;  %v3331_v63 = vpack.c.bf16 %v3326_v52, %v3325_v49  ;;  %4738 = vmatprep.subr.bf16.mxu1 %v5272_v1 }
0x1e8e   :  { %4727 = vmatmul.mubr.msk.bf16.vlgmr.msra.gmra.mrb[80].mxu1 %vm918_vm14, %v3331_v63  ;;  %4733 = vmatpush3.bf16.msra.mxu0 %v3506_v62 }
0x1e8f   :  { %4742 = vmatprep.mubr.msk.bf16.mxu1 %vm5273_vm0, %v5272_v1  ;;  %4746 = vmatprep.subr.bf16.mxu0 %v5272_v1 }
0x1e90   :  { %v5167_v0 = vpop.eup %5166  ;;  %4739 = vmatpush3.bf16.msra.mxu1 %v5011_v13 }
0x1e91   :  { %v3327_v4 = vmul.f32 %v5167_v0, %v6206_v33  ;;  %4740 = vmatprep.subr.bf16.mxu1 %v5272_v1 }
0x1e92   :  { %v5169_v58 = vpop.eup %5168 }
0x1e93   :  { %v3328_v53 = vmul.f32 %v5169_v58, %v5153_v45 }
0x1e94   :  { %4741 = vmatpush3.bf16.msra.mxu1 %v5012_v19 }
0x1e95   :  { %v3332_v29 = vpack.c.bf16 %v3328_v53, %v3327_v4  ;;  %4754 = vmatprep.subr.bf16.mxu1 %v5272_v1 }
0x1e97   :  { %4735 = vmatmul.mubr.msk.bf16.vlgmr.msra.gmra.mrb[88].mxu0 %vm918_vm14, %v3332_v29  ;;  %v5013_v29 = vld [vmem:[%s6354_s2 + $0x10] sm:$0xff]  }
0x1e98   :  { %4750 = vmatprep.mubr.msk.bf16.mxu0 %vm5273_vm0, %v5272_v1  ;;  %4747 = vmatpush3.bf16.msra.mxu0 %v5013_v29 }
0x1e99   :  { %4748 = vmatprep.subr.bf16.mxu0 %v5272_v1 }
0x1f0d   :  { %v3380_v6 = vpop.f32.mrb[76].mxu1 }
0x1f0e   :  { %v4712_v7 = vpop.f32.mrb[77].mxu1 }
0x1f0f   :  { %v3383_v32 = vpop.f32.mrb[78].mxu1  ;;  %v5015_v7 = vld [vmem:[%s6355_s7 + $0x20] sm:$0xff]  }
0x1f10   :  { %v4713_v11 = vpop.f32.mrb[79].mxu1 }
0x1f5c   :  { %v3434_v14 = vpop.f32.mrb[84].mxu0 }
0x1f5d   :  { %v4720_v15 = vpop.f32.mrb[85].mxu0 }
0x1f5e   :  { %v3437_v18 = vpop.f32.mrb[86].mxu0 }
0x1f5f   :  { %v4967_v20 = vpack.i.bf16 %v3437_v18, %v3434_v14  ;;  %v4721_v21 = vpop.f32.mrb[87].mxu0 }
0x1f60   :  { %v5190_v21 = vld [vmem:[%s5402_s4 + $0x4] sm:$0x7] }
0x1f61   :  { %v3488_v50 = vpop.f32.mrb[80].mxu1  ;;  %4968 = vrot.lane.b32.xlu0 %v4967_v20, %s5282_s15 }
0x1f62   :  { %v4728_v2 = vpop.f32.mrb[81].mxu1 }
0x1f63   :  { %v3491_v3 = vpop.f32.mrb[82].mxu1 }
0x1f64   :  { %v4972_v28 = vpack.i.bf16 %v3491_v3, %v3488_v50  ;;  %v4729_v8 = vpop.f32.mrb[83].mxu1  ;;  %v3673_v50 = vrot.slane %v5190_v21, %v5554_v25 }
0x1f65   :  { %v5191_v8 = vld [vmem:[%s5407_s25 + $0x4] sm:$0x7]  ;;  %s6359_s25 = sld [smem:[#allocation17_spill]] }
0x1f66   :  { %4973 = vrot.lane.b32.xlu1 %v4972_v28, %s5283_s16 }
0x1f6a   :  { %v3542_v16 = vpop.f32.mrb[88].mxu0 }
0x1f6b   :  { %v4736_v30 = vpop.f32.mrb[89].mxu0 }
0x1f6c   :  { %v3545_v33 = vpop.f32.mrb[90].mxu0 }
0x1f6d   :  { %v4977_v37 = vpack.i.bf16 %v3545_v33, %v3542_v16  ;;  %v4737_v44 = vpop.f32.mrb[91].mxu0  ;;  %v3685_v16 = vrot.slane %v5191_v8, %v5554_v25  ;;  %v5021_v8 = vld [vmem:[%s6360_s3] sm:$0xff]  }
0x1f6f   :  { %4978 = vrot.lane.b32.xlu0 %v4977_v37, %s5284_s18 }
0x1fd3   :  { %v4969_v45 = vpop.permute.xlu0 %4968 }
0x1fd4   :  { %v4971_v47 = vunpack.i.h.bf16 %v4969_v45  ;;  %v4970_v42 = vunpack.i.l.bf16 %v4969_v45 }
0x1fd6   :  { %v3573_v22 = vsel %vm396_vm3, %v3380_v6, %v4970_v42  ;;  %v3574_v5 = vsel %vm396_vm3, %v3383_v32, %v4971_v47  ;;  %v5014_v6 = vld [vmem:[%s6354_s2 + $0x18] sm:$0xff]   ;;  %v5016_v32 = vld [vmem:[%s6355_s7 + $0x28] sm:$0xff]   ;;  %v4256_v42 = vld [vmem:[%s6356_s10 + $0x1] ss:$0 sm:$0xff] }
0x1fd7   :  { %4749 = vmatpush3.bf16.msra.mxu0 %v5014_v6  ;;  %v5018_v47 = vld [vmem:[%s6355_s7 + $0x38] sm:$0xff]  }
0x1fd8   :  { %v4974_v46 = vpop.permute.xlu1 %4973  ;;  %4766 = vmatprep.subr.bf16.mxu0 %v5272_v1 }
0x1fd9   :  { %v4976_v17 = vunpack.i.h.bf16 %v4974_v46  ;;  %v4975_v40 = vunpack.i.l.bf16 %v4974_v46  ;;  %v5017_v46 = vld [vmem:[%s6355_s7 + $0x30] sm:$0xff]  }
0x1fdb   :  { %v3576_v43 = vsel %vm143_vm1, %v3574_v5, %v4976_v17  ;;  %v3575_v56 = vsel %vm143_vm1, %v3573_v22, %v4975_v40 }
0x1fe1   :  { %v4979_v54 = vpop.permute.xlu0 %4978 }
0x1fe2   :  { %v4981_v48 = vunpack.i.h.bf16 %v4979_v54  ;;  %v4980_v9 = vunpack.i.l.bf16 %v4979_v54 }
0x1fe4   :  { %v3577_v55 = vsel %vm918_vm14, %v3575_v56, %v4980_v9  ;;  %v3578_v60 = vsel %vm918_vm14, %v3576_v43, %v4981_v48 }
0x1fe5   :  { %v3579_v24 = vpack.c.bf16 %v3578_v60, %v3577_v55  ;;  %v4273_v55 = vld [vmem:[%s6357_s11 + $0x1] ss:$0 sm:$0xff] }
0x1fe7   :  { %4743 = vmatmul.mubr.msk.bf16.vlgmr.msra.gmra.mrb[84].mxu1 %vm263_vm2, %v3579_v24 }
0x1fe8   :  { %4762 = vmatprep.mubr.msk.bf16.mxu1 %vm5273_vm0, %v5272_v1  ;;  %4755 = vmatpush3.bf16.msra.mxu1 %v5015_v7 }
0x1fe9   :  { %4756 = vmatprep.subr.bf16.mxu1 %v5272_v1 }
0x1fec   :  { %4757 = vmatpush3.bf16.msra.mxu1 %v5016_v32 }
0x1fed   :  { %4758 = vmatprep.subr.bf16.mxu1 %v5272_v1 }
0x1ff0   :  { %4759 = vmatpush3.bf16.msra.mxu1 %v5017_v46  ;;  %v4278_v46 = vld [vmem:[%s5432_s20] ss:$0 sm:$0xff] }
0x1ff1   :  { %4760 = vmatprep.subr.bf16.mxu1 %v5272_v1 }
0x1ff4   :  { %4761 = vmatpush3.bf16.msra.mxu1 %v5018_v47 }
0x20ba   :  { %v3634_v59 = vpop.f32.mrb[84].mxu1 }
0x20bb   :  { %v3641_v36 = vadd.f32 %v3634_v59, %v6055_v34  ;;  %v4744_v39 = vpop.f32.mrb[85].mxu1 }
0x20bc   :  { %v3637_v26 = vpop.f32.mrb[86].mxu1 }
0x20bd   :  { %v6258_v57 = vadd.f32 %v4251_v41, %v3641_v36  ;;  %v3642_v10 = vadd.f32 %v3637_v26, %v6058_v31  ;;  %v4745_v38 = vpop.f32.mrb[87].mxu1 }
0x20bf   :  { %v6261_v49 = vadd.f32 %v4251_v41, %v3642_v10  ;;  %v3650_v51 = vsel %vm263_vm2, %v6258_v57, 0.0 }
0x20c0   :  { %3651 = vadd.xlane.f32.xlu1 %v3650_v51 }
0x20c1   :  { %v3653_v52 = vsel %vm263_vm2, %v6261_v49, 0.0 }
0x20c2   :  { %3654 = vadd.xlane.f32.xlu0 %v3653_v52 }
0x214d   :  { %v3652_v34 = vpop.xlane.xlu1 %3651 }
0x214e   :  { %v3656_v12 = vmul.f32 0.03125, %v3652_v34 }
0x214f   :  { %v3655_v61 = vpop.xlane.xlu0 %3654 }
0x2150   :  { %v3658_v62 = vsub.f32 %v6258_v57, %v3656_v12  ;;  %v3657_v31 = vmul.f32 0.03125, %v3655_v61 }
0x2152   :  { %v3659_v63 = vsub.f32 %v6261_v49, %v3657_v31  ;;  %v3660_v0 = vmul.f32 %v3658_v62, %v3658_v62  ;;  %v3674_v3 = vmul.f32 %v3673_v50, %v3658_v62 }
0x2154   :  { %v3662_v58 = vsel %vm263_vm2, %v3660_v0, 0.0  ;;  %v3661_v4 = vmul.f32 %v3659_v63, %v3659_v63  ;;  %v3675_v19 = vmul.f32 %v3673_v50, %v3659_v63  ;;  %v5019_v0 = vld [vmem:[%s6358_s13] sm:$0xff]  }
0x2155   :  { %3663 = vadd.xlane.f32.xlu0 %v3662_v58  ;;  %v5020_v58 = vld [vmem:[%s6358_s13 + $0x8] sm:$0xff]  }
0x2156   :  { %v3665_v53 = vsel %vm263_vm2, %v3661_v4, 0.0 }
0x2159   :  { %3666 = vadd.xlane.f32.xlu0 %v3665_v53 }
0x21e2   :  { %v3664_v11 = vpop.xlane.xlu0 %3663 }
0x21e3   :  { %v3668_v13 = vmul.f32 0.03125, %v3664_v11  ;;  %v3844_v11 = vld [vmem:[%s6359_s25] sm:$0x3] }
0x21e5   :  { %v3676_v14 = vadd.f32 1e-06, %v3668_v13  ;;  %v3868_v13 = vrot.slane %v3844_v11, %v5483_v35  ;;  %v4274_v35 = vld [vmem:[%s6361_s8] ss:$0 sm:$0xff] }
0x21e6   :  { %v3667_v15 = vpop.xlane.xlu0 %3666 }
0x21e7   :  { %5170 = vrsqrt.f32 %v3676_v14  ;;  %v3669_v18 = vmul.f32 0.03125, %v3667_v15 }
0x21e9   :  { %v3677_v20 = vadd.f32 1e-06, %v3669_v18  ;;  %v3880_v18 = vrot.slane %v3844_v11, %v5551_v23 }
0x21eb   :  { %5172 = vrsqrt.f32 %v3677_v20 }
0x21f1   :  { %v5171_v2 = vpop.eup %5170 }
0x21f2   :  { %v3680_v28 = vmul.f32 %v5171_v2, %v3674_v3 }
0x21f4   :  { %v3686_v37 = vadd.f32 %v3685_v16, %v3680_v28 }
0x21f5   :  { %v5173_v30 = vpop.eup %5172 }
0x21f6   :  { %v3681_v33 = vmul.f32 %v5173_v30, %v3675_v19 }
0x21f8   :  { %v3687_v44 = vadd.f32 %v3685_v16, %v3681_v33 }
0x21fa   :  { %v3688_v45 = vpack.c.bf16 %v3687_v44, %v3686_v37 }
0x21fc   :  { %4751 = vmatmul.mubr.msk.bf16.vlgmr.msra.gmra.mrb[92].mxu0 %vm263_vm2, %v3688_v45 }
0x21fd   :  { %4770 = vmatprep.mubr.msk.bf16.mxu0 %vm5273_vm0, %v5272_v1  ;;  %4767 = vmatpush3.bf16.msra.mxu0 %v5019_v0 }
0x21fe   :  { %4768 = vmatprep.subr.bf16.mxu0 %v5272_v1 }
0x2201   :  { %4769 = vmatpush3.bf16.msra.mxu0 %v5020_v58 }
0x2202   :  { %4774 = vmatprep.subr.bf16.mxu0 %v5272_v1 }
0x22cf   :  { %v3748_v17 = vpop.f32.mrb[92].mxu0 }
0x22d0   :  { %v3749_v25 = vadd.f32 %v4256_v42, %v3748_v17  ;;  %v4752_v40 = vpop.f32.mrb[93].mxu0 }
0x22d1   :  { %v3751_v54 = vpop.f32.mrb[94].mxu0 }
0x22d2   :  { %v3752_v22 = vadd.f32 %v4256_v42, %v3751_v54  ;;  %v4753_v5 = vpop.f32.mrb[95].mxu0  ;;  %v3755_v48 = vmax.f32 %v3749_v25, 0.0 }
0x22d4   :  { %v3756_v9 = vmax.f32 %v3752_v22, 0.0 }
0x22d6   :  { %v3757_v43 = vpack.c.bf16 %v3756_v9, %v3755_v48 }
0x22d8   :  { %4763 = vmatmul.mubr.msk.bf16.vlgmr.msra.gmra.mrb[88].mxu1 %vm2004_vm10, %v3757_v43 }
0x23ab   :  { %v3828_v56 = vpop.f32.mrb[88].mxu1 }
0x23ac   :  { %v3835_v60 = vadd.f32 %v3828_v56, %v6258_v57  ;;  %v4764_v24 = vpop.f32.mrb[89].mxu1 }
0x23ad   :  { %v3831_v59 = vpop.f32.mrb[90].mxu1  ;;  %v4038_v24 = vld [vmem:[%s5437_s27 + $0x8] sm:$0xff] }
0x23ae   :  { %v3842_v41 = vadd.f32 %v4273_v55, %v3835_v60  ;;  %v3836_v36 = vadd.f32 %v3831_v59, %v6261_v49  ;;  %v4765_v39 = vpop.f32.mrb[91].mxu1  ;;  %v4037_v60 = vld [vmem:[%s5437_s27] sm:$0xff] }
0x23b0   :  { %v3843_v26 = vadd.f32 %v4273_v55, %v3836_v36  ;;  %v3845_v10 = vsel %vm263_vm2, %v3842_v41, 0.0 }
0x23b1   :  { %3846 = vadd.xlane.f32.xlu1 %v3845_v10 }
0x23b2   :  { %v3848_v38 = vsel %vm263_vm2, %v3843_v26, 0.0 }
0x23b3   :  { %3849 = vadd.xlane.f32.xlu0 %v3848_v38  ;;  %v4036_v38 = vand.u32 127, %v211_v27  ;;  %v5192_v27 = vld [vmem:[%s5312_s17] sm:$0xff] }
0x243e   :  { %v3847_v51 = vpop.xlane.xlu1 %3846 }
0x243f   :  { %v3851_v52 = vmul.f32 0.03125, %v3847_v51 }
0x2440   :  { %v3850_v34 = vpop.xlane.xlu0 %3849 }
0x2441   :  { %v3853_v12 = vsub.f32 %v3842_v41, %v3851_v52  ;;  %v3852_v57 = vmul.f32 0.03125, %v3850_v34 }
0x2443   :  { %v3854_v61 = vsub.f32 %v3843_v26, %v3852_v57  ;;  %v3855_v62 = vmul.f32 %v3853_v12, %v3853_v12  ;;  %v3869_v14 = vmul.f32 %v3868_v13, %v3853_v12 }
0x2445   :  { %v3857_v31 = vsel %vm263_vm2, %v3855_v62, 0.0  ;;  %v3856_v49 = vmul.f32 %v3854_v61, %v3854_v61  ;;  %v3870_v20 = vmul.f32 %v3868_v13, %v3854_v61 }
0x2446   :  { %3858 = vadd.xlane.f32.xlu1 %v3857_v31 }
0x2447   :  { %v3860_v63 = vsel %vm263_vm2, %v3856_v49, 0.0 }
0x2448   :  { %3861 = vadd.xlane.f32.xlu0 %v3860_v63 }
0x24d3   :  { %v3859_v4 = vpop.xlane.xlu1 %3858 }
0x24d4   :  { %v3863_v53 = vmul.f32 0.03125, %v3859_v4 }
0x24d5   :  { %v3862_v29 = vpop.xlane.xlu0 %3861 }
0x24d6   :  { %v3871_v6 = vadd.f32 1e-06, %v3863_v53  ;;  %v3864_v7 = vmul.f32 0.03125, %v3862_v29  ;;  %v5193_v53 = vld [vmem:[%s5312_s17 + $0x8] sm:$0xff] }
0x24d8   :  { %5174 = vrsqrt.f32 %v3871_v6  ;;  %v3872_v32 = vadd.f32 1e-06, %v3864_v7 }
0x24da   :  { %5176 = vrsqrt.f32 %v3872_v32 }
0x24e2   :  { %v5175_v15 = vpop.eup %5174 }
0x24e3   :  { %v3875_v21 = vmul.f32 %v5175_v15, %v3869_v14 }
0x24e4   :  { %v5177_v50 = vpop.eup %5176 }
0x24e5   :  { %v3876_v2 = vmul.f32 %v5177_v50, %v3870_v20  ;;  %v3881_v3 = vadd.f32 %v3880_v18, %v3875_v21 }
0x24e7   :  { %v3882_v19 = vadd.f32 %v3880_v18, %v3876_v2 }
0x24e9   :  { %v3883_v28 = vpack.c.bf16 %v3882_v19, %v3881_v3 }
0x24eb   :  { %4771 = vmatmul.mubr.msk.bf16.vlgmr.msra.gmra.mrb[96].mxu0 %vm263_vm2, %v3883_v28  ;;  %vm4065_vm2 = vcmask 7168  }
0x24ec   :  { %4776 = vmatprep.mubr.msk.bf16.mxu0 %vm5273_vm0, %v5272_v1  ;;  %4775 = vmatpush3.bf16.msra.mxu0 %v5021_v8 }
0x25be   :  { %v3944_v16 = vpop.f32.mrb[96].mxu0 }
0x25bf   :  { %v4772_v30 = vpop.f32.mrb[97].mxu0  ;;  %v3945_v23 = vadd.f32 %v4274_v35, %v3944_v16 }
0x25c0   :  { %v3947_v33 = vpop.f32.mrb[98].mxu0 }
0x25c1   :  { %v3948_v37 = vadd.f32 %v4274_v35, %v3947_v33  ;;  %v4773_v44 = vpop.f32.mrb[99].mxu0 }
0x25c3   :  { %v3951_v45 = vpack.c.bf16 %v3948_v37, %v3945_v23 }
0x25c5   :  { %4777 = vmatmul.mubr.msk.bf16.vlgmr.msra.gmra.mrb[100].mxu0 %vm143_vm1, %v3951_v45 }
0x2698   :  { %v4004_v47 = vpop.f32.mrb[100].mxu0 }
0x2699   :  { %v4005_v42 = vadd.f32 %v4278_v46, %v4004_v47  ;;  %v4778_v17 = vpop.f32.mrb[101].mxu0 }
0x269a   :  { %v4007_v25 = vpop.f32.mrb[102].mxu0 }
0x269b   :  { %v4008_v40 = vadd.f32 %v4278_v46, %v4007_v25  ;;  %4011 = vmax.xlane.f32.xlu1 %v4005_v42  ;;  %v4779_v1 = vpop.f32.mrb[103].mxu0 }
0x269d   :  { %4013 = vmax.xlane.f32.xlu0 %v4008_v40 }
0x2728   :  { %v4012_v54 = vpop.xlane.xlu1 %4011 }
0x2729   :  { %v4015_v22 = vsub.f32 %v4005_v42, %v4012_v54 }
0x272a   :  { %v4014_v5 = vpop.xlane.xlu0 %4013 }
0x272b   :  { %v4017_v48 = vmul.f32 1.442695, %v4015_v22  ;;  %v4016_v9 = vsub.f32 %v4008_v40, %v4014_v5 }
0x272d   :  { %5178 = vpow2.f32 %v4017_v48  ;;  %v4019_v43 = vmul.f32 1.442695, %v4016_v9 }
0x272f   :  { %5180 = vpow2.f32 %v4019_v43 }
0x2737   :  { %v5179_v56 = vpop.eup %5178 }
0x2738   :  { %4021 = vadd.xlane.f32.xlu1 %v5179_v56 }
0x2739   :  { %v5181_v55 = vpop.eup %5180 }
0x273a   :  { %4023 = vadd.xlane.f32.xlu0 %v5181_v55 }
0x2749   :  { %4040 = vperm.xlu1 %4982, %v4037_v60  }
0x2750   :  { %4043 = vperm.xlu0 %4845, %v4038_v24  }
0x27c5   :  { %v4022_v59 = vpop.xlane.xlu1 %4021 }
0x27c6   :  { %5182 = vlog2.f32 %v4022_v59 }
0x27c7   :  { %v4024_v41 = vpop.xlane.xlu0 %4023 }
0x27c8   :  { %5184 = vlog2.f32 %v4024_v41 }
0x27c9   :  { %v4041_v26 = vpop.permute.xlu1 %4040 }
0x27ca   :  { %vm4045_vm0 = vcmp.eq.s32.totalorder %v4036_v38, %v4041_v26 }
0x27cf   :  { %v4044_v12 = vpop.permute.xlu0 %4043 }
0x27d0   :  { %v5183_v36 = vpop.eup %5182  ;;  %vm4046_vm1 = vcmp.eq.s32.totalorder %v4036_v38, %v4044_v12 }
0x27d1   :  { %v4026_v39 = vmul.f32 0.6931472, %v5183_v36 }
0x27d2   :  { %v5185_v10 = vpop.eup %5184 }
0x27d3   :  { %v4029_v51 = vadd.f32 %v4026_v39, %v4012_v54  ;;  %v4028_v52 = vmul.f32 0.6931472, %v5185_v10 }
0x27d5   :  { %v4030_v34 = vadd.f32 %v4028_v52, %v4014_v5  ;;  %v4031_v57 = vsub.f32 %v4005_v42, %v4029_v51 }
0x27d7   :  { %v4032_v61 = vsub.f32 %v4008_v40, %v4030_v34  ;;  %4033 = vst [vmem:[#allocation2] sm:$0xff] %v4031_v57  ;;  %v4047_v62 = vsel %vm4045_vm0, %v4031_v57, 0.0 }
0x27d8   :  { %4049 = vadd.xlane.f32.xlu1 %v4047_v62 }
0x27d9   :  { %4034 = vst [vmem:[#allocation2 + $0x8] sm:$0xff] %v4032_v61  ;;  %v4048_v31 = vsel %vm4046_vm1, %v4032_v61, 0.0 }
0x27da   :  { %4051 = vadd.xlane.f32.xlu0 %v4048_v31 }
0x2865   :  { %v4050_v49 = vpop.xlane.xlu1 %4049 }
0x2866   :  { %v4053_v63 = vsub.f32 0.0, %v4050_v49 }
0x2867   :  { %v4052_v0 = vpop.xlane.xlu0 %4051 }
0x2868   :  { %v4055_v58 = vmul.f32 %v5192_v27, %v4053_v63  ;;  %v4054_v4 = vsub.f32 0.0, %v4052_v0 }
0x286a   :  { %v4056_v29 = vmul.f32 %v5193_v53, %v4054_v4  ;;  %4059 = vrot.lane.b32.xlu1 %v4055_v58, %s5285_s14 }
0x286c   :  { %4061 = vrot.lane.b32.xlu0 %v4056_v29, %s5285_s14 }
0x28dc   :  { %v4060_v6 = vpop.permute.xlu1 %4059 }
0x28dd   :  { %v4066_v32 = vsel %vm4065_vm2, %v4060_v6, 0.0 }
0x28de   :  { %v4062_v7 = vpop.permute.xlu0 %4061 }
0x28df   :  { %v4067_v11 = vsel %vm4065_vm2, %v4062_v7, 0.0 }
0x28e0   :  { %v4068_v13 = vadd.f32 %v4067_v11, %v4066_v32 }
0x28e2   :  { %4069 = vadd.xlane.f32.xlu1 %v4068_v13 }
0x28e3   :  { %5205 = shalt.err (!%p5202_p4)
}
0x28e4   :  { %s5206_s17 = scalar_lea.hbm %s5442_s19, 256 }
0x28e5   :  { %p5207_p5 = scmp.ne.s32.totalorder %s5442_s19, %s5206_s17  ;;  %p5210_p6 = scmp.lt.u32.totalorder %s5206_s17, %s5442_s19 }
0x28e7   :  { %p5212_p7 = pnand %p5210_p6, %p5207_p5 }
0x28e9   :  { %5215 = shalt.err (!%p5212_p7)
}
0x28ea   :  { %s5287_s20 = smov 128   ;;  %s5288_s27 = smov [#allocation4]   ;;  %vm4079_vm3 = vcmask 0  }
0x28eb   :  { %4092 = dma.vmem_to_hbm [thread:$0]  %s4087_s6, 256, %s5442_s19, [#allocation3], %s5287_s20, %s5287_s20, %s5282_s15  }
0x28ec   :  { %s4099_s4 = sshll.u32 %s5288_s27, 4  ;;  %s4100_s4 = int_to_ptr.vmem [resolvable:$true] %s4099_s4 }
0x28ed   :  { %s5216_s5 = scalar_lea.vmem %s4100_s4, 16  ;;  %s5220_s9 = scalar_lea.vmem %s4100_s4, 32 }
0x28ee   :  { %p5217_p8 = scmp.ne.s32.totalorder %s4100_s4, %s5216_s5  ;;  %p5221_p9 = scmp.lt.s32.totalorder %s4100_s4, %s4100_s4 }
0x28ef   :  { %p5222_p10 = scmp.lt.s32.totalorder %s5220_s9, %s5216_s5 }
0x28f1   :  { %p5223_p11 = por %p5222_p10, %p5221_p9 }
0x28f3   :  { %p5224_p12 = pnand %p5223_p11, %p5217_p8 }
0x296f   :  { %v4070_v14 = vpop.xlane.xlu1 %4069 }
0x2970   :  { %v4071_v15 = vrot.slane %v4070_v14, 4 }
0x2972   :  { %v4072_v18 = vadd.f32 %v4071_v15, %v4070_v14 }
0x2974   :  { %v4073_v20 = vrot.slane %v4072_v18, 2 }
0x2976   :  { %v4074_v21 = vadd.f32 %v4073_v20, %v4072_v18 }
0x2978   :  { %v4075_v50 = vrot.slane %v4074_v21, 1 }
0x297a   :  { %v4076_v2 = vadd.f32 %v4075_v50, %v4074_v21 }
0x297c   :  { %4780 = vpush %v4076_v2 }
0x29ad   :  { %s4781_s0 = spop %4780 }
0x29ae   :  { %v4078_v3 = vstv %s4781_s0 }
0x29af   :  { %4080 = vst.msk [vmem:[#allocation4] sm:$0x1] %vm4079_vm3, %v4078_v3 }
0x29b0   :  { %5227 = shalt.err (!%p5224_p12)
}
0x29b1   :  { %s5228_s19 = scalar_lea.hbm %s5447_s30, 16 }
0x29b2   :  { %p5229_p13 = scmp.ne.s32.totalorder %s5447_s30, %s5228_s19  ;;  %p5232_p0 = scmp.lt.u32.totalorder %s5228_s19, %s5447_s30 }
0x29b4   :  { %p5234_p1 = pnand %p5232_p0, %p5229_p13 }
0x29b6   :  { %5237 = shalt.err (!%p5234_p1)
}
0x29b7   :  { %4102 = dma.vmem_to_hbm [thread:$0]  %s4100_s4, 16, %s5447_s30, [#allocation5]  }
0x29b8   :  { %5238 = dma.done.wait [#allocation3], 256  }
0x29b9   :  { %5239 = vsyncadd [#allocation3], 4294967040 }
0x29ba   :  { %5240 = dma.done.wait [#allocation5], 16  }
0x29bb   :  { %5241 = vsyncadd [#allocation5], 4294967280 }
0x29bc   :  { %4109 = vsyncpa [#allocation3], 1 }
0x29bd   :  { %4110 = vsyncpa [#allocation5], 1 }

</bundles_post_ra>
